<compile_context>
chip_gen: v7x
topology: tpu7x:2x2x1
jax: 0.10.0
libtpu: 0.0.40
codegen_flags: <defaults>
</compile_context>

<pallas_src>
import functools

import jax
import jax.numpy as jnp
from jax import lax
from jax.experimental import pallas as pl
from jax.experimental.pallas import tpu as pltpu

_NEG_BIG = -1e30


def _multitask_loss_kernel(anchor_ref, queue_ref, lab_col_ref, lab_row_ref,
                           sup_ref, out_ref,
                           m_ref, l_ref, snum_ref, scnt_ref,
                           *, tb, tn, b_anchor, n_valid, alpha, inv_temp,
                           temperature, base_temperature, smoothing,
                           assume_normalized):
    bi = pl.program_id(0)          # batch tile
    ni = pl.program_id(1)          # queue tile (reduction axis, innermost)
    n_tiles = pl.num_programs(1)

    # ---- init online-softmax accumulators at the start of each N sweep ----
    @pl.when(ni == 0)
    def _():
        if not assume_normalized:
            m_ref[...] = jnp.full_like(m_ref, _NEG_BIG)
        l_ref[...] = jnp.zeros_like(l_ref)
        snum_ref[...] = jnp.zeros_like(snum_ref)
        scnt_ref[...] = jnp.zeros_like(scnt_ref)

    # ---- contrastive scores: trans-B MXU matmul (tb, D) x (tn, D)^T, f32 acc --
    scores = lax.dot_general(anchor_ref[...], queue_ref[...],
                             dimension_numbers=(((1,), (1,)), ((), ())),
                             preferred_element_type=jnp.float32)     # (tb, tn)
    if inv_temp != 1.0:
        scores = scores * inv_temp

    lab_eq = lab_col_ref[...] == lab_row_ref[...]                    # (tb, tn)

    # Does this queue tile contain any self-diagonal column for this batch
    # tile, or any column past the real queue length?  Interior tiles take a
    # mask-free fast path (the common case when K >> B).
    row_lo = bi * tb
    col_lo = ni * tn
    row_hi = jnp.minimum(row_lo + tb, b_anchor)        # real anchors only
    needs_diag = jnp.logical_and(col_lo < row_hi, col_lo + tn > row_lo)
    needs_valid = (col_lo + tn) > n_valid
    needs_mask = jnp.logical_or(needs_diag, needs_valid)

    def _update(apply_mask):
        if apply_mask:
            row_g = row_lo + lax.broadcasted_iota(jnp.int32, (tb, tn), 0)
            col_g = col_lo + lax.broadcasted_iota(jnp.int32, (tb, tn), 1)
            valid = col_g < n_valid                     # drop ragged tail cols
            keep = jnp.logical_and(valid, row_g != col_g)   # logits_mask
            scores_v = jnp.where(valid, scores, _NEG_BIG)
            pos = jnp.logical_and(lab_eq, keep)
        else:
            keep = None
            scores_v = scores
            pos = lab_eq

        if assume_normalized:
            # logits_max == 1/T exactly for L2-normalized features (self col).
            p = jnp.exp(scores_v - inv_temp)
            if apply_mask:
                p = p * keep.astype(jnp.float32)
            l_ref[...] += jnp.sum(p, axis=1, keepdims=True)
        else:
            m_tile = jnp.max(scores_v, axis=1, keepdims=True)
            m_new = jnp.maximum(m_ref[...], m_tile)
            p = jnp.exp(scores_v - m_new)
            if apply_mask:
                p = p * keep.astype(jnp.float32)
            l_ref[...] = (jnp.exp(m_ref[...] - m_new) * l_ref[...]
                          + jnp.sum(p, axis=1, keepdims=True))
            m_ref[...] = m_new

        # Linear accumulators for the numerator.  jnp.where (not multiply) so
        # garbage in out-of-bounds columns can never poison the sums.
        snum_ref[...] += jnp.sum(jnp.where(pos, scores, 0.0),
                                 axis=1, keepdims=True)
        scnt_ref[...] += jnp.sum(pos.astype(jnp.float32),
                                 axis=1, keepdims=True)

    @pl.when(jnp.logical_not(needs_mask))
    def _():
        _update(False)

    @pl.when(needs_mask)
    def _():
        _update(True)

    # ---- epilogue on the last queue tile: finalize contrastive + smoothed CE --
    @pl.when(ni == n_tiles - 1)
    def _():
        logits_max = inv_temp if assume_normalized else m_ref[...]
        # mean_log_prob_pos = sum(mask*logits)/sum(mask) - log(sum(exp_logits)+1e-12)
        # NOTE: faithful to PyTorch — an anchor row with no positives is 0/0 = NaN.
        mlpp = (snum_ref[...] / scnt_ref[...] - logits_max
                - jnp.log(l_ref[...] + 1e-12))                      # (tb, 1)
        loss_con = -(temperature / base_temperature) * mlpp

        sup = sup_ref[...].astype(jnp.float32)                      # (tb, C)
        c = sup.shape[1]
        mx = jnp.max(sup, axis=1, keepdims=True)
        lse = mx + jnp.log(jnp.sum(jnp.exp(sup - mx), axis=1, keepdims=True))
        logprobs = sup - lse
        cls_i = lax.broadcasted_iota(jnp.int32, sup.shape, 1)
        onehot = (cls_i == lab_col_ref[...]).astype(jnp.float32)
        nll = -jnp.sum(onehot * logprobs, axis=1, keepdims=True)
        smooth = -jnp.sum(logprobs, axis=1, keepdims=True) / c
        ce = (1.0 - smoothing) * nll + smoothing * smooth           # (tb, 1)

        out_ref[...] = ce + alpha * loss_con


def _round_up(x, m):
    return (x + m - 1) // m * m


def _pick_tb(B, D, C, f_item, s_item, budget_bytes):
    """Batch tile: cover all anchors in one 128-aligned tile when the resident
    (double-buffered) anchor + sup blocks fit the budget; else shrink."""
    per_row = 2 * (D * f_item + C * s_item) + 4096   # residents + padded scratch
    fit = max(128, (budget_bytes // max(per_row, 1)) // 128 * 128)
    return min(max(128, _round_up(B, 128)), fit)


def _pick_tn(N, D, f_item, tn_req, budget_bytes):
    """Queue tile: 256-aligned, no wider than the (rounded) queue, and sized so
    the streamed double-buffer stays inside the budget."""
    tn = max(256, _round_up(int(tn_req), 256))
    tn = min(tn, _round_up(N, 256))
    fit = (budget_bytes // (2 * D * f_item)) // 256 * 256
    return max(256, min(tn, fit)) if fit >= 256 else 256


def multitask_loss(features, labels, sup_logits, *, K, alpha,
                   temperature=1.0, base_temperature=None, smoothing=0.1,
                   tn=2048, assume_normalized=False, vmem_limit_bytes=None):
    """features: (B+K, D), labels: (B+K,), sup_logits: (B, C) -> scalar loss."""
    base_temperature = (float(temperature) if base_temperature is None
                        else float(base_temperature))
    N, D = features.shape
    B = N - K
    C = sup_logits.shape[1]

    labels = labels.reshape(-1).astype(jnp.int32)
    lab_col = labels.reshape(-1, 1)            # (N, 1): anchor labels per row
    lab_row = labels.reshape(1, -1)            # (1, N): all labels per column

    f_item = jnp.dtype(features.dtype).itemsize
    s_item = jnp.dtype(sup_logits.dtype).itemsize

    # VMEM-aware tile selection (defaults fit v5e's 16 MiB scoped default and
    # v7x's 64 MiB physical VMEM without raising any limits).
    vmem_budget = int(vmem_limit_bytes) if vmem_limit_bytes else (14 << 20)
    tb = _pick_tb(B, D, C, f_item, s_item, budget_bytes=vmem_budget // 3)
    tn_sel = _pick_tn(N, D, f_item, tn, budget_bytes=vmem_budget // 2)

    n_b = pl.cdiv(B, tb)
    n_n = pl.cdiv(N, tn_sel)

    kernel = functools.partial(
        _multitask_loss_kernel,
        tb=tb, tn=tn_sel, b_anchor=B, n_valid=N,
        alpha=float(alpha), inv_temp=1.0 / float(temperature),
        temperature=float(temperature), base_temperature=base_temperature,
        smoothing=float(smoothing), assume_normalized=bool(assume_normalized))

    grid_spec = pltpu.PrefetchScalarGridSpec(
        num_scalar_prefetch=0,
        grid=(n_b, n_n),
        in_specs=[
            pl.BlockSpec((tb, D), lambda bi, ni: (bi, 0)),   # anchor rows (resident)
            pl.BlockSpec((tn_sel, D), lambda bi, ni: (ni, 0)),  # queue tile (streamed)
            pl.BlockSpec((tb, 1), lambda bi, ni: (bi, 0)),   # anchor labels (column)
            pl.BlockSpec((1, tn_sel), lambda bi, ni: (0, ni)),  # all labels (row)
            pl.BlockSpec((tb, C), lambda bi, ni: (bi, 0)),   # sup_logits (resident)
        ],
        out_specs=pl.BlockSpec((tb, 1), lambda bi, ni: (bi, 0)),
        # (tb, 1) f32 accumulators: m, l, snum, scnt.  Lane-padded to 128 in
        # VMEM — accepted knowingly (a few hundred KiB at most).
        scratch_shapes=[pltpu.VMEM((tb, 1), jnp.float32)] * 4,
    )

    cost = pl.CostEstimate(
        flops=2 * n_b * tb * n_n * tn_sel * D,
        transcendentals=n_b * tb * n_n * tn_sel + B * C,
        bytes_accessed=(n_b * N * D * f_item + n_b * tb * D * f_item
                        + B * C * s_item + 2 * N * 4 + B * 4))

    cp_kwargs = dict(dimension_semantics=("parallel", "arbitrary"))
    if vmem_limit_bytes is not None:
        cp_kwargs["vmem_limit_bytes"] = int(vmem_limit_bytes)

    per_row = pl.pallas_call(
        kernel,
        out_shape=jax.ShapeDtypeStruct((B, 1), jnp.float32),
        grid_spec=grid_spec,
        compiler_params=pltpu.CompilerParams(**cp_kwargs),
        cost_estimate=cost,
    )(features, features, lab_col, lab_row, sup_logits)

    # mean(ce) + alpha * mean(loss_con)  ==  mean(ce + alpha * loss_con)
    return jnp.sum(per_row) / B


def _reference_loss(features, labels, sup_logits, *, K, alpha, temperature=1.0,
                    base_temperature=None, smoothing=0.1):
    """Pure-JAX mirror of the PyTorch forward (verification only)."""
    base_temperature = temperature if base_temperature is None else base_temperature
    feats = features.astype(jnp.float32)
    N = feats.shape[0]
    B = N - K
    labels = labels.reshape(-1).astype(jnp.int32)
    lab_col = labels[:B].reshape(B, 1)
    mask = (lab_col == labels.reshape(1, N)).astype(jnp.float32)
    anchor_dot = feats[:B] @ feats.T / temperature
    logits = anchor_dot - jnp.max(anchor_dot, axis=1, keepdims=True)
    eye = (lax.broadcasted_iota(jnp.int32, (B, N), 0)
           == lax.broadcasted_iota(jnp.int32, (B, N), 1))
    logits_mask = jnp.where(eye, 0.0, 1.0)
    mask = mask * logits_mask
    exp_logits = jnp.exp(logits) * logits_mask
    log_prob = logits - jnp.log(jnp.sum(exp_logits, axis=1, keepdims=True) + 1e-12)
    mlpp = jnp.sum(mask * log_prob, axis=1) / jnp.sum(mask, axis=1)
    loss_con = jnp.mean(-(temperature / base_temperature) * mlpp)
    sup = sup_logits.astype(jnp.float32)
    logprobs = jax.nn.log_softmax(sup, axis=-1)
    nll = -jnp.take_along_axis(logprobs, lab_col, axis=1)[:, 0]
    smooth = -jnp.mean(logprobs, axis=-1)
    ce = jnp.mean((1.0 - smoothing) * nll + smoothing * smooth)
    return ce + alpha * loss_con


if __name__ == "__main__":
    key = jax.random.PRNGKey(0)
    kf, ks = jax.random.split(key)

    # Small shapes: 8 anchors + 1000 queue rows, D=128, 128 classes.  With
    # tn=256 this exercises the diag-masked first tile, two mask-free interior
    # tiles, and a ragged (partial) last tile.
    B, K, D, C = 8, 1000, 128, 128
    N = B + K

    feats = jax.random.normal(kf, (N, D), dtype=jnp.float32)
    feats = feats / jnp.linalg.norm(feats, axis=1, keepdims=True)
    feats = feats.astype(jnp.bfloat16)              # bf16 storage end-to-end
    labels = jnp.arange(N, dtype=jnp.int32) % 4     # every anchor has positives
    sup_logits = jax.random.normal(ks, (B, C), dtype=jnp.float32)

    loss = multitask_loss(feats, labels, sup_logits, K=K, alpha=0.05,
                          temperature=1.0, smoothing=0.1, tn=256)
    jax.block_until_ready(loss)

    ref = _reference_loss(feats, labels, sup_logits, K=K, alpha=0.05,
                          temperature=1.0, smoothing=0.1)
    assert jnp.isfinite(loss), "loss is not finite"
    assert abs(float(loss) - float(ref)) <= 1e-2 + 1e-2 * abs(float(ref)), (
        float(loss), float(ref))

    # Optional fast path for L2-normalized features (GPaCo always normalizes).
    loss_n = multitask_loss(feats, labels, sup_logits, K=K, alpha=0.05,
                            temperature=1.0, smoothing=0.1, tn=256,
                            assume_normalized=True)
    jax.block_until_ready(loss_n)
    assert abs(float(loss_n) - float(ref)) <= 1e-2 + 1e-2 * abs(float(ref)), (
        float(loss_n), float(ref))
    print("KERNEL_OK")
</pallas_src>

<mosaic_0001>
module attributes {stable_mosaic.version = 11 : i64} {
  func.func @_multitask_loss_kernel(%arg0: i32, %arg1: i32, %arg2: memref<128x128xbf16, #tpu.memory_space<vmem>>, %arg3: memref<256x128xbf16, #tpu.memory_space<vmem>>, %arg4: memref<128x1xi32, #tpu.memory_space<vmem>>, %arg5: memref<1x256xi32, #tpu.memory_space<vmem>>, %arg6: memref<128x128xf32, #tpu.memory_space<vmem>>, %arg7: memref<128x1xf32, #tpu.memory_space<vmem>>, %arg8: memref<128x1xf32, #tpu.memory_space<vmem>>, %arg9: memref<128x1xf32, #tpu.memory_space<vmem>>, %arg10: memref<128x1xf32, #tpu.memory_space<vmem>>, %arg11: memref<128x1xf32, #tpu.memory_space<vmem>>) attributes {dimension_semantics = [#tpu.dimension_semantics<parallel>, #tpu.dimension_semantics<arbitrary>], iteration_bounds = array<i64: 1, 4>, scalar_prefetch = 0 : i64, scratch_operands = 4 : i64, tpu.core_type = #tpu.core_type<tc>, window_params = [{transform_indices = @transform_0, window_bounds = array<i64: 128, 128>}, {transform_indices = @transform_1, window_bounds = array<i64: 256, 128>}, {transform_indices = @transform_2, window_bounds = array<i64: 128, 1>}, {transform_indices = @transform_3, window_bounds = array<i64: 1, 256>}, {transform_indices = @transform_4, window_bounds = array<i64: 128, 128>}, {transform_indices = @transform_5, window_bounds = array<i64: 128, 1>}]} {
    %c0_i32 = arith.constant 0 : i32
    %0 = arith.cmpi eq, %arg1, %c0_i32 : i32
    %1 = arith.extui %0 : i1 to i32
    %c0_i32_0 = arith.constant 0 : i32
    %2 = arith.cmpi ne, %1, %c0_i32_0 : i32
    scf.if %2 {
      %cst_14 = arith.constant -1.000000e+30 : f32
      %30 = vector.broadcast %cst_14 : f32 to vector<128x1xf32>
      %c0_15 = arith.constant 0 : index
      %c0_16 = arith.constant 0 : index
      %31 = vector.load %arg8[%c0_15, %c0_16] : memref<128x1xf32, #tpu.memory_space<vmem>>, vector<128x1xf32>
      tpu.vector_store %arg8[%c0_15, %c0_16], %30 {strides = array<i32>} : memref<128x1xf32, #tpu.memory_space<vmem>>, vector<128x1xf32>,
      %cst_17 = arith.constant 0.000000e+00 : f32
      %32 = vector.broadcast %cst_17 : f32 to vector<128x1xf32>
      %c0_18 = arith.constant 0 : index
      %c0_19 = arith.constant 0 : index
      %33 = vector.load %arg9[%c0_18, %c0_19] : memref<128x1xf32, #tpu.memory_space<vmem>>, vector<128x1xf32>
      tpu.vector_store %arg9[%c0_18, %c0_19], %32 {strides = array<i32>} : memref<128x1xf32, #tpu.memory_space<vmem>>, vector<128x1xf32>,
      %cst_20 = arith.constant 0.000000e+00 : f32
      %34 = vector.broadcast %cst_20 : f32 to vector<128x1xf32>
      %c0_21 = arith.constant 0 : index
      %c0_22 = arith.constant 0 : index
      %35 = vector.load %arg10[%c0_21, %c0_22] : memref<128x1xf32, #tpu.memory_space<vmem>>, vector<128x1xf32>
      tpu.vector_store %arg10[%c0_21, %c0_22], %34 {strides = array<i32>} : memref<128x1xf32, #tpu.memory_space<vmem>>, vector<128x1xf32>,
      %cst_23 = arith.constant 0.000000e+00 : f32
      %36 = vector.broadcast %cst_23 : f32 to vector<128x1xf32>
      %c0_24 = arith.constant 0 : index
      %c0_25 = arith.constant 0 : index
      %37 = vector.load %arg11[%c0_24, %c0_25] : memref<128x1xf32, #tpu.memory_space<vmem>>, vector<128x1xf32>
      tpu.vector_store %arg11[%c0_24, %c0_25], %36 {strides = array<i32>} : memref<128x1xf32, #tpu.memory_space<vmem>>, vector<128x1xf32>,
    } else {
    }
    %c0 = arith.constant 0 : index
    %c0_1 = arith.constant 0 : index
    %3 = vector.load %arg2[%c0, %c0_1] : memref<128x128xbf16, #tpu.memory_space<vmem>>, vector<128x128xbf16>
    %c0_2 = arith.constant 0 : index
    %c0_3 = arith.constant 0 : index
    %4 = vector.load %arg3[%c0_2, %c0_3] : memref<256x128xbf16, #tpu.memory_space<vmem>>, vector<256x128xbf16>
    %cst = arith.constant dense<0.000000e+00> : vector<128x256xf32>
    %5 = tpu.matmul %3, %4, %cst {dimension_numbers = #tpu.dot_dimension_numbers<[1], [1], [0], [0], [0, 0, 1, 0], [], []>} : vector<128x128xbf16>, vector<256x128xbf16>, vector<128x256xf32> -> vector<128x256xf32>
    %c0_4 = arith.constant 0 : index
    %c0_5 = arith.constant 0 : index
    %6 = vector.load %arg4[%c0_4, %c0_5] : memref<128x1xi32, #tpu.memory_space<vmem>>, vector<128x1xi32>
    %c0_6 = arith.constant 0 : index
    %c0_7 = arith.constant 0 : index
    %7 = vector.load %arg5[%c0_6, %c0_7] : memref<1x256xi32, #tpu.memory_space<vmem>>, vector<1x256xi32>
    %8 = vector.broadcast %6 : vector<128x1xi32> to vector<128x256xi32>
    %9 = vector.broadcast %7 : vector<1x256xi32> to vector<128x256xi32>
    %10 = arith.cmpi eq, %8, %9 : vector<128x256xi32>
    %c128_i32 = arith.constant 128 : i32
    %11 = arith.muli %arg0, %c128_i32 : i32
    %c256_i32 = arith.constant 256 : i32
    %12 = arith.muli %arg1, %c256_i32 : i32
    %c128_i32_8 = arith.constant 128 : i32
    %13 = arith.addi %11, %c128_i32_8 : i32
    %c8_i32 = arith.constant 8 : i32
    %14 = arith.minsi %13, %c8_i32 : i32
    %15 = arith.cmpi slt, %12, %14 : i32
    %c256_i32_9 = arith.constant 256 : i32
    %16 = arith.addi %12, %c256_i32_9 : i32
    %17 = arith.cmpi sgt, %16, %11 : i32
    %18 = arith.andi %15, %17 : i1
    %c256_i32_10 = arith.constant 256 : i32
    %19 = arith.addi %12, %c256_i32_10 : i32
    %c1008_i32 = arith.constant 1008 : i32
    %20 = arith.cmpi sgt, %19, %c1008_i32 : i32
    %21 = arith.ori %18, %20 : i1
    %true = arith.constant true
    %22 = arith.xori %21, %true : i1
    %23 = arith.extui %22 : i1 to i32
    %c0_i32_11 = arith.constant 0 : i32
    %24 = arith.cmpi ne, %23, %c0_i32_11 : i32
    scf.if %24 {
      %cst_14 = arith.constant dense<0xFF800000> : vector<128xf32>
      %30 = vector.multi_reduction <maximumf>, %5, %cst_14 [1] : vector<128x256xf32> to vector<128xf32>
      %31 = vector.shape_cast %30 : vector<128xf32> to vector<128x1xf32>
      %c0_15 = arith.constant 0 : index
      %c0_16 = arith.constant 0 : index
      %32 = vector.load %arg8[%c0_15, %c0_16] : memref<128x1xf32, #tpu.memory_space<vmem>>, vector<128x1xf32>
      %33 = arith.maximumf %32, %31 : vector<128x1xf32>
      %34 = vector.broadcast %33 : vector<128x1xf32> to vector<128x256xf32>
      %35 = arith.subf %5, %34 : vector<128x256xf32>
      %36 = math.exp %35 : vector<128x256xf32>
      %c0_17 = arith.constant 0 : index
      %c0_18 = arith.constant 0 : index
      %37 = vector.load %arg8[%c0_17, %c0_18] : memref<128x1xf32, #tpu.memory_space<vmem>>, vector<128x1xf32>
      %38 = arith.subf %37, %33 : vector<128x1xf32>
      %39 = math.exp %38 : vector<128x1xf32>
      %c0_19 = arith.constant 0 : index
      %c0_20 = arith.constant 0 : index
      %40 = vector.load %arg9[%c0_19, %c0_20] : memref<128x1xf32, #tpu.memory_space<vmem>>, vector<128x1xf32>
      %41 = arith.mulf %39, %40 : vector<128x1xf32>
      %cst_21 = arith.constant dense<0.000000e+00> : vector<128xf32>
      %42 = vector.multi_reduction <add>, %36, %cst_21 [1] : vector<128x256xf32> to vector<128xf32>
      %43 = vector.shape_cast %42 : vector<128xf32> to vector<128x1xf32>
      %44 = arith.addf %41, %43 : vector<128x1xf32>
      %c0_22 = arith.constant 0 : index
      %c0_23 = arith.constant 0 : index
      %45 = vector.load %arg9[%c0_22, %c0_23] : memref<128x1xf32, #tpu.memory_space<vmem>>, vector<128x1xf32>
      tpu.vector_store %arg9[%c0_22, %c0_23], %44 {strides = array<i32>} : memref<128x1xf32, #tpu.memory_space<vmem>>, vector<128x1xf32>,
      %c0_24 = arith.constant 0 : index
      %c0_25 = arith.constant 0 : index
      %46 = vector.load %arg8[%c0_24, %c0_25] : memref<128x1xf32, #tpu.memory_space<vmem>>, vector<128x1xf32>
      tpu.vector_store %arg8[%c0_24, %c0_25], %33 {strides = array<i32>} : memref<128x1xf32, #tpu.memory_space<vmem>>, vector<128x1xf32>,
      %c0_26 = arith.constant 0 : index
      %c0_27 = arith.constant 0 : index
      %47 = vector.load %arg10[%c0_26, %c0_27] : memref<128x1xf32, #tpu.memory_space<vmem>>, vector<128x1xf32>
      %cst_28 = arith.constant 0.000000e+00 : f32
      %48 = vector.broadcast %cst_28 : f32 to vector<128x256xf32>
      %49 = arith.select %10, %5, %48 : vector<128x256xi1>, vector<128x256xf32>
      %cst_29 = arith.constant dense<0.000000e+00> : vector<128xf32>
      %50 = vector.multi_reduction <add>, %49, %cst_29 [1] : vector<128x256xf32> to vector<128xf32>
      %51 = vector.shape_cast %50 : vector<128xf32> to vector<128x1xf32>
      %52 = arith.addf %47, %51 : vector<128x1xf32>
      %c0_30 = arith.constant 0 : index
      %c0_31 = arith.constant 0 : index
      %53 = vector.load %arg10[%c0_30, %c0_31] : memref<128x1xf32, #tpu.memory_space<vmem>>, vector<128x1xf32>
      tpu.vector_store %arg10[%c0_30, %c0_31], %52 {strides = array<i32>} : memref<128x1xf32, #tpu.memory_space<vmem>>, vector<128x1xf32>,
      %c0_32 = arith.constant 0 : index
      %c0_33 = arith.constant 0 : index
      %54 = vector.load %arg11[%c0_32, %c0_33] : memref<128x1xf32, #tpu.memory_space<vmem>>, vector<128x1xf32>
      %55 = arith.extui %10 : vector<128x256xi1> to vector<128x256xi32>
      %56 = arith.sitofp %55 : vector<128x256xi32> to vector<128x256xf32>
      %cst_34 = arith.constant dense<0.000000e+00> : vector<128xf32>
      %57 = vector.multi_reduction <add>, %56, %cst_34 [1] : vector<128x256xf32> to vector<128xf32>
      %58 = vector.shape_cast %57 : vector<128xf32> to vector<128x1xf32>
      %59 = arith.addf %54, %58 : vector<128x1xf32>
      %c0_35 = arith.constant 0 : index
      %c0_36 = arith.constant 0 : index
      %60 = vector.load %arg11[%c0_35, %c0_36] : memref<128x1xf32, #tpu.memory_space<vmem>>, vector<128x1xf32>
      tpu.vector_store %arg11[%c0_35, %c0_36], %59 {strides = array<i32>} : memref<128x1xf32, #tpu.memory_space<vmem>>, vector<128x1xf32>,
    } else {
    }
    %25 = arith.extui %21 : i1 to i32
    %c0_i32_12 = arith.constant 0 : i32
    %26 = arith.cmpi ne, %25, %c0_i32_12 : i32
    scf.if %26 {
      %30 = tpu.iota {dimensions = array<i32: 0>} : vector<128x256xi32>
      %31 = vector.broadcast %11 : i32 to vector<128x256xi32>
      %32 = arith.addi %31, %30 : vector<128x256xi32>
      %33 = tpu.iota {dimensions = array<i32: 1>} : vector<128x256xi32>
      %34 = vector.broadcast %12 : i32 to vector<128x256xi32>
      %35 = arith.addi %34, %33 : vector<128x256xi32>
      %c1008_i32_14 = arith.constant 1008 : i32
      %36 = vector.broadcast %c1008_i32_14 : i32 to vector<128x256xi32>
      %37 = arith.cmpi slt, %35, %36 : vector<128x256xi32>
      %38 = arith.cmpi ne, %32, %35 : vector<128x256xi32>
      %39 = arith.andi %37, %38 : vector<128x256xi1>
      %cst_15 = arith.constant -1.000000e+30 : f32
      %40 = vector.broadcast %cst_15 : f32 to vector<128x256xf32>
      %41 = arith.select %37, %5, %40 : vector<128x256xi1>, vector<128x256xf32>
      %42 = arith.andi %10, %39 : vector<128x256xi1>
      %cst_16 = arith.constant dense<0xFF800000> : vector<128xf32>
      %43 = vector.multi_reduction <maximumf>, %41, %cst_16 [1] : vector<128x256xf32> to vector<128xf32>
      %44 = vector.shape_cast %43 : vector<128xf32> to vector<128x1xf32>
      %c0_17 = arith.constant 0 : index
      %c0_18 = arith.constant 0 : index
      %45 = vector.load %arg8[%c0_17, %c0_18] : memref<128x1xf32, #tpu.memory_space<vmem>>, vector<128x1xf32>
      %46 = arith.maximumf %45, %44 : vector<128x1xf32>
      %47 = vector.broadcast %46 : vector<128x1xf32> to vector<128x256xf32>
      %48 = arith.subf %41, %47 : vector<128x256xf32>
      %49 = math.exp %48 : vector<128x256xf32>
      %50 = arith.extui %39 : vector<128x256xi1> to vector<128x256xi32>
      %51 = arith.sitofp %50 : vector<128x256xi32> to vector<128x256xf32>
      %52 = arith.mulf %49, %51 : vector<128x256xf32>
      %c0_19 = arith.constant 0 : index
      %c0_20 = arith.constant 0 : index
      %53 = vector.load %arg8[%c0_19, %c0_20] : memref<128x1xf32, #tpu.memory_space<vmem>>, vector<128x1xf32>
      %54 = arith.subf %53, %46 : vector<128x1xf32>
      %55 = math.exp %54 : vector<128x1xf32>
      %c0_21 = arith.constant 0 : index
      %c0_22 = arith.constant 0 : index
      %56 = vector.load %arg9[%c0_21, %c0_22] : memref<128x1xf32, #tpu.memory_space<vmem>>, vector<128x1xf32>
      %57 = arith.mulf %55, %56 : vector<128x1xf32>
      %cst_23 = arith.constant dense<0.000000e+00> : vector<128xf32>
      %58 = vector.multi_reduction <add>, %52, %cst_23 [1] : vector<128x256xf32> to vector<128xf32>
      %59 = vector.shape_cast %58 : vector<128xf32> to vector<128x1xf32>
      %60 = arith.addf %57, %59 : vector<128x1xf32>
      %c0_24 = arith.constant 0 : index
      %c0_25 = arith.constant 0 : index
      %61 = vector.load %arg9[%c0_24, %c0_25] : memref<128x1xf32, #tpu.memory_space<vmem>>, vector<128x1xf32>
      tpu.vector_store %arg9[%c0_24, %c0_25], %60 {strides = array<i32>} : memref<128x1xf32, #tpu.memory_space<vmem>>, vector<128x1xf32>,
      %c0_26 = arith.constant 0 : index
      %c0_27 = arith.constant 0 : index
      %62 = vector.load %arg8[%c0_26, %c0_27] : memref<128x1xf32, #tpu.memory_space<vmem>>, vector<128x1xf32>
      tpu.vector_store %arg8[%c0_26, %c0_27], %46 {strides = array<i32>} : memref<128x1xf32, #tpu.memory_space<vmem>>, vector<128x1xf32>,
      %c0_28 = arith.constant 0 : index
      %c0_29 = arith.constant 0 : index
      %63 = vector.load %arg10[%c0_28, %c0_29] : memref<128x1xf32, #tpu.memory_space<vmem>>, vector<128x1xf32>
      %cst_30 = arith.constant 0.000000e+00 : f32
      %64 = vector.broadcast %cst_30 : f32 to vector<128x256xf32>
      %65 = arith.select %42, %5, %64 : vector<128x256xi1>, vector<128x256xf32>
      %cst_31 = arith.constant dense<0.000000e+00> : vector<128xf32>
      %66 = vector.multi_reduction <add>, %65, %cst_31 [1] : vector<128x256xf32> to vector<128xf32>
      %67 = vector.shape_cast %66 : vector<128xf32> to vector<128x1xf32>
      %68 = arith.addf %63, %67 : vector<128x1xf32>
      %c0_32 = arith.constant 0 : index
      %c0_33 = arith.constant 0 : index
      %69 = vector.load %arg10[%c0_32, %c0_33] : memref<128x1xf32, #tpu.memory_space<vmem>>, vector<128x1xf32>
      tpu.vector_store %arg10[%c0_32, %c0_33], %68 {strides = array<i32>} : memref<128x1xf32, #tpu.memory_space<vmem>>, vector<128x1xf32>,
      %c0_34 = arith.constant 0 : index
      %c0_35 = arith.constant 0 : index
      %70 = vector.load %arg11[%c0_34, %c0_35] : memref<128x1xf32, #tpu.memory_space<vmem>>, vector<128x1xf32>
      %71 = arith.extui %42 : vector<128x256xi1> to vector<128x256xi32>
      %72 = arith.sitofp %71 : vector<128x256xi32> to vector<128x256xf32>
      %cst_36 = arith.constant dense<0.000000e+00> : vector<128xf32>
      %73 = vector.multi_reduction <add>, %72, %cst_36 [1] : vector<128x256xf32> to vector<128xf32>
      %74 = vector.shape_cast %73 : vector<128xf32> to vector<128x1xf32>
      %75 = arith.addf %70, %74 : vector<128x1xf32>
      %c0_37 = arith.constant 0 : index
      %c0_38 = arith.constant 0 : index
      %76 = vector.load %arg11[%c0_37, %c0_38] : memref<128x1xf32, #tpu.memory_space<vmem>>, vector<128x1xf32>
      tpu.vector_store %arg11[%c0_37, %c0_38], %75 {strides = array<i32>} : memref<128x1xf32, #tpu.memory_space<vmem>>, vector<128x1xf32>,
    } else {
    }
    %c3_i32 = arith.constant 3 : i32
    %27 = arith.cmpi eq, %arg1, %c3_i32 : i32
    %28 = arith.extui %27 : i1 to i32
    %c0_i32_13 = arith.constant 0 : i32
    %29 = arith.cmpi ne, %28, %c0_i32_13 : i32
    scf.if %29 {
      %c0_14 = arith.constant 0 : index
      %c0_15 = arith.constant 0 : index
      %30 = vector.load %arg8[%c0_14, %c0_15] : memref<128x1xf32, #tpu.memory_space<vmem>>, vector<128x1xf32>
      %c0_16 = arith.constant 0 : index
      %c0_17 = arith.constant 0 : index
      %31 = vector.load %arg10[%c0_16, %c0_17] : memref<128x1xf32, #tpu.memory_space<vmem>>, vector<128x1xf32>
      %c0_18 = arith.constant 0 : index
      %c0_19 = arith.constant 0 : index
      %32 = vector.load %arg11[%c0_18, %c0_19] : memref<128x1xf32, #tpu.memory_space<vmem>>, vector<128x1xf32>
      %33 = arith.divf %31, %32 : vector<128x1xf32>
      %34 = arith.subf %33, %30 : vector<128x1xf32>
      %c0_20 = arith.constant 0 : index
      %c0_21 = arith.constant 0 : index
      %35 = vector.load %arg9[%c0_20, %c0_21] : memref<128x1xf32, #tpu.memory_space<vmem>>, vector<128x1xf32>
      %cst_22 = arith.constant 9.99999996E-13 : f32
      %36 = vector.broadcast %cst_22 : f32 to vector<128x1xf32>
      %37 = arith.addf %35, %36 : vector<128x1xf32>
      %38 = math.log %37 : vector<128x1xf32>
      %39 = arith.subf %34, %38 : vector<128x1xf32>
      %cst_23 = arith.constant -1.000000e+00 : f32
      %40 = vector.broadcast %cst_23 : f32 to vector<128x1xf32>
      %41 = arith.mulf %40, %39 : vector<128x1xf32>
      %c0_24 = arith.constant 0 : index
      %c0_25 = arith.constant 0 : index
      %42 = vector.load %arg6[%c0_24, %c0_25] : memref<128x128xf32, #tpu.memory_space<vmem>>, vector<128x128xf32>
      %cst_26 = arith.constant dense<0xFF800000> : vector<128xf32>
      %43 = vector.multi_reduction <maximumf>, %42, %cst_26 [1] : vector<128x128xf32> to vector<128xf32>
      %44 = vector.shape_cast %43 : vector<128xf32> to vector<128x1xf32>
      %45 = vector.broadcast %44 : vector<128x1xf32> to vector<128x128xf32>
      %46 = arith.subf %42, %45 : vector<128x128xf32>
      %47 = math.exp %46 : vector<128x128xf32>
      %cst_27 = arith.constant dense<0.000000e+00> : vector<128xf32>
      %48 = vector.multi_reduction <add>, %47, %cst_27 [1] : vector<128x128xf32> to vector<128xf32>
      %49 = vector.shape_cast %48 : vector<128xf32> to vector<128x1xf32>
      %50 = math.log %49 : vector<128x1xf32>
      %51 = arith.addf %44, %50 : vector<128x1xf32>
      %52 = vector.broadcast %51 : vector<128x1xf32> to vector<128x128xf32>
      %53 = arith.subf %42, %52 : vector<128x128xf32>
      %54 = tpu.iota {dimensions = array<i32: 1>} : vector<128x128xi32>
      %c0_28 = arith.constant 0 : index
      %c0_29 = arith.constant 0 : index
      %55 = vector.load %arg4[%c0_28, %c0_29] : memref<128x1xi32, #tpu.memory_space<vmem>>, vector<128x1xi32>
      %56 = vector.broadcast %55 : vector<128x1xi32> to vector<128x128xi32>
      %57 = arith.cmpi eq, %54, %56 : vector<128x128xi32>
      %58 = arith.extui %57 : vector<128x128xi1> to vector<128x128xi32>
      %59 = arith.sitofp %58 : vector<128x128xi32> to vector<128x128xf32>
      %60 = arith.mulf %59, %53 : vector<128x128xf32>
      %cst_30 = arith.constant dense<0.000000e+00> : vector<128xf32>
      %61 = vector.multi_reduction <add>, %60, %cst_30 [1] : vector<128x128xf32> to vector<128xf32>
      %62 = vector.shape_cast %61 : vector<128xf32> to vector<128x1xf32>
      %cst_31 = arith.constant 0.000000e+00 : f32
      %63 = vector.broadcast %cst_31 : f32 to vector<128x1xf32>
      %64 = arith.subf %63, %62 : vector<128x1xf32>
      %cst_32 = arith.constant dense<0.000000e+00> : vector<128xf32>
      %65 = vector.multi_reduction <add>, %53, %cst_32 [1] : vector<128x128xf32> to vector<128xf32>
      %66 = vector.shape_cast %65 : vector<128xf32> to vector<128x1xf32>
      %cst_33 = arith.constant 0.000000e+00 : f32
      %67 = vector.broadcast %cst_33 : f32 to vector<128x1xf32>
      %68 = arith.subf %67, %66 : vector<128x1xf32>
      %cst_34 = arith.constant 1.280000e+02 : f32
      %69 = vector.broadcast %cst_34 : f32 to vector<128x1xf32>
      %70 = arith.divf %68, %69 : vector<128x1xf32>
      %cst_35 = arith.constant 0.899999976 : f32
      %71 = vector.broadcast %cst_35 : f32 to vector<128x1xf32>
      %72 = arith.mulf %71, %64 : vector<128x1xf32>
      %cst_36 = arith.constant 1.000000e-01 : f32
      %73 = vector.broadcast %cst_36 : f32 to vector<128x1xf32>
      %74 = arith.mulf %73, %70 : vector<128x1xf32>
      %75 = arith.addf %72, %74 : vector<128x1xf32>
      %cst_37 = arith.constant 5.000000e-02 : f32
      %76 = vector.broadcast %cst_37 : f32 to vector<128x1xf32>
      %77 = arith.mulf %76, %41 : vector<128x1xf32>
      %78 = arith.addf %75, %77 : vector<128x1xf32>
      %c0_38 = arith.constant 0 : index
      %c0_39 = arith.constant 0 : index
      %79 = vector.load %arg7[%c0_38, %c0_39] : memref<128x1xf32, #tpu.memory_space<vmem>>, vector<128x1xf32>
      tpu.vector_store %arg7[%c0_38, %c0_39], %78 {strides = array<i32>} : memref<128x1xf32, #tpu.memory_space<vmem>>, vector<128x1xf32>,
    } else {
    }
    return
  }
  func.func @transform_0(%arg0: i32, %arg1: i32) -> (i32, i32) {
    %c0_i32 = arith.constant 0 : i32
    %c0_i32_0 = arith.constant 0 : i32
    return %arg0, %c0_i32 : i32, i32
  }
  func.func @transform_1(%arg0: i32, %arg1: i32) -> (i32, i32) {
    %c0_i32 = arith.constant 0 : i32
    %c0_i32_0 = arith.constant 0 : i32
    return %arg1, %c0_i32 : i32, i32
  }
  func.func @transform_2(%arg0: i32, %arg1: i32) -> (i32, i32) {
    %c0_i32 = arith.constant 0 : i32
    %c0_i32_0 = arith.constant 0 : i32
    return %arg0, %c0_i32 : i32, i32
  }
  func.func @transform_3(%arg0: i32, %arg1: i32) -> (i32, i32) {
    %c0_i32 = arith.constant 0 : i32
    %c0_i32_0 = arith.constant 0 : i32
    return %c0_i32, %arg1 : i32, i32
  }
  func.func @transform_4(%arg0: i32, %arg1: i32) -> (i32, i32) {
    %c0_i32 = arith.constant 0 : i32
    %c0_i32_0 = arith.constant 0 : i32
    return %arg0, %c0_i32 : i32, i32
  }
  func.func @transform_5(%arg0: i32, %arg1: i32) -> (i32, i32) {
    %c0_i32 = arith.constant 0 : i32
    %c0_i32_0 = arith.constant 0 : i32
    return %arg0, %c0_i32 : i32, i32
  }
}

</mosaic_0001>

<bundles_post_ra>
// kernel: tpu_custom_call.1
= control target key start
LH: loop header
LB: loop body
LE: loop exit
PB: predicated region body
PF: predicated region fallthrough
CT: control target
= control target key end

     0   :  { %s4199_s18 = smov 0   ;;  %s4201_s19 = smov 0   ;;  %s6854_s0 = inlined_call_operand.vmem [shape: bf16[1008,128], index: 0, kind: input, shape index: {}]   ;;  %s6855_s1 = inlined_call_operand.vmem [shape: bf16[1008,128], index: 1, kind: input, shape index: {}]   ;;  %s6856_s2 = inlined_call_operand.vmem [shape: s32[1008,1], index: 2, kind: input, shape index: {}]   ;;  %s6857_s3 = inlined_call_operand.vmem [shape: s32[1,1008], index: 3, kind: input, shape index: {}]   ;;  %s6858_s4 = inlined_call_operand.vmem [shape: f32[8,128], index: 4, kind: input, shape index: {}]   ;;  %s6859_s5 = inlined_call_operand.vmem [shape: f32[8,1], index: 5, kind: output, shape index: {}]  }
   0x1   :  { %s4203_s20 = smov 0  }
   0x2 LB: > { %s3497_s21 = sadd.s32 4294967295, %s4154_s20   ;;  %s24_s22 = sadd.s32 1, %s4150_s19  ;;  %s4154_s20 = sphi %s4203_s20, %s15_s20   ;;  %s4150_s19 = sphi %s4201_s19, %s7769_s19   ;;  %s4146_s18 = sphi %s4199_s18, %s7768_s18  }
   0x3   : > { %p25_p0 = scmp.ge.s32.totalorder %s24_s22, 4  ;;  %p3503_p1 = scmp.ge.s32.totalorder %s4154_s20, 1 }
   0x4   : > { %p271_p2 = scmp.lt.s32.totalorder %s4154_s20, 5 }
   0x5   : > { %s7771_s22 = smov (%p25_p0, %s24_s22), 0 }
   0x6   : > { %p272_p3 = pnand %p3503_p1, %p271_p2 }
   0x8   : > { %275 = sbr.rel (%p272_p3) target bundleno = 1892 (0x764), region = 40 }
   0xf   : > { %s3504_s23 = sshll.u32 %s4146_s18, 5  ;;  %s3506_s24 = sshll.u32 %s4146_s18, 1 }
  0x10   : > { %p346_p4 = scmp.lt.s32.totalorder %s3504_s23, 125  ;;  %p370_p5 = scmp.lt.s32.totalorder %s3506_s24, 7 }
  0x11   : > { %p3507_p6 = scmp.ne.s32.totalorder %s4146_s18, 0 }
  0x12   : > { %s7773_s23 = smov (!%p346_p4, %s3504_s23), 125  ;;  %s7775_s24 = smov (!%p370_p5, %s3506_s24), 7 }
  0x13   : > { %s3505_s25 = sshll.u32 %s7773_s23, 2  ;;  %s372_s6 = scalar_lea.vmem %s6857_s3, %s7775_s24  ;;  %vm392_vm0 = vcmask (!%p3507_p6), 7168   ;;  %v4160_v0 = vmov (!%p3507_p6), -1e+30   ;;  %v4161_v1 = vmov (!%p3507_p6), 0.0  }
  0x14   : > { %s4227_s28 = scalar_lea.vmem %s6855_s1, %s3505_s25  ;;  %391 = sbr.rel (%p3507_p6) target bundleno = 52 (0x34), region = 44  ;;  %393 = vst.msk [vmem:[#allocation2] sm:$0xff] (!%p3507_p6), %vm392_vm0, %v4160_v0  ;;  %394 = vst.msk [vmem:[#allocation2 + $0x8] sm:$0xff] (!%p3507_p6), %vm392_vm0, %v4160_v0 }
  0x15   : > { %395 = vst.msk [vmem:[#allocation2 + $0x10] sm:$0xff] (!%p3507_p6), %vm392_vm0, %v4160_v0  ;;  %396 = vst.msk [vmem:[#allocation2 + $0x18] sm:$0xff] (!%p3507_p6), %vm392_vm0, %v4160_v0 }
  0x16   : > { %397 = vst.msk [vmem:[#allocation2 + $0x20] sm:$0xff] (!%p3507_p6), %vm392_vm0, %v4160_v0  ;;  %398 = vst.msk [vmem:[#allocation2 + $0x28] sm:$0xff] (!%p3507_p6), %vm392_vm0, %v4160_v0 }
  0x17   : > { %399 = vst.msk [vmem:[#allocation2 + $0x30] sm:$0xff] (!%p3507_p6), %vm392_vm0, %v4160_v0  ;;  %400 = vst.msk [vmem:[#allocation2 + $0x38] sm:$0xff] (!%p3507_p6), %vm392_vm0, %v4160_v0 }
  0x18   : > { %401 = vst.msk [vmem:[#allocation2 + $0x40] sm:$0xff] (!%p3507_p6), %vm392_vm0, %v4160_v0  ;;  %402 = vst.msk [vmem:[#allocation2 + $0x48] sm:$0xff] (!%p3507_p6), %vm392_vm0, %v4160_v0 }
  0x19   : > { %403 = vst.msk [vmem:[#allocation2 + $0x50] sm:$0xff] (!%p3507_p6), %vm392_vm0, %v4160_v0  ;;  %404 = vst.msk [vmem:[#allocation2 + $0x58] sm:$0xff] (!%p3507_p6), %vm392_vm0, %v4160_v0 }
  0x1a   : > { %405 = vst.msk [vmem:[#allocation2 + $0x60] sm:$0xff] (!%p3507_p6), %vm392_vm0, %v4160_v0  ;;  %406 = vst.msk [vmem:[#allocation2 + $0x68] sm:$0xff] (!%p3507_p6), %vm392_vm0, %v4160_v0 }
  0x1b   : > { %407 = vst.msk [vmem:[#allocation2 + $0x70] sm:$0xff] %vm392_vm0, %v4160_v0  ;;  %408 = vst.msk [vmem:[#allocation2 + $0x78] sm:$0xff] %vm392_vm0, %v4160_v0 }
  0x1c   : > { %409 = vst.msk [vmem:[#allocation3] sm:$0xff] %vm392_vm0, %v4161_v1  ;;  %410 = vst.msk [vmem:[#allocation3 + $0x8] sm:$0xff] %vm392_vm0, %v4161_v1 }
  0x1d   : > { %411 = vst.msk [vmem:[#allocation3 + $0x10] sm:$0xff] %vm392_vm0, %v4161_v1  ;;  %412 = vst.msk [vmem:[#allocation3 + $0x18] sm:$0xff] %vm392_vm0, %v4161_v1 }
  0x1e   : > { %413 = vst.msk [vmem:[#allocation3 + $0x20] sm:$0xff] %vm392_vm0, %v4161_v1  ;;  %414 = vst.msk [vmem:[#allocation3 + $0x28] sm:$0xff] %vm392_vm0, %v4161_v1 }
  0x1f   : > { %415 = vst.msk [vmem:[#allocation3 + $0x30] sm:$0xff] %vm392_vm0, %v4161_v1  ;;  %416 = vst.msk [vmem:[#allocation3 + $0x38] sm:$0xff] %vm392_vm0, %v4161_v1 }
  0x20   : > { %417 = vst.msk [vmem:[#allocation3 + $0x40] sm:$0xff] %vm392_vm0, %v4161_v1  ;;  %418 = vst.msk [vmem:[#allocation3 + $0x48] sm:$0xff] %vm392_vm0, %v4161_v1 }
  0x21   : > { %419 = vst.msk [vmem:[#allocation3 + $0x50] sm:$0xff] %vm392_vm0, %v4161_v1  ;;  %420 = vst.msk [vmem:[#allocation3 + $0x58] sm:$0xff] %vm392_vm0, %v4161_v1 }
  0x22   : > { %421 = vst.msk [vmem:[#allocation3 + $0x60] sm:$0xff] %vm392_vm0, %v4161_v1  ;;  %422 = vst.msk [vmem:[#allocation3 + $0x68] sm:$0xff] %vm392_vm0, %v4161_v1 }
  0x23   : > { %423 = vst.msk [vmem:[#allocation3 + $0x70] sm:$0xff] %vm392_vm0, %v4161_v1  ;;  %424 = vst.msk [vmem:[#allocation3 + $0x78] sm:$0xff] %vm392_vm0, %v4161_v1 }
  0x24   : > { %425 = vst.msk [vmem:[#allocation4] sm:$0xff] %vm392_vm0, %v4161_v1  ;;  %426 = vst.msk [vmem:[#allocation4 + $0x8] sm:$0xff] %vm392_vm0, %v4161_v1 }
  0x25   : > { %427 = vst.msk [vmem:[#allocation4 + $0x10] sm:$0xff] %vm392_vm0, %v4161_v1  ;;  %428 = vst.msk [vmem:[#allocation4 + $0x18] sm:$0xff] %vm392_vm0, %v4161_v1 }
  0x26   : > { %429 = vst.msk [vmem:[#allocation4 + $0x20] sm:$0xff] %vm392_vm0, %v4161_v1  ;;  %430 = vst.msk [vmem:[#allocation4 + $0x28] sm:$0xff] %vm392_vm0, %v4161_v1 }
  0x27   : > { %431 = vst.msk [vmem:[#allocation4 + $0x30] sm:$0xff] %vm392_vm0, %v4161_v1  ;;  %432 = vst.msk [vmem:[#allocation4 + $0x38] sm:$0xff] %vm392_vm0, %v4161_v1 }
  0x28   : > { %433 = vst.msk [vmem:[#allocation4 + $0x40] sm:$0xff] %vm392_vm0, %v4161_v1  ;;  %434 = vst.msk [vmem:[#allocation4 + $0x48] sm:$0xff] %vm392_vm0, %v4161_v1 }
  0x29   : > { %435 = vst.msk [vmem:[#allocation4 + $0x50] sm:$0xff] %vm392_vm0, %v4161_v1  ;;  %436 = vst.msk [vmem:[#allocation4 + $0x58] sm:$0xff] %vm392_vm0, %v4161_v1 }
  0x2a   : > { %437 = vst.msk [vmem:[#allocation4 + $0x60] sm:$0xff] %vm392_vm0, %v4161_v1  ;;  %438 = vst.msk [vmem:[#allocation4 + $0x68] sm:$0xff] %vm392_vm0, %v4161_v1 }
  0x2b   : > { %439 = vst.msk [vmem:[#allocation4 + $0x70] sm:$0xff] %vm392_vm0, %v4161_v1  ;;  %440 = vst.msk [vmem:[#allocation4 + $0x78] sm:$0xff] %vm392_vm0, %v4161_v1 }
  0x2c   : > { %441 = vst.msk [vmem:[#allocation5] sm:$0xff] %vm392_vm0, %v4161_v1  ;;  %442 = vst.msk [vmem:[#allocation5 + $0x8] sm:$0xff] %vm392_vm0, %v4161_v1 }
  0x2d   : > { %443 = vst.msk [vmem:[#allocation5 + $0x10] sm:$0xff] %vm392_vm0, %v4161_v1  ;;  %444 = vst.msk [vmem:[#allocation5 + $0x18] sm:$0xff] %vm392_vm0, %v4161_v1 }
  0x2e   : > { %445 = vst.msk [vmem:[#allocation5 + $0x20] sm:$0xff] %vm392_vm0, %v4161_v1  ;;  %446 = vst.msk [vmem:[#allocation5 + $0x28] sm:$0xff] %vm392_vm0, %v4161_v1 }
  0x2f   : > { %447 = vst.msk [vmem:[#allocation5 + $0x30] sm:$0xff] %vm392_vm0, %v4161_v1  ;;  %448 = vst.msk [vmem:[#allocation5 + $0x38] sm:$0xff] %vm392_vm0, %v4161_v1 }
  0x30   : > { %449 = vst.msk [vmem:[#allocation5 + $0x40] sm:$0xff] %vm392_vm0, %v4161_v1  ;;  %450 = vst.msk [vmem:[#allocation5 + $0x48] sm:$0xff] %vm392_vm0, %v4161_v1 }
  0x31   : > { %451 = vst.msk [vmem:[#allocation5 + $0x50] sm:$0xff] %vm392_vm0, %v4161_v1  ;;  %452 = vst.msk [vmem:[#allocation5 + $0x58] sm:$0xff] %vm392_vm0, %v4161_v1 }
  0x32   : > { %453 = vst.msk [vmem:[#allocation5 + $0x60] sm:$0xff] %vm392_vm0, %v4161_v1  ;;  %454 = vst.msk [vmem:[#allocation5 + $0x68] sm:$0xff] %vm392_vm0, %v4161_v1 }
  0x33   : > { %455 = vst.msk [vmem:[#allocation5 + $0x70] sm:$0xff] %vm392_vm0, %v4161_v1  ;;  %456 = vst.msk [vmem:[#allocation5 + $0x78] sm:$0xff] %vm392_vm0, %v4161_v1 }
  0x34 PF: > { %v3766_v2 = vld [vmem:[%s4227_s28 + $0x40] sm:$0xff]   ;;  %v4162_v4 = vmov 0   ;;  %v3768_v5 = vld [vmem:[%s4227_s28 + $0x48] sm:$0xff]   ;;  %v3770_v7 = vld [vmem:[%s4227_s28 + $0x50] sm:$0xff]   ;;  %v6860_v43 = vlaneseq  ;;  %s4461_s24 = sshll.u32 %s4146_s18, 8 }
  0x35   : > { %v3767_v3 = vld [vmem:[%s4227_s28] sm:$0xff]   ;;  %3765 = vset.pattern.permute.xlu1 %v4162_v4  ;;  %3764 = vset.pattern.permute.xlu0 %v4162_v4  ;;  %v3769_v6 = vld [vmem:[%s4227_s28 + $0x8] sm:$0xff]   ;;  %v3771_v8 = vld [vmem:[%s4227_s28 + $0x10] sm:$0xff]   ;;  %p872_p7 = scmp.lt.s32.totalorder %s4461_s24, 8 }
  0x36   : > { %3651 = vmatprep.subr.bf16.mxu0 %v3766_v2  ;;  %3683 = vmatprep.subr.bf16.mxu1 %v3766_v2  ;;  %v3772_v9 = vld [vmem:[%s4227_s28 + $0x58] sm:$0xff]   ;;  %v4308_v10 = vld [vmem:[%s6854_s0] sm:$0xff]   ;;  %v764_v14 = vld [vmem:[%s6856_s2 + $0x10] sm:$0xff]  ;;  %v4395_v44 = vshrl.u32 %v6860_v43, 7 }
  0x37   : > { %3652 = vmatpush3.bf16.xpose.msra.mxu0 %v3767_v3  ;;  %3691 = vmatpush3.bf16.xpose.msra.mxu1 %v3767_v3  ;;  %v4313_v11 = vld [vmem:[%s6854_s0 + $0x20] sm:$0xff]   ;;  %v3773_v12 = vld [vmem:[%s4227_s28 + $0x18] sm:$0xff]   ;;  %v763_v17 = vld [vmem:[%s6856_s2 + $0x8] sm:$0xff] }
  0x38   : > { %3653 = vmatprep.subr.bf16.mxu0 %v3768_v5  ;;  %3684 = vmatprep.subr.bf16.mxu1 %v3768_v5  ;;  %v3774_v13 = vld [vmem:[%s4227_s28 + $0x60] sm:$0xff]   ;;  %v765_v16 = vld [vmem:[%s6856_s2 + $0x18] sm:$0xff]  ;;  %v767_v18 = vld [vmem:[%s6856_s2 + $0x28] sm:$0xff]  ;;  %v829_v45 = vsub.s32 0, %v4395_v44  ;;  %v833_v46 = vsub.s32 1, %v4395_v44 }
  0x39   : > { %3667 = vmatprep.mubr.bf16.mxu0 %v4308_v10  ;;  %3675 = vmatprep.mubr.bf16.mxu1 %v4313_v11  ;;  %v762_v15 = vld [vmem:[%s6856_s2] sm:$0xff]  ;;  %v3776_v21 = vld [vmem:[%s4227_s28 + $0x68] sm:$0xff]   ;;  %v769_v22 = vld [vmem:[%s6856_s2 + $0x38] sm:$0xff] }
  0x3a   : > { %786 = vperm.xlu1 %3765, %v764_v14   ;;  %780 = vperm.xlu0 %3764, %v762_v15   ;;  %v766_v19 = vld [vmem:[%s6856_s2 + $0x20] sm:$0xff]  ;;  %v768_v23 = vld [vmem:[%s6856_s2 + $0x30] sm:$0xff]  ;;  %v771_v24 = vld [vmem:[%s6856_s2 + $0x48] sm:$0xff] }
  0x3b   : > { %v3775_v20 = vld [vmem:[%s4227_s28 + $0x20] sm:$0xff]   ;;  %v3777_v26 = vld [vmem:[%s4227_s28 + $0x28] sm:$0xff]   ;;  %v3778_v27 = vld [vmem:[%s4227_s28 + $0x70] sm:$0xff]  }
  0x3c   : > { %v770_v25 = vld [vmem:[%s6856_s2 + $0x40] sm:$0xff]  ;;  %v773_v28 = vld [vmem:[%s6856_s2 + $0x58] sm:$0xff]  ;;  %v772_v29 = vld [vmem:[%s6856_s2 + $0x50] sm:$0xff] }
  0x3d   : > { %v775_v30 = vld [vmem:[%s6856_s2 + $0x68] sm:$0xff]  ;;  %v774_v31 = vld [vmem:[%s6856_s2 + $0x60] sm:$0xff]  ;;  %v3779_v32 = vld [vmem:[%s4227_s28 + $0x30] sm:$0xff]  }
  0x3e   : > { %789 = vperm.xlu1 %3765, %v765_v16   ;;  %783 = vperm.xlu0 %3764, %v763_v17   ;;  %v3780_v33 = vld [vmem:[%s4227_s28 + $0x78] sm:$0xff]   ;;  %v776_v35 = vld [vmem:[%s6856_s2 + $0x70] sm:$0xff]  ;;  %v3784_v37 = vld [vmem:[%s6854_s0 + $0x8] sm:$0xff]  }
  0x3f   : > { %3654 = vmatpush3.bf16.xpose.msra.mxu0 %v3769_v6  ;;  %3692 = vmatpush3.bf16.xpose.msra.mxu1 %v3769_v6  ;;  %v777_v34 = vld [vmem:[%s6856_s2 + $0x78] sm:$0xff]  ;;  %v3785_v38 = vld [vmem:[%s6854_s0 + $0x28] sm:$0xff]   ;;  %v3786_v39 = vld [vmem:[%s6854_s0 + $0x10] sm:$0xff]  }
  0x40   : > { %3655 = vmatprep.subr.bf16.mxu0 %v3770_v7  ;;  %3685 = vmatprep.subr.bf16.mxu1 %v3770_v7  ;;  %v3781_v36 = vld [vmem:[%s4227_s28 + $0x38] sm:$0xff]   ;;  %v3787_v40 = vld [vmem:[%s6854_s0 + $0x30] sm:$0xff]   ;;  %v778_v47 = vld [vmem:[%s372_s6] sm:$0x3]  ;;  %s873_s6 = sadd.s32 256, %s4461_s24 }
  0x41   : > { %v3788_v41 = vld [vmem:[%s6854_s0 + $0x18] sm:$0xff]   ;;  %v4404_v48 = vrot.slane %v778_v47, %v829_v45  ;;  %v4406_v49 = vrot.slane %v778_v47, %v833_v46  ;;  %p874_p8 = scmp.gt.s32.totalorder %s873_s6, 0  ;;  %p877_p11 = scmp.gt.s32.totalorder %s873_s6, 1008 }
  0x42   : > { %795 = vperm.xlu1 %3765, %v767_v18   ;;  %792 = vperm.xlu0 %3764, %v766_v19   ;;  %v3789_v42 = vld [vmem:[%s6854_s0 + $0x38] sm:$0xff]  }
  0x43   : > { %p875_p9 = pnand %p874_p8, %p872_p7 }
  0x45   : > { %p876_p10 = pneg %p875_p9 }
  0x46   : > { %801 = vperm.xlu1 %3765, %v769_v22   ;;  %798 = vperm.xlu0 %3764, %v768_v23  }
  0x47   : > { %3656 = vmatpush3.bf16.xpose.msra.mxu0 %v3771_v8  ;;  %3693 = vmatpush3.bf16.xpose.msra.mxu1 %v3771_v8  ;;  %p4489_p12 = por %p877_p11, %p876_p10 }
  0x48   : > { %3657 = vmatprep.subr.bf16.mxu0 %v3772_v9  ;;  %3686 = vmatprep.subr.bf16.mxu1 %v3772_v9 }
  0x4a   : > { %807 = vperm.xlu1 %3765, %v771_v24   ;;  %804 = vperm.xlu0 %3764, %v770_v25  }
  0x4e   : > { %813 = vperm.xlu1 %3765, %v773_v28   ;;  %810 = vperm.xlu0 %3764, %v772_v29  }
  0x4f   : > { %3658 = vmatpush3.bf16.xpose.msra.mxu0 %v3773_v12  ;;  %3694 = vmatpush3.bf16.xpose.msra.mxu1 %v3773_v12 }
  0x50   : > { %3659 = vmatprep.subr.bf16.mxu0 %v3774_v13  ;;  %3687 = vmatprep.subr.bf16.mxu1 %v3774_v13 }
  0x52   : > { %819 = vperm.xlu1 %3765, %v775_v30   ;;  %816 = vperm.xlu0 %3764, %v774_v31  }
  0x56   : > { %825 = vperm.xlu1 %3765, %v777_v34   ;;  %822 = vperm.xlu0 %3764, %v776_v35  }
  0x57   : > { %3660 = vmatpush3.bf16.xpose.msra.mxu0 %v3775_v20  ;;  %3695 = vmatpush3.bf16.xpose.msra.mxu1 %v3775_v20 }
  0x58   : > { %3661 = vmatprep.subr.bf16.mxu0 %v3776_v21  ;;  %3688 = vmatprep.subr.bf16.mxu1 %v3776_v21 }
  0x5f   : > { %3662 = vmatpush3.bf16.xpose.msra.mxu0 %v3777_v26  ;;  %3696 = vmatpush3.bf16.xpose.msra.mxu1 %v3777_v26 }
  0x60   : > { %3663 = vmatprep.subr.bf16.mxu0 %v3778_v27  ;;  %3689 = vmatprep.subr.bf16.mxu1 %v3778_v27 }
  0x67   : > { %3664 = vmatpush3.bf16.xpose.msra.mxu0 %v3779_v32  ;;  %3697 = vmatpush3.bf16.xpose.msra.mxu1 %v3779_v32 }
  0x68   : > { %3665 = vmatprep.subr.bf16.mxu0 %v3780_v33  ;;  %3690 = vmatprep.subr.bf16.mxu1 %v3780_v33 }
  0x6f   : > { %3666 = vmatpush3.bf16.xpose.msra.mxu0 %v3781_v36  ;;  %3698 = vmatpush3.bf16.xpose.msra.mxu1 %v3781_v36 }
  0x76   : > { %3668 = vmatmul.mubr.bf16.vlgmr.msra.gmra.mrb[0].mxu0 %v4308_v10  ;;  %3676 = vmatmul.mubr.bf16.vlgmr.msra.gmra.mrb[0].mxu1 %v4313_v11 }
  0x77   : > { %3669 = vmatprep.mubr.bf16.mxu0 %v3784_v37  ;;  %3677 = vmatprep.mubr.bf16.mxu1 %v3785_v38 }
  0x7e   : > { %3670 = vmatmul.mubr.bf16.gmra.mrb[4].mxu0 %v3784_v37  ;;  %3678 = vmatmul.mubr.bf16.gmra.mrb[4].mxu1 %v3785_v38 }
  0x7f   : > { %3671 = vmatprep.mubr.bf16.mxu0 %v3786_v39  ;;  %3679 = vmatprep.mubr.bf16.mxu1 %v3787_v40 }
  0x86   : > { %3672 = vmatmul.mubr.bf16.gmra.mrb[8].mxu0 %v3786_v39  ;;  %3680 = vmatmul.mubr.bf16.gmra.mrb[8].mxu1 %v3787_v40 }
  0x87   : > { %3673 = vmatprep.mubr.bf16.mxu0 %v3788_v41  ;;  %3681 = vmatprep.mubr.bf16.mxu1 %v3789_v42 }
  0x8e   : > { %3674 = vmatmul.mubr.bf16.gmra.mrb[12].mxu0 %v3788_v41  ;;  %3682 = vmatmul.mubr.bf16.gmra.mrb[12].mxu1 %v3789_v42 }
  0xb9   : > { %v4408_v50 = vpop.permute.xlu1 %786  ;;  %v4410_v51 = vpop.permute.xlu0 %780 }
  0xba   : > { %7113 = vst [vmem:[#allocation7_spill] sm:$0xff] %v4408_v50  ;;  %7114 = vst [vmem:[#allocation8_spill] sm:$0xff] %v4410_v51  ;;  %vm6909_vm1 = vcmp.eq.s32.totalorder %v4408_v50, %v4404_v48  ;;  %vm6912_vm2 = vcmp.eq.s32.totalorder %v4408_v50, %v4406_v49  ;;  %vm6896_vm3 = vcmp.eq.s32.totalorder %v4410_v51, %v4404_v48 }
  0xbb   : > { %vm6894_vm4 = vcmp.eq.s32.totalorder %v4410_v51, %v4406_v49 }
  0xbd   : > { %v4420_v52 = vpop.permute.xlu1 %789  ;;  %v4422_v53 = vpop.permute.xlu0 %783 }
  0xbe   : > { %7115 = vst [vmem:[#allocation9_spill] sm:$0xff] %v4420_v52  ;;  %7116 = vst [vmem:[#allocation10_spill] sm:$0xff] %v4422_v53 }
  0xc1   : > { %v4432_v54 = vpop.permute.xlu1 %795  ;;  %v4434_v55 = vpop.permute.xlu0 %792 }
  0xc2   : > { %7117 = vst [vmem:[#allocation11_spill] sm:$0xff] %v4432_v54  ;;  %7118 = vst [vmem:[#allocation12_spill] sm:$0xff] %v4434_v55  ;;  %vm6920_vm11 = vcmp.eq.s32.totalorder %v4434_v55, %v4404_v48 }
  0xc5   : > { %v4444_v56 = vpop.permute.xlu1 %801  ;;  %v4446_v57 = vpop.permute.xlu0 %798 }
  0xc6   : > { %7119 = vst [vmem:[#allocation13_spill] sm:$0xff] %v4444_v56  ;;  %7120 = vst [vmem:[#allocation14_spill] sm:$0xff] %v4446_v57 }
  0xc9   : > { %v4456_v58 = vpop.permute.xlu1 %807  ;;  %v4458_v59 = vpop.permute.xlu0 %804 }
  0xca   : > { %7121 = vst [vmem:[#allocation15_spill] sm:$0xff] %v4456_v58  ;;  %7122 = vst [vmem:[#allocation16_spill] sm:$0xff] %v4458_v59 }
  0xcd   : > { %v4473_v60 = vpop.permute.xlu1 %813  ;;  %v4475_v61 = vpop.permute.xlu0 %810 }
  0xce   : > { %7123 = vst [vmem:[#allocation17_spill] sm:$0xff] %v4473_v60  ;;  %7124 = vst [vmem:[#allocation18_spill] sm:$0xff] %v4475_v61 }
  0xd1   : > { %v4485_v62 = vpop.permute.xlu1 %819  ;;  %v4487_v63 = vpop.permute.xlu0 %816 }
  0xd2   : > { %7125 = vst [vmem:[#allocation19_spill] sm:$0xff] %v4485_v62  ;;  %7126 = vst [vmem:[#allocation20_spill] sm:$0xff] %v4487_v63 }
  0xd5   : > { %v4501_v0 = vpop.permute.xlu1 %825  ;;  %v4503_v1 = vpop.permute.xlu0 %822 }
  0xd6   : > { %7128 = vst [vmem:[#allocation21_spill] sm:$0xff] %v4501_v0  ;;  %7129 = vst [vmem:[#allocation22_spill] sm:$0xff] %v4503_v1 }
 0x149   : > { %v4513_v2 = vpop.f32.mrb[0].mxu0  ;;  %v4515_v3 = vpop.f32.mrb[0].mxu1 }
 0x14a   : > { %7130 = vst [vmem:[#allocation23_spill] sm:$0xff] %v4513_v2  ;;  %7131 = vst [vmem:[#allocation24_spill] sm:$0xff] %v4515_v3  ;;  %v4517_v4 = vpop.f32.mrb[1].mxu0  ;;  %v4519_v5 = vpop.f32.mrb[1].mxu1 }
 0x14b   : > { %7132 = vst [vmem:[#allocation25_spill] sm:$0xff] %v4517_v4  ;;  %7133 = vst [vmem:[#allocation26_spill] sm:$0xff] %v4519_v5  ;;  %v4521_v6 = vpop.f32.mrb[2].mxu0  ;;  %v4523_v7 = vpop.f32.mrb[2].mxu1 }
 0x14c   : > { %7134 = vst [vmem:[#allocation27_spill] sm:$0xff] %v4521_v6  ;;  %7135 = vst [vmem:[#allocation28_spill] sm:$0xff] %v4523_v7  ;;  %v4525_v8 = vpop.f32.mrb[3].mxu0  ;;  %v4527_v9 = vpop.f32.mrb[3].mxu1 }
 0x14d   : > { %7136 = vst [vmem:[#allocation29_spill] sm:$0xff] %v4525_v8  ;;  %7137 = vst [vmem:[#allocation30_spill] sm:$0xff] %v4527_v9 }
 0x151   : > { %v4529_v10 = vpop.f32.mrb[4].mxu0  ;;  %v4531_v11 = vpop.f32.mrb[4].mxu1 }
 0x152   : > { %7138 = vst [vmem:[#allocation31_spill] sm:$0xff] %v4529_v10  ;;  %7139 = vst [vmem:[#allocation32_spill] sm:$0xff] %v4531_v11  ;;  %v4533_v12 = vpop.f32.mrb[5].mxu0  ;;  %v4535_v13 = vpop.f32.mrb[5].mxu1 }
 0x153   : > { %7140 = vst [vmem:[#allocation33_spill] sm:$0xff] %v4533_v12  ;;  %7141 = vst [vmem:[#allocation34_spill] sm:$0xff] %v4535_v13  ;;  %v4537_v14 = vpop.f32.mrb[6].mxu0  ;;  %v4539_v15 = vpop.f32.mrb[6].mxu1 }
 0x154   : > { %7142 = vst [vmem:[#allocation35_spill] sm:$0xff] %v4537_v14  ;;  %7143 = vst [vmem:[#allocation36_spill] sm:$0xff] %v4539_v15  ;;  %v4541_v16 = vpop.f32.mrb[7].mxu0  ;;  %v4543_v17 = vpop.f32.mrb[7].mxu1 }
 0x155   : > { %7144 = vst [vmem:[#allocation37_spill] sm:$0xff] %v4541_v16  ;;  %7145 = vst [vmem:[#allocation38_spill] sm:$0xff] %v4543_v17 }
 0x159   : > { %v4545_v18 = vpop.f32.mrb[8].mxu0  ;;  %v4547_v19 = vpop.f32.mrb[8].mxu1 }
 0x15a   : > { %7146 = vst [vmem:[#allocation39_spill] sm:$0xff] %v4545_v18  ;;  %7147 = vst [vmem:[#allocation40_spill] sm:$0xff] %v4547_v19  ;;  %v4549_v20 = vpop.f32.mrb[9].mxu0  ;;  %v4551_v21 = vpop.f32.mrb[9].mxu1 }
 0x15b   : > { %7148 = vst [vmem:[#allocation41_spill] sm:$0xff] %v4549_v20  ;;  %7149 = vst [vmem:[#allocation42_spill] sm:$0xff] %v4551_v21  ;;  %v4553_v22 = vpop.f32.mrb[10].mxu0  ;;  %v4555_v23 = vpop.f32.mrb[10].mxu1 }
 0x15c   : > { %7150 = vst [vmem:[#allocation43_spill] sm:$0xff] %v4553_v22  ;;  %7151 = vst [vmem:[#allocation44_spill] sm:$0xff] %v4555_v23  ;;  %v4557_v24 = vpop.f32.mrb[11].mxu0  ;;  %v4559_v25 = vpop.f32.mrb[11].mxu1 }
 0x15d   : > { %7152 = vst [vmem:[#allocation45_spill] sm:$0xff] %v4557_v24  ;;  %7153 = vst [vmem:[#allocation46_spill] sm:$0xff] %v4559_v25 }
 0x15f   : > { %881 = sbr.rel (!%p4489_p12) target bundleno = 855 (0x357), region = 48 }
 0x161   : > { %v4561_v26 = vpop.f32.mrb[12].mxu0  ;;  %v4563_v27 = vpop.f32.mrb[12].mxu1 }
 0x162   : > { %7154 = vst [vmem:[#allocation47_spill] sm:$0xff] %v4561_v26  ;;  %7155 = vst [vmem:[#allocation48_spill] sm:$0xff] %v4563_v27  ;;  %v4565_v28 = vpop.f32.mrb[13].mxu0  ;;  %v4567_v29 = vpop.f32.mrb[13].mxu1 }
 0x163   : > { %7156 = vst [vmem:[#allocation49_spill] sm:$0xff] %v4565_v28  ;;  %7157 = vst [vmem:[#allocation50_spill] sm:$0xff] %v4567_v29  ;;  %v4569_v30 = vpop.f32.mrb[14].mxu0  ;;  %v4571_v31 = vpop.f32.mrb[14].mxu1 }
 0x164   : > { %7158 = vst [vmem:[#allocation51_spill] sm:$0xff] %v4569_v30  ;;  %v4573_v32 = vpop.f32.mrb[15].mxu0  ;;  %v4575_v33 = vpop.f32.mrb[15].mxu1 }
 0x165   : > { %7159 = vst [vmem:[#allocation52_spill] sm:$0xff] %v4573_v32  ;;  %7160 = vst [vmem:[#allocation53_spill] sm:$0xff] %v4575_v33 }
 0x166   : > { %v917_v34 = vand.u32 127, %v6860_v43  ;;  %v919_v35 = vstv %s4461_s24  ;;  %v7211_v60 = vmov 0 }
 0x168   : > { %v918_v36 = vadd.s32 128, %v917_v34  ;;  %v4581_v37 = vadd.s32 %v919_v35, %v917_v34 }
 0x16a   : > { %v4583_v38 = vadd.s32 %v919_v35, %v918_v36  ;;  %vm6913_vm6 = vcmp.lt.s32.totalorder %v4581_v37, 1008  ;;  %vm924_vm14 = vcmp.ne.s32.totalorder %v4395_v44, %v4581_v37 }
 0x16b   : > { %v4589_v39 = vsel %vm6913_vm6, %v4529_v10, -1e+30  ;;  %v4594_v40 = vsel %vm6913_vm6, %v4513_v2, -1e+30  ;;  %v4600_v41 = vsel %vm6913_vm6, %v4537_v14, -1e+30  ;;  %vm4710_vm7 = vmand %vm6913_vm6, %vm924_vm14 }
 0x16c   : > { %7161 = vst [vmem:[#allocation54_spill] sm:$0xff] %v4589_v39  ;;  %7162 = vst [vmem:[#allocation55_spill] sm:$0xff] %v4594_v40  ;;  %vm6926_vm5 = vcmp.lt.s32.totalorder %v4583_v38, 1008  ;;  %v4605_v42 = vsel %vm6913_vm6, %v4521_v6, -1e+30  ;;  %vm925_vm13 = vcmp.ne.s32.totalorder %v4395_v44, %v4583_v38 }
 0x16d   : > { %7163 = vst [vmem:[#allocation56_spill] sm:$0xff] %v4600_v41  ;;  %7164 = vst [vmem:[#allocation57_spill] sm:$0xff] %v4605_v42  ;;  %v4610_v45 = vsel %vm6926_vm5, %v4533_v12, -1e+30  ;;  %v4615_v46 = vsel %vm6926_vm5, %v4517_v4, -1e+30 }
 0x16e   : > { %7165 = vst [vmem:[#allocation58_spill] sm:$0xff] %v4610_v45  ;;  %7166 = vst [vmem:[#allocation59_spill] sm:$0xff] %v4615_v46  ;;  %v4620_v47 = vsel %vm6926_vm5, %v4541_v16, -1e+30  ;;  %v1058_v34 = vmax.f32 %v4589_v39, %v4610_v45  ;;  %v1052_v35 = vmax.f32 %v4594_v40, %v4615_v46  ;;  %v4629_v36 = vsel %vm6926_vm5, %v4525_v8, -1e+30 }
 0x16f   : > { %7167 = vst [vmem:[#allocation60_spill] sm:$0xff] %v4620_v47  ;;  %7168 = vst [vmem:[#allocation61_spill] sm:$0xff] %v4629_v36  ;;  %v1061_v43 = vmax.f32 %v4600_v41, %v4620_v47  ;;  %v1055_v0 = vmax.f32 %v4605_v42, %v4629_v36  ;;  %v4638_v45 = vsel %vm6913_vm6, %v4553_v22, -1e+30  ;;  %v4643_v39 = vsel %vm6926_vm5, %v4557_v24, -1e+30 }
 0x170   : > { %1059 = vmax.xlane.f32.xlu1 %v1058_v34  ;;  %1053 = vmax.xlane.f32.xlu0 %v1052_v35  ;;  %7169 = vst [vmem:[#allocation62_spill] sm:$0xff] %v4638_v45  ;;  %7170 = vst [vmem:[#allocation63_spill] sm:$0xff] %v4643_v39  ;;  %v4648_v34 = vsel %vm6913_vm6, %v4545_v18, -1e+30  ;;  %v4653_v35 = vsel %vm6926_vm5, %v4549_v20, -1e+30  ;;  %v1067_v47 = vmax.f32 %v4638_v45, %v4643_v39 }
 0x171   : > { %7171 = vst [vmem:[#allocation64_spill] sm:$0xff] %v4648_v34  ;;  %7172 = vst [vmem:[#allocation65_spill] sm:$0xff] %v4653_v35  ;;  %v4660_v41 = vsel %vm6913_vm6, %v4569_v30, -1e+30  ;;  %v1064_v36 = vmax.f32 %v4648_v34, %v4653_v35  ;;  %v4667_v42 = vsel %vm6926_vm5, %v4573_v32, -1e+30 }
 0x172   : > { %7173 = vst [vmem:[#allocation66_spill] sm:$0xff] %v4660_v41  ;;  %7174 = vst [vmem:[#allocation67_spill] sm:$0xff] %v4667_v42  ;;  %v885_v39 = vadd.s32 16, %v4395_v44  ;;  %v1073_v45 = vmax.f32 %v4660_v41, %v4667_v42  ;;  %v4685_v35 = vsel %vm6913_vm6, %v4523_v7, -1e+30  ;;  %v7181_v42 = vmov 0 }
 0x173   : > { %7177 = vst [vmem:[#allocation70_spill] sm:$0xff] %v4685_v35  ;;  %v4694_v46 = vsel %vm6926_vm5, %v4527_v9, -1e+30  ;;  %v7182_v42 = vsel %vm4710_vm7, 4294967295, %v7181_v42  ;;  %v887_v41 = vadd.s32 32, %v4395_v44  ;;  %vm4742_vm8 = vmand %vm6926_vm5, %vm925_vm13 }
 0x174   : > { %1062 = vmax.xlane.f32.xlu1 %v1061_v43  ;;  %1056 = vmax.xlane.f32.xlu0 %v1055_v0  ;;  %v4672_v43 = vsel %vm6913_vm6, %v4561_v26, -1e+30  ;;  %v4677_v0 = vsel %vm6926_vm5, %v4565_v28, -1e+30  ;;  %7178 = vst [vmem:[#allocation71_spill] sm:$0xff] %v4694_v46  ;;  %7183 = vst [vmem:[#allocation74_spill] sm:$0xff] %v7182_v42  ;;  %vm928_vm14 = vcmp.ne.s32.totalorder %v885_v39, %v4581_v37 }
 0x175   : > { %7175 = vst [vmem:[#allocation68_spill] sm:$0xff] %v4672_v43  ;;  %7176 = vst [vmem:[#allocation69_spill] sm:$0xff] %v4677_v0  ;;  %v1070_v34 = vmax.f32 %v4672_v43, %v4677_v0  ;;  %v1079_v0 = vmax.f32 %v4685_v35, %v4694_v46  ;;  %v4720_v43 = vsel %vm6913_vm6, %v4539_v15, -1e+30  ;;  %v4728_v62 = vsel %vm6926_vm5, %v4543_v17, -1e+30 }
 0x176   : > { %7184 = vst [vmem:[#allocation75_spill] sm:$0xff] %v4720_v43  ;;  %7185 = vst [vmem:[#allocation76_spill] sm:$0xff] %v4728_v62  ;;  %v4738_v46 = vsel %vm6926_vm5, %v4535_v13, -1e+30  ;;  %vm929_vm10 = vcmp.ne.s32.totalorder %v885_v39, %v4583_v38  ;;  %v889_v35 = vadd.s32 48, %v4395_v44  ;;  %v1085_v42 = vmax.f32 %v4720_v43, %v4728_v62 }
 0x177   : > { %7187 = vst [vmem:[#allocation78_spill] sm:$0xff] %v4738_v46  ;;  %vm4751_vm9 = vmand %vm6896_vm3, %vm4710_vm7  ;;  %v4768_v17 = vsel %vm6913_vm6, %v4555_v23, -1e+30  ;;  %v7197_v15 = vmov 0  ;;  %v4795_v51 = vsel %vm6926_vm5, %v4551_v21, -1e+30  ;;  %vm933_vm15 = vcmp.ne.s32.totalorder %v887_v41, %v4583_v38 }
 0x178   : > { %1068 = vmax.xlane.f32.xlu1 %v1067_v47  ;;  %1065 = vmax.xlane.f32.xlu0 %v1064_v36  ;;  %v4699_v47 = vsel %vm6913_vm6, %v4515_v3, -1e+30  ;;  %v4704_v36 = vsel %vm6926_vm5, %v4519_v5, -1e+30  ;;  %vm4758_vm0 = vmand %vm6913_vm6, %vm928_vm14  ;;  %7196 = vst [vmem:[#allocation81_spill] sm:$0xff] %v4768_v17  ;;  %vm932_vm14 = vcmp.ne.s32.totalorder %v887_v41, %v4581_v37  ;;  %v891_v62 = vadd.s32 64, %v4395_v44 }
 0x179   : > { %7179 = vst [vmem:[#allocation72_spill] sm:$0xff] %v4699_v47  ;;  %7180 = vst [vmem:[#allocation73_spill] sm:$0xff] %v4704_v36  ;;  %v1076_v40 = vmax.f32 %v4699_v47, %v4704_v36  ;;  %v7191_v36 = vmov 0  ;;  %v7193_v47 = vmov 0  ;;  %v7207_v43 = vmov 0 }
 0x17a   : > { %v7192_v36 = vsel %vm4751_vm9, 4294967295, %v7191_v36  ;;  %v7194_v47 = vsel %vm4758_vm0, 4294967295, %v7193_v47  ;;  %vm4777_vm13 = vmand %vm6894_vm4, %vm4742_vm8  ;;  %7201 = vst [vmem:[#allocation84_spill] sm:$0xff] %v4795_v51  ;;  %v4854_v50 = vsel %vm6926_vm5, %v4567_v29, -1e+30  ;;  %v895_v41 = vadd.s32 96, %v4395_v44 }
 0x17b   : > { %7195 = vst [vmem:[#allocation80_spill] sm:$0xff] %v7194_v47  ;;  %v7198_v15 = vsel %vm4777_vm13, 4294967295, %v7197_v15  ;;  %vm4799_vm4 = vmand %vm6926_vm5, %vm929_vm10  ;;  %vm936_vm10 = vcmp.ne.s32.totalorder %v889_v35, %v4581_v37  ;;  %v893_v47 = vadd.s32 80, %v4395_v44  ;;  %vm7239_vm7 = vcmp.ne.s32.totalorder %v891_v62, %v4583_v38 }
 0x17c   : > { %1074 = vmax.xlane.f32.xlu1 %v1073_v45  ;;  %1071 = vmax.xlane.f32.xlu0 %v1070_v34  ;;  %v4733_v45 = vsel %vm6913_vm6, %v4531_v11, -1e+30  ;;  %v7188_v34 = vmov 0  ;;  %vm4808_vm3 = vmand %vm6909_vm1, %vm4758_vm0  ;;  %vm937_vm1 = vcmp.ne.s32.totalorder %v889_v35, %v4583_v38  ;;  %7215 = vst [vmem:[#allocation90_spill] sm:$0xff] %v4854_v50  ;;  %v7216_v35 = vmov 0 }
 0x17d   : > { %7186 = vst [vmem:[#allocation77_spill] sm:$0xff] %v4733_v45  ;;  %v7189_v34 = vsel %vm4742_vm8, 4294967295, %v7188_v34  ;;  %v1082_v39 = vmax.f32 %v4733_v45, %v4738_v46  ;;  %v7202_v46 = vmov 0  ;;  %v7205_v45 = vmov 0  ;;  %vm4816_vm12 = vmand %vm6913_vm6, %vm932_vm14 }
 0x17e   : > { %7190 = vst [vmem:[#allocation79_spill] sm:$0xff] %v7189_v34  ;;  %v7203_v46 = vsel %vm4799_vm4, 4294967295, %v7202_v46  ;;  %v7206_v45 = vsel %vm4808_vm3, 4294967295, %v7205_v45  ;;  %v7208_v43 = vsel %vm4816_vm12, 4294967295, %v7207_v43  ;;  %vm4836_vm14 = vmand %vm6912_vm2, %vm4799_vm4  ;;  %vm7220_vm4 = vcmp.lt.s32.totalorder %v4581_v37, 1008 }
 0x17f   : > { %7204 = vst [vmem:[#allocation85_spill] sm:$0xff] %v7203_v46  ;;  %7209 = vst [vmem:[#allocation86_spill] sm:$0xff] %v7208_v43  ;;  %v7212_v60 = vsel %vm4836_vm14, 4294967295, %v7211_v60 }
 0x180   : > { %1080 = vmax.xlane.f32.xlu1 %v1079_v0  ;;  %1077 = vmax.xlane.f32.xlu0 %v1076_v40  ;;  %v4785_v0 = vsel %vm6926_vm5, %v4559_v25, -1e+30  ;;  %v4790_v40 = vsel %vm6913_vm6, %v4547_v19, -1e+30  ;;  %v4827_v25 = vsel %vm6913_vm6, %v4571_v31, -1e+30  ;;  %vm4860_vm2 = vmand %vm6926_vm5, %vm933_vm15  ;;  %vm940_vm15 = vcmp.ne.s32.totalorder %v891_v62, %v4581_v37 }
 0x181   : > { %7199 = vst [vmem:[#allocation82_spill] sm:$0xff] %v4785_v0  ;;  %7200 = vst [vmem:[#allocation83_spill] sm:$0xff] %v4790_v40  ;;  %v1091_v34 = vmax.f32 %v4768_v17, %v4785_v0  ;;  %v1088_v23 = vmax.f32 %v4790_v40, %v4795_v51  ;;  %v7217_v35 = vsel %vm4860_vm2, 4294967295, %v7216_v35  ;;  %v7218_v51 = vmov 0 }
 0x182   : > { %7210 = vst [vmem:[#allocation87_spill] sm:$0xff] %v4827_v25  ;;  %vm4875_vm0 = vmand %vm7220_vm4, %vm936_vm10  ;;  %v7221_v40 = vmov 0  ;;  %v7223_v0 = vmov 0  ;;  %v4163_v17 = vmov 0   ;;  %vm944_vm10 = vcmp.ne.s32.totalorder %v893_v47, %v4581_v37 }
 0x183   : > { %v7222_v40 = vsel %vm4875_vm0, 4294967295, %v7221_v40  ;;  %vm4883_vm8 = vmand %vm6926_vm5, %vm937_vm1  ;;  %3791 = vset.pattern.permute.xlu0 %v4163_v17  ;;  %3790 = vset.pattern.permute.xlu1 %v4163_v17  ;;  %vm7226_vm1 = vcmp.eq.s32.totalorder %v4434_v55, %v4406_v49  ;;  %v897_v17 = vadd.s32 112, %v4395_v44  ;;  %v7230_v55 = vmov 0 }
 0x184   : > { %1086 = vmax.xlane.f32.xlu1 %v1085_v42  ;;  %1083 = vmax.xlane.f32.xlu0 %v1082_v39  ;;  %v4844_v42 = vsel %vm6926_vm5, %v4575_v33, -1e+30  ;;  %v4849_v39 = vsel %vm6913_vm6, %v4563_v27, -1e+30  ;;  %vm4869_vm6 = vmand %vm6920_vm11, %vm4816_vm12  ;;  %v7224_v0 = vsel %vm4883_vm8, 4294967295, %v7223_v0  ;;  %v7227_v33 = vmov 0 }
 0x185   : > { %7213 = vst [vmem:[#allocation88_spill] sm:$0xff] %v4844_v42  ;;  %7214 = vst [vmem:[#allocation89_spill] sm:$0xff] %v4849_v39  ;;  %v7219_v51 = vsel %vm4869_vm6, 4294967295, %v7218_v51  ;;  %v1097_v43 = vmax.f32 %v4827_v25, %v4844_v42  ;;  %v1094_v46 = vmax.f32 %v4849_v39, %v4854_v50  ;;  %vm7229_vm5 = vcmp.lt.s32.totalorder %v4581_v37, 1008 }
 0x186   : > { %7225 = vst [vmem:[#allocation91_spill] sm:$0xff] %v7224_v0  ;;  %vm4897_vm4 = vmand %vm7226_vm1, %vm4860_vm2  ;;  %vm945_vm11 = vcmp.ne.s32.totalorder %v893_v47, %v4583_v38  ;;  %v884_v50 = vadd.s32 8, %v4395_v44  ;;  %vm7233_vm2 = vcmp.eq.s32.totalorder %v4446_v57, %v4404_v48  ;;  %v7241_v47 = vmov 0 }
 0x187   : > { %v7228_v33 = vsel %vm4897_vm4, 4294967295, %v7227_v33  ;;  %vm4913_vm1 = vmand %vm7229_vm5, %vm940_vm15  ;;  %vm7236_vm5 = vcmp.eq.s32.totalorder %v4446_v57, %v4406_v49  ;;  %v7245_v39 = vmov 0  ;;  %v7249_v62 = vmov 0 }
 0x188   : > { %1092 = vmax.xlane.f32.xlu1 %v1091_v34  ;;  %1089 = vmax.xlane.f32.xlu0 %v1088_v23  ;;  %v1597_v23 = vsel %vm4751_vm9, %v4513_v2, 0.0  ;;  %v1598_v34 = vsel %vm4777_vm13, %v4517_v4, 0.0  ;;  %v7231_v55 = vsel %vm4913_vm1, 4294967295, %v7230_v55  ;;  %vm4924_vm12 = vmand %vm7233_vm2, %vm4875_vm0  ;;  %v7234_v2 = vmov 0 }
 0x189   : > { %7232 = vst [vmem:[#allocation92_spill] sm:$0xff] %v7231_v55  ;;  %v7235_v2 = vsel %vm4924_vm12, 4294967295, %v7234_v2  ;;  %vm4933_vm15 = vmand %vm7236_vm5, %vm4883_vm8  ;;  %v7237_v4 = vmov 0  ;;  %vm7240_vm13 = vcmp.lt.s32.totalorder %v4583_v38, 1008  ;;  %vm948_vm2 = vcmp.ne.s32.totalorder %v895_v41, %v4581_v37 }
 0x18a   : > { %v7238_v4 = vsel %vm4933_vm15, 4294967295, %v7237_v4  ;;  %vm4941_vm9 = vmand %vm7240_vm13, %vm7239_vm7  ;;  %vm7244_vm0 = vcmp.lt.s32.totalorder %v4581_v37, 1008  ;;  %vm949_vm5 = vcmp.ne.s32.totalorder %v895_v41, %v4583_v38  ;;  %v1629_v57 = vadd.f32 %v1598_v34, %v1597_v23  ;;  %v5376_v23 = vld [vmem:[#allocation2 + $0x8] sm:$0xff] }
 0x18b   : > { %v7242_v47 = vsel %vm4941_vm9, 4294967295, %v7241_v47  ;;  %vm4948_vm12 = vmand %vm7244_vm0, %vm944_vm10  ;;  %vm952_vm7 = vcmp.ne.s32.totalorder %v897_v17, %v4581_v37  ;;  %v1601_v0 = vsel %vm4808_vm3, %v4529_v10, 0.0  ;;  %v886_v41 = vadd.s32 24, %v4395_v44 }
 0x18c   : > { %7243 = vst [vmem:[#allocation93_spill] sm:$0xff] %v7242_v47  ;;  %v7246_v39 = vsel %vm4948_vm12, 4294967295, %v7245_v39  ;;  %1098 = vmax.xlane.f32.xlu1 %v1097_v43  ;;  %1095 = vmax.xlane.f32.xlu0 %v1094_v46  ;;  %vm7248_vm8 = vmmov %vm7240_vm13  ;;  %vm953_vm13 = vcmp.ne.s32.totalorder %v897_v17, %v4583_v38  ;;  %v1602_v43 = vsel %vm4836_vm14, %v4533_v12, 0.0  ;;  %v7252_v46 = vmov 0 }
 0x18d   : > { %7247 = vst [vmem:[#allocation94_spill] sm:$0xff] %v7246_v39  ;;  %vm4955_vm15 = vmand %vm7248_vm8, %vm945_vm11  ;;  %vm926_vm8 = vcmp.ne.s32.totalorder %v884_v50, %v4581_v37  ;;  %vm7254_vm11 = vcmp.eq.s32.totalorder %v4458_v59, %v4404_v48  ;;  %v7255_v17 = vmov 0  ;;  %vm7260_vm14 = vcmp.lt.s32.totalorder %v4583_v38, 1008 }
 0x18e   : > { %v7250_v62 = vsel %vm4955_vm15, 4294967295, %v7249_v62  ;;  %vm4969_vm10 = vmand %vm7244_vm0, %vm948_vm2  ;;  %vm7257_vm2 = vcmp.eq.s32.totalorder %v4458_v59, %v4406_v49  ;;  %v7261_v34 = vmov 0  ;;  %v7264_v10 = vmov 0 }
 0x18f   : > { %7251 = vst [vmem:[#allocation95_spill] sm:$0xff] %v7250_v62  ;;  %v7253_v46 = vsel %vm4969_vm10, 4294967295, %v7252_v46  ;;  %vm4980_vm3 = vmand %vm7254_vm11, %vm4913_vm1  ;;  %vm927_vm11 = vcmp.ne.s32.totalorder %v884_v50, %v4583_v38  ;;  %vm7263_vm1 = vcmp.lt.s32.totalorder %v4581_v37, 1008  ;;  %v7267_v59 = vmov 0 }
 0x190   : > { %v7256_v17 = vsel %vm4980_vm3, 4294967295, %v7255_v17  ;;  %vm4989_vm0 = vmand %vm7257_vm2, %vm4941_vm9  ;;  %1630 = vadd.xlane.f32.xlu0 %v1629_v57  ;;  %v1635_v12 = vadd.f32 %v1602_v43, %v1601_v0  ;;  %v7270_v47 = vmov 0  ;;  %v1605_v50 = vsel %vm4869_vm6, %v4545_v18, 0.0 }
 0x191   : > { %vm4995_vm10 = vmand %vm7260_vm14, %vm949_vm5  ;;  %v1606_v55 = vsel %vm4897_vm4, %v4549_v20, 0.0  ;;  %v7273_v42 = vmov 0  ;;  %v888_v57 = vadd.s32 40, %v4395_v44  ;;  %vm7282_vm9 = vcmp.eq.s32.totalorder %v4422_v53, %v4404_v48 }
 0x192   : > { %v7262_v34 = vsel %vm4995_vm10, 4294967295, %v7261_v34  ;;  %vm5002_vm3 = vmand %vm7263_vm1, %vm952_vm7  ;;  %vm930_vm7 = vcmp.ne.s32.totalorder %v886_v41, %v4581_v37  ;;  %v7283_v18 = vmov 0 }
 0x193   : > { %v7265_v10 = vsel %vm5002_vm3, 4294967295, %v7264_v10  ;;  %vm7266_vm15 = vmmov %vm7260_vm14 }
 0x194   : > { %vm5008_vm2 = vmand %vm7266_vm15, %vm953_vm13  ;;  %vm7275_vm13 = vcmp.eq.s32.totalorder %v4475_v61, %v4404_v48  ;;  %1636 = vadd.xlane.f32.xlu0 %v1635_v12 }
 0x195   : > { %v7268_v59 = vsel %vm5008_vm2, 4294967295, %v7267_v59  ;;  %vm7269_vm14 = vmmov %vm7263_vm1 }
 0x196   : > { %vm5014_vm5 = vmand %vm7269_vm14, %vm926_vm8  ;;  %vm7278_vm14 = vnez %v7250_v62  ;;  %v1641_v62 = vadd.f32 %v1606_v55, %v1605_v50  ;;  %v7294_v50 = vmov 0 }
 0x197   : > { %v7271_v47 = vsel %vm5014_vm5, 4294967295, %v7270_v47  ;;  %vm7272_vm1 = vmmov %vm7266_vm15 }
 0x198   : > { %vm5026_vm15 = vmand %vm7272_vm1, %vm927_vm11  ;;  %vm7279_vm11 = vcmp.eq.s32.totalorder %v4475_v61, %v4406_v49  ;;  %v7286_v61 = vmov 0  ;;  %1642 = vadd.xlane.f32.xlu0 %v1641_v62 }
 0x199   : > { %v7274_v42 = vsel %vm5026_vm15, 4294967295, %v7273_v42  ;;  %vm5037_vm8 = vmand %vm7275_vm13, %vm4948_vm12  ;;  %vm931_vm13 = vcmp.ne.s32.totalorder %v886_v41, %v4583_v38  ;;  %vm7285_vm12 = vcmp.eq.s32.totalorder %v4422_v53, %v4406_v49  ;;  %v7289_v41 = vmov 0 }
 0x19a   : > { %vm5046_vm1 = vmand %vm7279_vm11, %vm7278_vm14  ;;  %v890_v53 = vadd.s32 56, %v4395_v44 }
 0x19b   : > { %vm5055_vm4 = vmand %vm7282_vm9, %vm5014_vm5  ;;  %vm7288_vm9 = vcmp.lt.s32.totalorder %v4581_v37, 1008  ;;  %vm7293_vm5 = vcmp.lt.s32.totalorder %v4583_v38, 1008 }
 0x19c   : > { %v7284_v18 = vsel %vm5055_vm4, 4294967295, %v7283_v18  ;;  %vm5065_vm11 = vmand %vm7285_vm12, %vm5026_vm15  ;;  %v1599_v20 = vsel %vm5055_vm4, %v4521_v6, 0.0  ;;  %vm7291_vm12 = vnez %v7235_v2  ;;  %vm7292_vm15 = vnez %v7238_v4 }
 0x19d   : > { %v7287_v61 = vsel %vm5065_vm11, 4294967295, %v7286_v61  ;;  %v1600_v39 = vsel %vm5065_vm11, %v4525_v8, 0.0  ;;  %vm5077_vm14 = vmand %vm7288_vm9, %vm930_vm7  ;;  %v1609_v25 = vsel %vm7291_vm12, %v4561_v26, 0.0  ;;  %v1610_v55 = vsel %vm7292_vm15, %v4565_v28, 0.0  ;;  %v1711_v26 = vld [vmem:[#allocation5 + $0x10] sm:$0xff] }
 0x19e   : > { %v7290_v41 = vsel %vm5077_vm14, 4294967295, %v7289_v41  ;;  %v1632_v12 = vadd.f32 %v1600_v39, %v1599_v20  ;;  %vm5090_vm11 = vmand %vm7293_vm5, %vm931_vm13  ;;  %vm934_vm7 = vcmp.ne.s32.totalorder %v888_v57, %v4581_v37  ;;  %vm7296_vm9 = vnez %v7253_v46 }
 0x19f   : > { %v7295_v50 = vsel %vm5090_vm11, 4294967295, %v7294_v50  ;;  %vm7297_vm4 = vcmp.eq.s32.totalorder %v4487_v63, %v4404_v48  ;;  %vm7300_vm15 = vcmp.eq.s32.totalorder %v4487_v63, %v4406_v49  ;;  %vm7303_vm13 = vcmp.eq.s32.totalorder %v4420_v52, %v4404_v48 }
 0x1a0   : > { %vm5100_vm6 = vmand %vm7297_vm4, %vm7296_vm9  ;;  %v7304_v39 = vmov 0  ;;  %vm935_vm4 = vcmp.ne.s32.totalorder %v888_v57, %v4583_v38  ;;  %1633 = vadd.xlane.f32.xlu1 %v1632_v12  ;;  %v7307_v63 = vmov 0  ;;  %v1647_v6 = vadd.f32 %v1610_v55, %v1609_v25 }
 0x1a1   : > { %vm5109_vm5 = vmand %vm7300_vm15, %vm4995_vm10  ;;  %vm7306_vm15 = vcmp.eq.s32.totalorder %v4420_v52, %v4406_v49  ;;  %v7310_v12 = vmov 0  ;;  %v1614_v25 = vsel %vm4989_vm0, %v4519_v5, 0.0  ;;  %v7314_v55 = vmov 0 }
 0x1a2   : > { %vm5118_vm12 = vmand %vm7303_vm13, %vm5077_vm14  ;;  %vm7309_vm13 = vcmp.lt.s32.totalorder %v4581_v37, 1008  ;;  %vm7313_vm14 = vcmp.lt.s32.totalorder %v4583_v38, 1008  ;;  %v892_v8 = vadd.s32 72, %v4395_v44  ;;  %1648 = vadd.xlane.f32.xlu0 %v1647_v6  ;;  %v898_v20 = vadd.s32 120, %v4395_v44 }
 0x1a3   : > { %v7305_v39 = vsel %vm5118_vm12, 4294967295, %v7304_v39  ;;  %vm5128_vm10 = vmand %vm7306_vm15, %vm5090_vm11  ;;  %v1603_v28 = vsel %vm5118_vm12, %v4537_v14, 0.0  ;;  %vm7312_vm11 = vnez %v7256_v17  ;;  %vm7319_vm15 = vcmp.eq.s32.totalorder %v4503_v1, %v4406_v49 }
 0x1a4   : > { %v7308_v63 = vsel %vm5128_vm10, 4294967295, %v7307_v63  ;;  %v1604_v57 = vsel %vm5128_vm10, %v4541_v16, 0.0  ;;  %vm5140_vm9 = vmand %vm7309_vm13, %vm934_vm7  ;;  %v1613_v52 = vsel %vm7312_vm11, %v4515_v3, 0.0  ;;  %vm7316_vm7 = vcmp.eq.s32.totalorder %v4503_v1, %v4404_v48 }
 0x1a5   : > { %v7311_v12 = vsel %vm5140_vm9, 4294967295, %v7310_v12  ;;  %v1638_v62 = vadd.f32 %v1604_v57, %v1603_v28  ;;  %vm5153_vm10 = vmand %vm7313_vm14, %vm935_vm4  ;;  %v7317_v3 = vmov 0  ;;  %v7320_v28 = vmov 0 }
 0x1a6   : > { %v7315_v55 = vsel %vm5153_vm10, 4294967295, %v7314_v55  ;;  %vm5163_vm13 = vmand %vm7316_vm7, %vm5002_vm3  ;;  %vm7323_vm4 = vcmp.eq.s32.totalorder %v4432_v54, %v4404_v48  ;;  %v7324_v57 = vmov 0  ;;  %vm939_vm7 = vcmp.ne.s32.totalorder %v890_v53, %v4583_v38 }
 0x1a7   : > { %v7318_v3 = vsel %vm5163_vm13, 4294967295, %v7317_v3  ;;  %vm5172_vm14 = vmand %vm7319_vm15, %vm5008_vm2  ;;  %1639 = vadd.xlane.f32.xlu1 %v1638_v62  ;;  %vm7326_vm15 = vcmp.eq.s32.totalorder %v4432_v54, %v4406_v49  ;;  %v7327_v1 = vmov 0  ;;  %v1653_v14 = vadd.f32 %v1614_v25, %v1613_v52 }
 0x1a8   : > { %v7321_v28 = vsel %vm5172_vm14, 4294967295, %v7320_v28  ;;  %vm5181_vm12 = vmand %vm7323_vm4, %vm5140_vm9  ;;  %vm7329_vm4 = vcmp.ne.s32.totalorder %v890_v53, %v4581_v37  ;;  %vm7330_vm3 = vcmp.lt.s32.totalorder %v4581_v37, 1008  ;;  %v7331_v62 = vmov 0 }
 0x1a9   : > { %7322 = vst [vmem:[#allocation96_spill] sm:$0xff] %v7321_v28  ;;  %v7325_v57 = vsel %vm5181_vm12, 4294967295, %v7324_v57  ;;  %vm5191_vm2 = vmand %vm7326_vm15, %vm5153_vm10  ;;  %v1607_v5 = vsel %vm5181_vm12, %v4553_v22, 0.0  ;;  %v894_v54 = vadd.s32 88, %v4395_v44  ;;  %v1617_v22 = vsel %vm5037_vm8, %v4531_v11, 0.0  ;;  %1654 = vadd.xlane.f32.xlu0 %v1653_v14 }
 0x1aa   : > { %v7328_v1 = vsel %vm5191_vm2, 4294967295, %v7327_v1  ;;  %v1608_v16 = vsel %vm5191_vm2, %v4557_v24, 0.0  ;;  %vm5205_vm9 = vmand %vm7330_vm3, %vm7329_vm4  ;;  %v1618_v52 = vsel %vm5046_vm1, %v4535_v13, 0.0  ;;  %vm7333_vm15 = vcmp.lt.s32.totalorder %v4583_v38, 1008 }
 0x1ab   : > { %v7332_v62 = vsel %vm5205_vm9, 4294967295, %v7331_v62  ;;  %v1644_v6 = vadd.f32 %v1608_v16, %v1607_v5  ;;  %vm5218_vm10 = vmand %vm7333_vm15, %vm939_vm7  ;;  %v7334_v53 = vmov 0  ;;  %vm942_vm3 = vcmp.ne.s32.totalorder %v892_v8, %v4581_v37 }
 0x1ac   : > { %v7335_v53 = vsel %vm5218_vm10, 4294967295, %v7334_v53  ;;  %vm7336_vm4 = vcmp.eq.s32.totalorder %v4444_v56, %v4404_v48  ;;  %v7337_v25 = vmov 0  ;;  %vm943_vm12 = vcmp.ne.s32.totalorder %v892_v8, %v4583_v38 }
 0x1ad   : > { %vm5228_vm2 = vmand %vm7336_vm4, %vm5205_vm9  ;;  %1645 = vadd.xlane.f32.xlu1 %v1644_v6  ;;  %vm7339_vm7 = vcmp.eq.s32.totalorder %v4444_v56, %v4406_v49  ;;  %v7340_v5 = vmov 0  ;;  %v1659_v11 = vadd.f32 %v1618_v52, %v1617_v22  ;;  %vm7342_vm4 = vcmp.lt.s32.totalorder %v4581_v37, 1008 }
 0x1ae   : > { %v7338_v25 = vsel %vm5228_vm2, 4294967295, %v7337_v25  ;;  %vm5238_vm15 = vmand %vm7339_vm7, %vm5218_vm10  ;;  %v1611_v16 = vsel %vm5228_vm2, %v4569_v30, 0.0  ;;  %v7343_v6 = vmov 0  ;;  %v1621_v56 = vsel %vm5100_vm6, %v4547_v19, 0.0 }
 0x1af   : > { %v7341_v5 = vsel %vm5238_vm15, 4294967295, %v7340_v5  ;;  %v1612_v8 = vsel %vm5238_vm15, %v4573_v32, 0.0  ;;  %vm5250_vm9 = vmand %vm7342_vm4, %vm942_vm3  ;;  %v1622_v13 = vsel %vm5109_vm5, %v4551_v21, 0.0  ;;  %vm7345_vm7 = vcmp.lt.s32.totalorder %v4583_v38, 1008  ;;  %1660 = vadd.xlane.f32.xlu0 %v1659_v11 }
 0x1b0   : > { %v7344_v6 = vsel %vm5250_vm9, 4294967295, %v7343_v6  ;;  %v1650_v14 = vadd.f32 %v1612_v8, %v1611_v16  ;;  %vm5262_vm10 = vmand %vm7345_vm7, %vm943_vm12  ;;  %v7346_v22 = vmov 0  ;;  %vm946_vm3 = vcmp.ne.s32.totalorder %v894_v54, %v4581_v37 }
 0x1b1   : > { %v7347_v22 = vsel %vm5262_vm10, 4294967295, %v7346_v22  ;;  %vm7348_vm4 = vcmp.eq.s32.totalorder %v4456_v58, %v4404_v48  ;;  %vm947_vm2 = vcmp.ne.s32.totalorder %v894_v54, %v4583_v38  ;;  %vm7351_vm12 = vcmp.eq.s32.totalorder %v4456_v58, %v4406_v49 }
 0x1b2   : > { %vm5272_vm15 = vmand %vm7348_vm4, %vm5250_vm9  ;;  %1651 = vadd.xlane.f32.xlu1 %v1650_v14  ;;  %v1665_v19 = vadd.f32 %v1622_v13, %v1621_v56  ;;  %vm7354_vm4 = vcmp.lt.s32.totalorder %v4581_v37, 1008  ;;  %v1625_v58 = vsel %vm5163_vm13, %v4563_v27, 0.0  ;;  %v1626_v21 = vsel %vm5172_vm14, %v4567_v29, 0.0  ;;  %v7360_v13 = vld [vmem:[#allocation17_spill] sm:$0xff] }
 0x1b3   : > { %vm5282_vm7 = vmand %vm7351_vm12, %vm5262_vm10  ;;  %v1615_v8 = vsel %vm5272_vm15, %v4523_v7, 0.0  ;;  %vm7357_vm12 = vcmp.lt.s32.totalorder %v4583_v38, 1008  ;;  %v7358_v56 = vmov 0  ;;  %vm7364_vm14 = vcmp.eq.s32.totalorder %v7360_v13, %v4406_v49  ;;  %v7442_v7 = vld [vmem:[#allocation55_spill] sm:$0xff] }
 0x1b4   : > { %v1616_v54 = vsel %vm5282_vm7, %v4527_v9, 0.0  ;;  %vm5294_vm9 = vmand %vm7354_vm4, %vm946_vm3  ;;  %vm7361_vm3 = vcmp.eq.s32.totalorder %v7360_v13, %v4404_v48  ;;  %1666 = vadd.xlane.f32.xlu0 %v1665_v19  ;;  %v1671_v29 = vadd.f32 %v1626_v21, %v1625_v58  ;;  %v7368_v9 = vld [vmem:[#allocation38_spill] sm:$0xff] }
 0x1b5   : > { %v1656_v11 = vadd.f32 %v1616_v54, %v1615_v8  ;;  %vm5306_vm10 = vmand %vm7357_vm12, %vm947_vm2  ;;  %v7367_v54 = vld [vmem:[#allocation36_spill] sm:$0xff]  ;;  %vm7369_vm2 = vnez %v7192_v36  ;;  %vm7371_vm12 = vnez %v7206_v45 }
 0x1b6   : > { %v7359_v56 = vsel %vm5306_vm10, 4294967295, %v7358_v56  ;;  %vm5315_vm4 = vmand %vm7361_vm3, %vm5294_vm9  ;;  %vm7372_vm3 = vnez %v7212_v60 }
 0x1b7   : > { %1657 = vadd.xlane.f32.xlu1 %v1656_v11  ;;  %vm5324_vm13 = vmand %vm7364_vm14, %vm5306_vm10  ;;  %v1619_v27 = vsel %vm5315_vm4, %v7367_v54, 0.0  ;;  %v7054_v11 = vmov 0.0   ;;  %vm7370_vm14 = vnez %v7198_v15  ;;  %vm7375_vm10 = vnez %v7235_v2  ;;  %v5366_v2 = vld [vmem:[#allocation2] sm:$0xff] }
 0x1b8   : > { %v1620_v30 = vsel %vm5324_vm13, %v7368_v9, 0.0  ;;  %v3565_v32 = vsel %vm7369_vm2, 1.0, %v7054_v11  ;;  %v3566_v13 = vsel %vm7370_vm14, 1.0, %v7054_v11  ;;  %1672 = vadd.xlane.f32.xlu0 %v1671_v29  ;;  %v3569_v58 = vsel %vm7371_vm12, 1.0, %v7054_v11 }
 0x1b9   : > { %v1662_v24 = vadd.f32 %v1620_v30, %v1619_v27  ;;  %v1789_v28 = vadd.f32 %v3566_v13, %v3565_v32  ;;  %v3570_v9 = vsel %vm7372_vm3, 1.0, %v7054_v11  ;;  %vm7373_vm2 = vnez %v7219_v51  ;;  %v5450_v13 = vld [vmem:[#allocation2 + $0x58] sm:$0xff] }
 0x1ba   : > { %v1795_v19 = vadd.f32 %v3570_v9, %v3569_v58  ;;  %v3573_v21 = vsel %vm7373_vm2, 1.0, %v7054_v11  ;;  %vm7374_vm14 = vnez %v7228_v33  ;;  %v3577_v27 = vsel %vm7375_vm10, 1.0, %v7054_v11  ;;  %v5364_v33 = vld [vmem:[#allocation2 + $0x10] sm:$0xff]  ;;  %7391 = vst [vmem:[#allocation111_spill] sm:$0xff] %v5450_v13 }
 0x1bb   : > { %1663 = vadd.xlane.f32.xlu1 %v1662_v24  ;;  %v3574_v15 = vsel %vm7374_vm14, 1.0, %v7054_v11  ;;  %vm7376_vm12 = vnez %v7238_v4  ;;  %v3581_v51 = vsel %vm7312_vm11, 1.0, %v7054_v11  ;;  %v3582_v30 = vsel %vm4989_vm0, 1.0, %v7054_v11 }
 0x1bc   : > { %1790 = vadd.xlane.f32.xlu0 %v1789_v28  ;;  %v1801_v24 = vadd.f32 %v3574_v15, %v3573_v21  ;;  %v3578_v60 = vsel %vm7376_vm12, 1.0, %v7054_v11  ;;  %v1813_v32 = vadd.f32 %v3582_v30, %v3581_v51  ;;  %vm7081_vm10 = vcmask 7168   ;;  %v5374_v28 = vld [vmem:[#allocation2 + $0x18] sm:$0xff]  ;;  %v5393_v15 = vld [vmem:[#allocation2 + $0x28] sm:$0xff] }
 0x1bd   : > { %v1807_v29 = vadd.f32 %v3578_v60, %v3577_v27  ;;  %7378 = vst [vmem:[#allocation98_spill] sm:$0xff] %v5374_v28  ;;  %7380 = vst [vmem:[#allocation100_spill] sm:$0xff] %v5393_v15  ;;  %v5433_v60 = vld [vmem:[#allocation2 + $0x40] sm:$0xff]  ;;  %vm7406_vm11 = vcmp.lt.s32.totalorder %v4583_v38, 1008  ;;  %vm954_vm3 = vcmp.ne.s32.totalorder %v898_v20, %v4581_v37  ;;  %vm955_vm12 = vcmp.ne.s32.totalorder %v898_v20, %v4583_v38 }
 0x1be   : > { %7389 = vst [vmem:[#allocation109_spill] sm:$0xff] %v5433_v60 }
 0x1c0   : > { %1796 = vadd.xlane.f32.xlu0 %v1795_v19 }
 0x1c4   : > { %1802 = vadd.xlane.f32.xlu0 %v1801_v24  ;;  %v5395_v24 = vld [vmem:[#allocation2 + $0x20] sm:$0xff] }
 0x1c5   : > { %7381 = vst [vmem:[#allocation101_spill] sm:$0xff] %v5395_v24 }
 0x1c8   : > { %1808 = vadd.xlane.f32.xlu0 %v1807_v29 }
 0x1cc   : > { %1814 = vadd.xlane.f32.xlu0 %v1813_v32 }
 0x1fd   : > { %v1060_v4 = vpop.xlane.xlu1 %1059  ;;  %v1054_v36 = vpop.xlane.xlu0 %1053 }
 0x1fe   : > { %v5369_v45 = vmax.f32 %v5364_v33, %v1060_v4  ;;  %v5372_v17 = vmax.f32 %v5366_v2, %v1054_v36  ;;  %v5412_v4 = vld [vmem:[#allocation2 + $0x38] sm:$0xff]  ;;  %v5414_v36 = vld [vmem:[#allocation2 + $0x30] sm:$0xff] }
 0x1ff   : > { %7384 = vst [vmem:[#allocation104_spill] sm:$0xff] %v5412_v4  ;;  %7385 = vst [vmem:[#allocation105_spill] sm:$0xff] %v5414_v36 }
 0x200   : > { %7377 = vst [vmem:[#allocation97_spill] sm:$0xff] %v5369_v45  ;;  %1567 = vst.msk [vmem:[#allocation2 + $0x10] sm:$0xff] %vm7081_vm10, %v5369_v45  ;;  %1134 = vperm.xlu0 %3791, %v5372_v17  }
 0x201   : > { %1565 = vst.msk [vmem:[#allocation2] sm:$0xff] %vm7081_vm10, %v5372_v17  ;;  %v1063_v58 = vpop.xlane.xlu1 %1062  ;;  %v1057_v9 = vpop.xlane.xlu0 %1056 }
 0x202   : > { %v5388_v19 = vmax.f32 %v5374_v28, %v1063_v58  ;;  %v5391_v21 = vmax.f32 %v5376_v23, %v1057_v9  ;;  %v5431_v58 = vld [vmem:[#allocation2 + $0x48] sm:$0xff]  ;;  %v1584_v28 = vld [vmem:[#allocation4 + $0x18] sm:$0xff] }
 0x203   : > { %7388 = vst [vmem:[#allocation108_spill] sm:$0xff] %v5431_v58 }
 0x204   : > { %7379 = vst [vmem:[#allocation99_spill] sm:$0xff] %v5388_v19  ;;  %1568 = vst.msk [vmem:[#allocation2 + $0x18] sm:$0xff] %vm7081_vm10, %v5388_v19  ;;  %1139 = vperm.xlu1 %3790, %v5391_v21  }
 0x205   : > { %1566 = vst.msk [vmem:[#allocation2 + $0x8] sm:$0xff] %vm7081_vm10, %v5391_v21  ;;  %v1069_v29 = vpop.xlane.xlu1 %1068  ;;  %v1066_v51 = vpop.xlane.xlu0 %1065 }
 0x206   : > { %v5407_v30 = vmax.f32 %v5393_v15, %v1069_v29  ;;  %v5410_v32 = vmax.f32 %v5395_v24, %v1066_v51 }
 0x208   : > { %7382 = vst [vmem:[#allocation102_spill] sm:$0xff] %v5407_v30  ;;  %7383 = vst [vmem:[#allocation103_spill] sm:$0xff] %v5410_v32  ;;  %1144 = vperm.xlu1 %3790, %v5369_v45   ;;  %v1587_v45 = vld [vmem:[#allocation4 + $0x30] sm:$0xff] }
 0x209   : > { %1570 = vst.msk [vmem:[#allocation2 + $0x28] sm:$0xff] %vm7081_vm10, %v5407_v30  ;;  %1569 = vst.msk [vmem:[#allocation2 + $0x20] sm:$0xff] %vm7081_vm10, %v5410_v32  ;;  %v1075_v29 = vpop.xlane.xlu1 %1074  ;;  %v1072_v51 = vpop.xlane.xlu0 %1071 }
 0x20a   : > { %v5426_v27 = vmax.f32 %v5412_v4, %v1075_v29  ;;  %v5429_v54 = vmax.f32 %v5414_v36, %v1072_v51  ;;  %v5452_v4 = vld [vmem:[#allocation2 + $0x50] sm:$0xff] }
 0x20b   : > { %7392 = vst [vmem:[#allocation112_spill] sm:$0xff] %v5452_v4 }
 0x20c   : > { %7386 = vst [vmem:[#allocation106_spill] sm:$0xff] %v5426_v27  ;;  %7387 = vst [vmem:[#allocation107_spill] sm:$0xff] %v5429_v54  ;;  %1149 = vperm.xlu1 %3790, %v5388_v19   ;;  %v5472_v19 = vld [vmem:[#allocation2 + $0x60] sm:$0xff] }
 0x20d   : > { %1572 = vst.msk [vmem:[#allocation2 + $0x38] sm:$0xff] %vm7081_vm10, %v5426_v27  ;;  %1571 = vst.msk [vmem:[#allocation2 + $0x30] sm:$0xff] %vm7081_vm10, %v5429_v54  ;;  %v1081_v29 = vpop.xlane.xlu1 %1080  ;;  %v1078_v51 = vpop.xlane.xlu0 %1077 }
 0x20e   : > { %v5445_v11 = vmax.f32 %v5431_v58, %v1081_v29  ;;  %v5448_v15 = vmax.f32 %v5433_v60, %v1078_v51  ;;  %v5470_v58 = vld [vmem:[#allocation2 + $0x68] sm:$0xff]  ;;  %7396 = vst [vmem:[#allocation116_spill] sm:$0xff] %v5472_v19 }
 0x20f   : > { %7395 = vst [vmem:[#allocation115_spill] sm:$0xff] %v5470_v58 }
 0x210   : > { %7390 = vst [vmem:[#allocation110_spill] sm:$0xff] %v5445_v11  ;;  %1574 = vst.msk [vmem:[#allocation2 + $0x48] sm:$0xff] %vm7081_vm10, %v5445_v11  ;;  %1179 = vperm.xlu0 %3791, %v5445_v11   ;;  %1154 = vperm.xlu1 %3790, %v5410_v32   ;;  %v5492_v32 = vld [vmem:[#allocation2 + $0x70] sm:$0xff] }
 0x211   : > { %1573 = vst.msk [vmem:[#allocation2 + $0x40] sm:$0xff] %vm7081_vm10, %v5448_v15  ;;  %v1087_v51 = vpop.xlane.xlu1 %1086  ;;  %v1084_v9 = vpop.xlane.xlu0 %1083  ;;  %7399 = vst [vmem:[#allocation119_spill] sm:$0xff] %v5492_v32 }
 0x212   : > { %v5465_v36 = vmax.f32 %v5450_v13, %v1087_v51  ;;  %v5468_v24 = vmax.f32 %v5452_v4, %v1084_v9  ;;  %v5490_v13 = vld [vmem:[#allocation2 + $0x78] sm:$0xff] }
 0x213   : > { %7398 = vst [vmem:[#allocation118_spill] sm:$0xff] %v5490_v13 }
 0x214   : > { %7393 = vst [vmem:[#allocation113_spill] sm:$0xff] %v5465_v36  ;;  %7394 = vst [vmem:[#allocation114_spill] sm:$0xff] %v5468_v24  ;;  %1189 = vperm.xlu0 %3791, %v5465_v36   ;;  %1159 = vperm.xlu1 %3790, %v5407_v30   ;;  %v1585_v30 = vld [vmem:[#allocation4 + $0x20] sm:$0xff] }
 0x215   : > { %1576 = vst.msk [vmem:[#allocation2 + $0x58] sm:$0xff] %vm7081_vm10, %v5465_v36  ;;  %1575 = vst.msk [vmem:[#allocation2 + $0x50] sm:$0xff] %vm7081_vm10, %v5468_v24  ;;  %v1093_v9 = vpop.xlane.xlu1 %1092  ;;  %v1090_v29 = vpop.xlane.xlu0 %1089 }
 0x216   : > { %v5485_v60 = vmax.f32 %v5470_v58, %v1093_v9  ;;  %v5488_v11 = vmax.f32 %v5472_v19, %v1090_v29  ;;  %v1581_v58 = vld [vmem:[#allocation4] sm:$0xff]  ;;  %v1583_v19 = vld [vmem:[#allocation4 + $0x10] sm:$0xff] }
 0x218   : > { %7397 = vst [vmem:[#allocation117_spill] sm:$0xff] %v5485_v60  ;;  %1578 = vst.msk [vmem:[#allocation2 + $0x68] sm:$0xff] %vm7081_vm10, %v5485_v60  ;;  %1199 = vperm.xlu0 %3791, %v5485_v60   ;;  %1164 = vperm.xlu1 %3790, %v5429_v54   ;;  %v1582_v54 = vld [vmem:[#allocation4 + $0x8] sm:$0xff] }
 0x219   : > { %1577 = vst.msk [vmem:[#allocation2 + $0x60] sm:$0xff] %vm7081_vm10, %v5488_v11  ;;  %v1099_v29 = vpop.xlane.xlu1 %1098  ;;  %v1096_v51 = vpop.xlane.xlu0 %1095 }
 0x21a   : > { %v5505_v4 = vmax.f32 %v5490_v13, %v1099_v29  ;;  %v5508_v36 = vmax.f32 %v5492_v32, %v1096_v51 }
 0x21c   : > { %7400 = vst [vmem:[#allocation120_spill] sm:$0xff] %v5505_v4  ;;  %7401 = vst [vmem:[#allocation121_spill] sm:$0xff] %v5508_v36  ;;  %1209 = vperm.xlu0 %3791, %v5505_v4   ;;  %1169 = vperm.xlu1 %3790, %v5426_v27  }
 0x21d   : > { %1580 = vst.msk [vmem:[#allocation2 + $0x78] sm:$0xff] %vm7081_vm10, %v5505_v4  ;;  %1579 = vst.msk [vmem:[#allocation2 + $0x70] sm:$0xff] %vm7081_vm10, %v5508_v36  ;;  %v1631_v29 = vpop.xlane.xlu0 %1630 }
 0x21e   : > { %v1677_v51 = vadd.f32 %v1631_v29, %v1581_v58 }
 0x220   : > { %1174 = vperm.xlu1 %3790, %v5448_v15   ;;  %1693 = vst.msk [vmem:[#allocation4] sm:$0xff] %vm7081_vm10, %v1677_v51  ;;  %v1586_v51 = vld [vmem:[#allocation4 + $0x28] sm:$0xff] }
 0x221   : > { %v1637_v60 = vpop.xlane.xlu0 %1636 }
 0x222   : > { %v1679_v13 = vadd.f32 %v1637_v60, %v1583_v19 }
 0x224   : > { %1184 = vperm.xlu1 %3790, %v5468_v24   ;;  %1695 = vst.msk [vmem:[#allocation4 + $0x10] sm:$0xff] %vm7081_vm10, %v1679_v13  ;;  %v1589_v24 = vld [vmem:[#allocation4 + $0x40] sm:$0xff] }
 0x225   : > { %v1643_v9 = vpop.xlane.xlu0 %1642 }
 0x226   : > { %v1681_v27 = vadd.f32 %v1643_v9, %v1585_v30  ;;  %v1591_v9 = vld [vmem:[#allocation4 + $0x50] sm:$0xff] }
 0x228   : > { %1194 = vperm.xlu1 %3790, %v5488_v11   ;;  %1697 = vst.msk [vmem:[#allocation4 + $0x20] sm:$0xff] %vm7081_vm10, %v1681_v27 }
 0x22c   : > { %1204 = vperm.xlu1 %3790, %v5508_v36   ;;  %v7402_v36 = vmov 0.0  }
 0x22d   : > { %v1634_v4 = vpop.xlane.xlu1 %1633  ;;  %v3589_v0 = vsel %vm5100_vm6, 1.0, %v7402_v36  ;;  %v3590_v43 = vsel %vm5109_vm5, 1.0, %v7402_v36 }
 0x22e   : > { %v1678_v32 = vadd.f32 %v1634_v4, %v1582_v54  ;;  %v1588_v4 = vld [vmem:[#allocation4 + $0x38] sm:$0xff] }
 0x22f   : > { %v1649_v19 = vpop.xlane.xlu0 %1648 }
 0x230   : > { %1694 = vst.msk [vmem:[#allocation4 + $0x8] sm:$0xff] %vm7081_vm10, %v1678_v32  ;;  %v1683_v29 = vadd.f32 %v1649_v19, %v1587_v45  ;;  %v1590_v19 = vld [vmem:[#allocation4 + $0x48] sm:$0xff] }
 0x232   : > { %1699 = vst.msk [vmem:[#allocation4 + $0x30] sm:$0xff] %vm7081_vm10, %v1683_v29 }
 0x234   : > { %v1640_v58 = vpop.xlane.xlu1 %1639 }
 0x235   : > { %v1680_v60 = vadd.f32 %v1640_v58, %v1584_v28 }
 0x236   : > { %v1655_v13 = vpop.xlane.xlu0 %1654 }
 0x237   : > { %1696 = vst.msk [vmem:[#allocation4 + $0x18] sm:$0xff] %vm7081_vm10, %v1680_v60  ;;  %v1685_v32 = vadd.f32 %v1655_v13, %v1589_v24  ;;  %v1593_v60 = vld [vmem:[#allocation4 + $0x60] sm:$0xff]  ;;  %v3585_v24 = vsel %vm5037_vm8, 1.0, %v7402_v36  ;;  %vm7403_vm8 = vcmp.lt.s32.totalorder %v4581_v37, 1008 }
 0x239   : > { %1701 = vst.msk [vmem:[#allocation4 + $0x40] sm:$0xff] %vm7081_vm10, %v1685_v32  ;;  %v1592_v32 = vld [vmem:[#allocation4 + $0x58] sm:$0xff] }
 0x23a   : > { %v1646_v54 = vpop.xlane.xlu1 %1645 }
 0x23b   : > { %v1682_v30 = vadd.f32 %v1646_v54, %v1586_v51  ;;  %v3586_v51 = vsel %vm5046_vm1, 1.0, %v7402_v36 }
 0x23c   : > { %v1661_v45 = vpop.xlane.xlu0 %1660 }
 0x23d   : > { %1698 = vst.msk [vmem:[#allocation4 + $0x28] sm:$0xff] %vm7081_vm10, %v1682_v30  ;;  %v1687_v58 = vadd.f32 %v1661_v45, %v1591_v9  ;;  %v1819_v9 = vadd.f32 %v3586_v51, %v3585_v24 }
 0x23f   : > { %v1652_v28 = vpop.xlane.xlu1 %1651  ;;  %1703 = vst.msk [vmem:[#allocation4 + $0x50] sm:$0xff] %vm7081_vm10, %v1687_v58  ;;  %1820 = vadd.xlane.f32.xlu0 %v1819_v9  ;;  %v7445_v9 = vld [vmem:[#allocation61_spill] sm:$0xff] }
 0x240   : > { %v1684_v27 = vadd.f32 %v1652_v28, %v1588_v4  ;;  %v1595_v4 = vld [vmem:[#allocation4 + $0x70] sm:$0xff] }
 0x241   : > { %v1667_v54 = vpop.xlane.xlu0 %1666 }
 0x242   : > { %1700 = vst.msk [vmem:[#allocation4 + $0x38] sm:$0xff] %vm7081_vm10, %v1684_v27  ;;  %v1689_v30 = vadd.f32 %v1667_v54, %v1593_v60  ;;  %v1709_v60 = vld [vmem:[#allocation5] sm:$0xff] }
 0x244   : > { %v1658_v29 = vpop.xlane.xlu1 %1657  ;;  %1705 = vst.msk [vmem:[#allocation4 + $0x60] sm:$0xff] %vm7081_vm10, %v1689_v30 }
 0x245   : > { %v1686_v13 = vadd.f32 %v1658_v29, %v1590_v19  ;;  %v1673_v45 = vpop.xlane.xlu0 %1672  ;;  %v896_v19 = vadd.s32 104, %v4395_v44  ;;  %v1825_v29 = vadd.f32 %v3590_v43, %v3589_v0  ;;  %v7409_v44 = vld [vmem:[#allocation19_spill] sm:$0xff] }
 0x246   : > { %v1691_v58 = vadd.f32 %v1673_v45, %v1595_v4  ;;  %v1713_v4 = vld [vmem:[#allocation5 + $0x20] sm:$0xff]  ;;  %vm7410_vm2 = vcmp.eq.s32.totalorder %v7409_v44, %v4404_v48 }
 0x247   : > { %1702 = vst.msk [vmem:[#allocation4 + $0x48] sm:$0xff] %vm7081_vm10, %v1686_v13  ;;  %vm950_vm6 = vcmp.ne.s32.totalorder %v896_v19, %v4581_v37  ;;  %vm951_vm0 = vcmp.ne.s32.totalorder %v896_v19, %v4583_v38  ;;  %1826 = vadd.xlane.f32.xlu0 %v1825_v29  ;;  %v7404_v13 = vmov 0  ;;  %v7422_v19 = vld [vmem:[#allocation44_spill] sm:$0xff]  ;;  %v7423_v29 = vld [vmem:[#allocation46_spill] sm:$0xff] }
 0x248   : > { %v1664_v28 = vpop.xlane.xlu1 %1663  ;;  %1707 = vst.msk [vmem:[#allocation4 + $0x70] sm:$0xff] %vm7081_vm10, %v1691_v58  ;;  %vm5557_vm1 = vmand %vm7403_vm8, %vm950_vm6  ;;  %vm7413_vm6 = vcmp.eq.s32.totalorder %v7409_v44, %v4406_v49  ;;  %v1715_v58 = vld [vmem:[#allocation5 + $0x30] sm:$0xff] }
 0x249   : > { %v1688_v27 = vadd.f32 %v1664_v28, %v1592_v32  ;;  %v1791_v24 = vpop.xlane.xlu0 %1790  ;;  %v7405_v13 = vsel %vm5557_vm1, 4294967295, %v7404_v13  ;;  %vm5563_vm5 = vmand %vm7406_vm11, %vm951_vm0  ;;  %v7432_v44 = vld [vmem:[#allocation53_spill] sm:$0xff] }
 0x24a   : > { %v1837_v51 = vadd.f32 %v1791_v24, %v1709_v60  ;;  %vm5574_vm14 = vmand %vm7410_vm2, %vm5557_vm1  ;;  %vm7418_vm2 = vcmp.lt.s32.totalorder %v4583_v38, 1008  ;;  %vm7421_vm1 = vcmask 7168   ;;  %v7424_v24 = vld [vmem:[#allocation21_spill] sm:$0xff] }
 0x24b   : > { %1704 = vst.msk [vmem:[#allocation4 + $0x58] sm:$0xff] %vm7081_vm10, %v1688_v27  ;;  %vm5584_vm0 = vmand %vm7413_vm6, %vm5563_vm5  ;;  %v1623_v60 = vsel %vm5574_vm14, %v7422_v19, 0.0  ;;  %v3591_v52 = vsel %vm5574_vm14, 1.0, %v7402_v36  ;;  %v7513_v27 = vld [vmem:[#allocation96_spill] sm:$0xff] }
 0x24c   : > { %1853 = vst.msk [vmem:[#allocation5] sm:$0xff] %vm7081_vm10, %v1837_v51  ;;  %vm5590_vm11 = vmand %vm7403_vm8, %vm954_vm3  ;;  %v1624_v37 = vsel %vm5584_vm0, %v7423_v29, 0.0  ;;  %vm7425_vm3 = vcmp.eq.s32.totalorder %v7424_v24, %v4404_v48  ;;  %vm7431_vm8 = vcmask 7168   ;;  %v3592_v16 = vsel %vm5584_vm0, 1.0, %v7402_v36 }
 0x24d   : > { %v1797_v54 = vpop.xlane.xlu0 %1796 }
 0x24e   : > { %v1839_v30 = vadd.f32 %v1797_v54, %v1711_v26  ;;  %v7429_v26 = vmov 0  ;;  %v1717_v54 = vld [vmem:[#allocation5 + $0x40] sm:$0xff] }
 0x250   : > { %1855 = vst.msk [vmem:[#allocation5 + $0x10] sm:$0xff] %vm7081_vm10, %v1839_v30  ;;  %vm5596_vm10 = vmand %vm7418_vm2, %vm955_vm12  ;;  %v1668_v30 = vadd.f32 %v1624_v37, %v1623_v60 }
 0x251   : > { %v1803_v0 = vpop.xlane.xlu0 %1802  ;;  %vm5612_vm12 = vmand %vm7425_vm3, %vm5590_vm11  ;;  %vm7434_vm3 = vnez %v7284_v18 }
 0x252   : > { %v1841_v43 = vadd.f32 %v1803_v0, %v1713_v4  ;;  %v1627_v4 = vsel %vm5612_vm12, %v4571_v31, 0.0  ;;  %1669 = vadd.xlane.f32.xlu1 %v1668_v30  ;;  %vm7433_vm2 = vmmov %vm7431_vm8 }
 0x254   : > { %1857 = vst.msk [vmem:[#allocation5 + $0x20] sm:$0xff] %vm7421_vm1, %v1841_v43  ;;  %vm7428_vm1 = vcmp.eq.s32.totalorder %v7424_v24, %v4406_v49 }
 0x255   : > { %v1809_v51 = vpop.xlane.xlu0 %1808  ;;  %vm5621_vm6 = vmand %vm7428_vm1, %vm5596_vm10  ;;  %vm7435_vm1 = vnez %v7287_v61 }
 0x256   : > { %v7430_v26 = vsel %vm5621_vm6, 4294967295, %v7429_v26  ;;  %v1843_v20 = vadd.f32 %v1809_v51, %v1715_v58  ;;  %v1628_v0 = vsel %vm5621_vm6, %v7432_v44, 0.0  ;;  %v3567_v58 = vsel %vm7434_vm3, 1.0, %v7402_v36 }
 0x257   : > { %v1674_v29 = vadd.f32 %v1628_v0, %v1627_v4  ;;  %v3568_v60 = vsel %vm7435_vm1, 1.0, %v7402_v36  ;;  %vm7437_vm6 = vnez %v7308_v63  ;;  %vm7439_vm3 = vnez %v7328_v1 }
 0x258   : > { %1859 = vst.msk [vmem:[#allocation5 + $0x30] sm:$0xff] %vm7431_vm8, %v1843_v20  ;;  %v1792_v37 = vadd.f32 %v3568_v60, %v3567_v58  ;;  %vm7436_vm8 = vnez %v7305_v39  ;;  %v3572_v51 = vsel %vm7437_vm6, 1.0, %v7402_v36  ;;  %v3576_v61 = vsel %vm7439_vm3, 1.0, %v7402_v36 }
 0x259   : > { %v1815_v43 = vpop.xlane.xlu0 %1814  ;;  %1675 = vadd.xlane.f32.xlu1 %v1674_v29  ;;  %v3571_v24 = vsel %vm7436_vm8, 1.0, %v7402_v36  ;;  %vm7440_vm1 = vnez %v7338_v25  ;;  %vm7441_vm8 = vnez %v7341_v5  ;;  %v3584_v1 = vsel %vm5282_vm7, 1.0, %v7402_v36  ;;  %v7443_v29 = vld [vmem:[#allocation59_spill] sm:$0xff] }
 0x25a   : > { %v1845_v19 = vadd.f32 %v1815_v43, %v1717_v54  ;;  %v1798_v20 = vadd.f32 %v3572_v51, %v3571_v24  ;;  %v3579_v39 = vsel %vm7440_vm1, 1.0, %v7402_v36  ;;  %v3580_v63 = vsel %vm7441_vm8, 1.0, %v7402_v36  ;;  %v7444_v24 = vld [vmem:[#allocation57_spill] sm:$0xff] }
 0x25b   : > { %v1810_v30 = vadd.f32 %v3580_v63, %v3579_v39  ;;  %v3587_v25 = vsel %vm5315_vm4, 1.0, %v7402_v36  ;;  %v3588_v5 = vsel %vm5324_vm13, 1.0, %v7402_v36  ;;  %v1828_v0 = vadd.f32 %v3592_v16, %v3591_v52  ;;  %v7447_v63 = vld [vmem:[#allocation58_spill] sm:$0xff] }
 0x25c   : > { %1861 = vst.msk [vmem:[#allocation5 + $0x40] sm:$0xff] %vm7433_vm2, %v1845_v19  ;;  %vm7438_vm2 = vnez %v7325_v57  ;;  %v3583_v57 = vsel %vm5272_vm15, 1.0, %v7402_v36  ;;  %v1822_v44 = vadd.f32 %v3588_v5, %v3587_v25  ;;  %v7448_v25 = vld [vmem:[#allocation56_spill] sm:$0xff]  ;;  %v7450_v16 = vld [vmem:[#allocation74_spill] sm:$0xff]  ;;  %vm7455_vm7 = vnez %v7271_v47 }
 0x25d   : > { %1793 = vadd.xlane.f32.xlu1 %v1792_v37  ;;  %v3575_v18 = vsel %vm7438_vm2, 1.0, %v7402_v36  ;;  %v1816_v4 = vadd.f32 %v3584_v1, %v3583_v57  ;;  %vm7451_vm13 = vnez %v7450_v16  ;;  %vm7457_vm4 = vnez %v7274_v42  ;;  %v7460_v16 = vld [vmem:[#allocation80_spill] sm:$0xff] }
 0x25e   : > { %v1804_v54 = vadd.f32 %v3576_v61, %v3575_v18  ;;  %vm7461_vm14 = vnez %v7460_v16  ;;  %vm7468_vm6 = vnez %v7290_v41  ;;  %vm7471_vm2 = vnez %v7295_v50 }
 0x25f   : > { %vm7476_vm1 = vnez %v7217_v35  ;;  %vm7480_vm8 = vnez %v7311_v12 }
 0x260   : > { %v3543_v35 = vsel %vm7480_vm8, 1.0, %v7402_v36  ;;  %vm7504_vm8 = vnez %v7359_v56 }
 0x261   : > { %1799 = vadd.xlane.f32.xlu1 %v1798_v20 }
 0x265   : > { %1805 = vadd.xlane.f32.xlu1 %v1804_v54  ;;  %v7446_v54 = vld [vmem:[#allocation54_spill] sm:$0xff] }
 0x269   : > { %1811 = vadd.xlane.f32.xlu1 %v1810_v30 }
 0x26d   : > { %1817 = vadd.xlane.f32.xlu1 %v1816_v4 }
 0x271   : > { %1823 = vadd.xlane.f32.xlu1 %v1822_v44  ;;  %v7449_v44 = vld [vmem:[#allocation60_spill] sm:$0xff] }
 0x275   : > { %1829 = vadd.xlane.f32.xlu1 %v1828_v0  ;;  %v3533_v0 = vsel %vm7451_vm13, 1.0, %v7402_v36  ;;  %vm7482_vm13 = vnez %v7315_v55 }
 0x27f   : > { %v1135_v43 = vpop.permute.xlu0 %1134 }
 0x280   : > { %v1212_v19 = vsub.f32 %v7442_v7, %v1135_v43  ;;  %v1213_v58 = vsub.f32 %v7443_v29, %v1135_v43  ;;  %v7452_v29 = vld [vmem:[#allocation79_spill] sm:$0xff] }
 0x281   : > { %vm7453_vm15 = vnez %v7452_v29  ;;  %v7463_v29 = vld [vmem:[#allocation63_spill] sm:$0xff] }
 0x282   : > { %v1244_v8 = vmul.f32 1.442695, %v1212_v19  ;;  %v1246_v60 = vmul.f32 1.442695, %v1213_v58  ;;  %v3534_v58 = vsel %vm7453_vm15, 1.0, %v7402_v36  ;;  %vm7485_vm15 = vnez %v7222_v40 }
 0x283   : > { %v1140_v37 = vpop.permute.xlu1 %1139 }
 0x284   : > { %3792 = vpow2.f32 %v1244_v8  ;;  %v1214_v51 = vsub.f32 %v7444_v24, %v1140_v37  ;;  %v1215_v20 = vsub.f32 %v7445_v9, %v1140_v37 }
 0x285   : > { %3794 = vpow2.f32 %v1246_v60 }
 0x286   : > { %v1248_v18 = vmul.f32 1.442695, %v1214_v51  ;;  %v1250_v28 = vmul.f32 1.442695, %v1215_v20  ;;  %v7454_v51 = vld [vmem:[#allocation64_spill] sm:$0xff]  ;;  %v3535_v20 = vsel %vm7455_vm7, 1.0, %v7402_v36 }
 0x287   : > { %v1145_v61 = vpop.permute.xlu1 %1144 }
 0x288   : > { %3796 = vpow2.f32 %v1248_v18  ;;  %v1216_v39 = vsub.f32 %v7446_v54, %v1145_v61  ;;  %v1217_v30 = vsub.f32 %v7447_v63, %v1145_v61  ;;  %v7456_v18 = vld [vmem:[#allocation65_spill] sm:$0xff]  ;;  %v3536_v63 = vsel %vm7457_vm4, 1.0, %v7402_v36 }
 0x289   : > { %3798 = vpow2.f32 %v1250_v28  ;;  %vm7492_vm4 = vnez %v7332_v62  ;;  %v7495_v62 = vld [vmem:[#allocation92_spill] sm:$0xff] }
 0x28a   : > { %v1252_v57 = vmul.f32 1.442695, %v1216_v39  ;;  %v1254_v1 = vmul.f32 1.442695, %v1217_v30 }
 0x28b   : > { %v1150_v4 = vpop.permute.xlu1 %1149 }
 0x28c   : > { %3800 = vpow2.f32 %v1252_v57  ;;  %v1218_v5 = vsub.f32 %v7448_v25, %v1150_v4  ;;  %v1219_v52 = vsub.f32 %v7449_v44, %v1150_v4 }
 0x28d   : > { %3802 = vpow2.f32 %v1254_v1 }
 0x28e   : > { %v3793_v43 = vpop.eup %3792  ;;  %v1256_v7 = vmul.f32 1.442695, %v1218_v5  ;;  %v1258_v19 = vmul.f32 1.442695, %v1219_v52  ;;  %v7458_v5 = vld [vmem:[#allocation70_spill] sm:$0xff] }
 0x28f   : > { %v3795_v8 = vpop.eup %3794  ;;  %v1180_v60 = vpop.permute.xlu0 %1179  ;;  %v1372_v24 = vmul.f32 %v3793_v43, %v3533_v0  ;;  %v7459_v52 = vld [vmem:[#allocation62_spill] sm:$0xff]  ;;  %v3537_v0 = vsel %vm7461_vm14, 1.0, %v7402_v36  ;;  %v7462_v43 = vld [vmem:[#allocation71_spill] sm:$0xff]  ;;  %vm7493_vm14 = vnez %v7344_v6 }
 0x290   : > { %v1155_v37 = vpop.permute.xlu1 %1154  ;;  %3804 = vpow2.f32 %v1256_v7  ;;  %v1373_v61 = vmul.f32 %v3795_v8, %v3534_v58  ;;  %v1230_v44 = vsub.f32 %v7458_v5, %v1180_v60  ;;  %v1231_v7 = vsub.f32 %v7462_v43, %v1180_v60  ;;  %v7466_v60 = vld [vmem:[#allocation75_spill] sm:$0xff] }
 0x291   : > { %v1220_v9 = vsub.f32 %v7454_v51, %v1155_v37  ;;  %3806 = vpow2.f32 %v1258_v19  ;;  %v1221_v28 = vsub.f32 %v7456_v18, %v1155_v37 }
 0x292   : > { %v3797_v54 = vpop.eup %3796  ;;  %v1484_v1 = vadd.f32 %v1373_v61, %v1372_v24  ;;  %v7464_v24 = vld [vmem:[#allocation85_spill] sm:$0xff] }
 0x293   : > { %v1260_v39 = vmul.f32 1.442695, %v1220_v9  ;;  %v3799_v30 = vpop.eup %3798  ;;  %v1262_v57 = vmul.f32 1.442695, %v1221_v28  ;;  %v1374_v25 = vmul.f32 %v3797_v54, %v3535_v20  ;;  %v1190_v19 = vpop.permute.xlu0 %1189  ;;  %vm7465_vm0 = vnez %v7464_v24 }
 0x294   : > { %v1160_v4 = vpop.permute.xlu1 %1159  ;;  %1485 = vadd.xlane.f32.xlu1 %v1484_v1  ;;  %v1375_v58 = vmul.f32 %v3799_v30, %v3536_v63  ;;  %v3538_v51 = vsel %vm7465_vm0, 1.0, %v7402_v36  ;;  %v1280_v54 = vmul.f32 1.442695, %v1230_v44  ;;  %v1234_v5 = vsub.f32 %v7466_v60, %v1190_v19  ;;  %v7467_v1 = vld [vmem:[#allocation68_spill] sm:$0xff] }
 0x295   : > { %v1222_v47 = vsub.f32 %v7459_v52, %v1160_v4  ;;  %v1223_v42 = vsub.f32 %v7463_v29, %v1160_v4  ;;  %3808 = vpow2.f32 %v1260_v39  ;;  %v3539_v39 = vsel %vm7468_vm6, 1.0, %v7402_v36  ;;  %v7469_v30 = vld [vmem:[#allocation76_spill] sm:$0xff] }
 0x296   : > { %v3801_v8 = vpop.eup %3800  ;;  %3810 = vpow2.f32 %v1262_v57  ;;  %v1487_v18 = vadd.f32 %v1375_v58, %v1374_v25  ;;  %v1282_v63 = vmul.f32 1.442695, %v1231_v7  ;;  %v1235_v4 = vsub.f32 %v7469_v30, %v1190_v19 }
 0x297   : > { %v1264_v37 = vmul.f32 1.442695, %v1222_v47  ;;  %v3803_v9 = vpop.eup %3802  ;;  %v1266_v20 = vmul.f32 1.442695, %v1223_v42  ;;  %v1376_v61 = vmul.f32 %v3801_v8, %v3537_v0  ;;  %v7470_v47 = vld [vmem:[#allocation69_spill] sm:$0xff]  ;;  %v3540_v44 = vsel %vm7471_vm2, 1.0, %v7402_v36  ;;  %v1200_v19 = vpop.permute.xlu0 %1199 }
 0x298   : > { %v1165_v28 = vpop.permute.xlu1 %1164  ;;  %1488 = vadd.xlane.f32.xlu0 %v1487_v18  ;;  %v1377_v57 = vmul.f32 %v3803_v9, %v3538_v51  ;;  %v1288_v7 = vmul.f32 1.442695, %v1234_v5  ;;  %v7472_v8 = vld [vmem:[#allocation66_spill] sm:$0xff]  ;;  %v1290_v51 = vmul.f32 1.442695, %v1235_v4  ;;  %v7479_v4 = vld [vmem:[#allocation73_spill] sm:$0xff]  ;;  %vm7494_vm0 = vnez %v7335_v53 }
 0x299   : > { %v1224_v52 = vsub.f32 %v7467_v1, %v1165_v28  ;;  %v1225_v16 = vsub.f32 %v7470_v47, %v1165_v28  ;;  %3812 = vpow2.f32 %v1264_v37  ;;  %v7473_v37 = vld [vmem:[#allocation67_spill] sm:$0xff]  ;;  %v7474_v28 = vld [vmem:[#allocation86_spill] sm:$0xff]  ;;  %vm7496_vm6 = vnez %v7495_v62  ;;  %v7500_v53 = vld [vmem:[#allocation93_spill] sm:$0xff] }
 0x29a   : > { %v3805_v43 = vpop.eup %3804  ;;  %3814 = vpow2.f32 %v1266_v20  ;;  %v1490_v42 = vadd.f32 %v1377_v57, %v1376_v61  ;;  %vm7475_vm3 = vnez %v7474_v28  ;;  %v3542_v61 = vsel %vm7476_vm1, 1.0, %v7402_v36 }
 0x29b   : > { %v1268_v25 = vmul.f32 1.442695, %v1224_v52  ;;  %v3807_v0 = vpop.eup %3806  ;;  %v1270_v29 = vmul.f32 1.442695, %v1225_v16  ;;  %v1378_v58 = vmul.f32 %v3805_v43, %v3539_v39  ;;  %3816 = vpow2.f32 %v1280_v54  ;;  %v7477_v54 = vld [vmem:[#allocation81_spill] sm:$0xff] }
 0x29c   : > { %v1170_v41 = vpop.permute.xlu1 %1169  ;;  %3818 = vpow2.f32 %v1282_v63  ;;  %1491 = vadd.xlane.f32.xlu0 %v1490_v42  ;;  %v1379_v18 = vmul.f32 %v3807_v0, %v3540_v44  ;;  %v3541_v20 = vsel %vm7475_vm3, 1.0, %v7402_v36  ;;  %v1238_v60 = vsub.f32 %v7477_v54, %v1200_v19  ;;  %v7478_v63 = vld [vmem:[#allocation72_spill] sm:$0xff]  ;;  %v7481_v0 = vld [vmem:[#allocation82_spill] sm:$0xff] }
 0x29d   : > { %v1226_v24 = vsub.f32 %v7472_v8, %v1170_v41  ;;  %v1227_v9 = vsub.f32 %v7473_v37, %v1170_v41  ;;  %3820 = vpow2.f32 %v1268_v25  ;;  %v1210_v41 = vpop.permute.xlu0 %1209  ;;  %v7484_v37 = vld [vmem:[#allocation78_spill] sm:$0xff]  ;;  %vm7499_vm2 = vnez %v7347_v22 }
 0x29e   : > { %3822 = vpow2.f32 %v1270_v29  ;;  %v1493_v1 = vadd.f32 %v1379_v18, %v1378_v58  ;;  %v1239_v29 = vsub.f32 %v7481_v0, %v1200_v19  ;;  %v1296_v42 = vmul.f32 1.442695, %v1238_v60 }
 0x29f   : > { %v1272_v50 = vmul.f32 1.442695, %v1226_v24  ;;  %v1274_v5 = vmul.f32 1.442695, %v1227_v9  ;;  %v3809_v39 = vpop.eup %3808  ;;  %3824 = vpow2.f32 %v1288_v7  ;;  %v3544_v7 = vsel %vm7482_vm13, 1.0, %v7402_v36 }
 0x2a0   : > { %v1175_v52 = vpop.permute.xlu1 %1174  ;;  %v3811_v16 = vpop.eup %3810  ;;  %3826 = vpow2.f32 %v1290_v51  ;;  %1494 = vadd.xlane.f32.xlu1 %v1493_v1  ;;  %v1380_v57 = vmul.f32 %v3809_v39, %v3541_v20  ;;  %v7483_v51 = vld [vmem:[#allocation77_spill] sm:$0xff]  ;;  %v3545_v19 = vsel %vm7485_vm15, 1.0, %v7402_v36  ;;  %v7486_v20 = vld [vmem:[#allocation87_spill] sm:$0xff]  ;;  %v1298_v1 = vmul.f32 1.442695, %v1239_v29 }
 0x2a1   : > { %v1228_v30 = vsub.f32 %v7478_v63, %v1175_v52  ;;  %v1229_v47 = vsub.f32 %v7479_v4, %v1175_v52  ;;  %3828 = vpow2.f32 %v1272_v50  ;;  %v1381_v44 = vmul.f32 %v3811_v16, %v3542_v61  ;;  %v7487_v52 = vld [vmem:[#allocation88_spill] sm:$0xff]  ;;  %v7490_v16 = vld [vmem:[#allocation83_spill] sm:$0xff] }
 0x2a2   : > { %3830 = vpow2.f32 %v1274_v5  ;;  %v1242_v61 = vsub.f32 %v7486_v20, %v1210_v41  ;;  %v1243_v39 = vsub.f32 %v7487_v52, %v1210_v41  ;;  %v3547_v0 = vsel %vm7492_vm4, 1.0, %v7402_v36  ;;  %v7498_v20 = vld [vmem:[#allocation90_spill] sm:$0xff] }
 0x2a3   : > { %v1276_v43 = vmul.f32 1.442695, %v1228_v30  ;;  %v1278_v25 = vmul.f32 1.442695, %v1229_v47  ;;  %v3813_v8 = vpop.eup %3812  ;;  %v1496_v24 = vadd.f32 %v1381_v44, %v1380_v57  ;;  %v7488_v30 = vld [vmem:[#allocation91_spill] sm:$0xff]  ;;  %v3551_v29 = vsel %vm7493_vm14, 1.0, %v7402_v36 }
 0x2a4   : > { %v1185_v58 = vpop.permute.xlu1 %1184  ;;  %v3815_v18 = vpop.eup %3814  ;;  %v1382_v50 = vmul.f32 %v3813_v8, %v3543_v35  ;;  %vm7489_vm7 = vnez %v7488_v30  ;;  %v7491_v35 = vld [vmem:[#allocation84_spill] sm:$0xff]  ;;  %v1304_v41 = vmul.f32 1.442695, %v1242_v61  ;;  %vm7501_vm3 = vnez %v7500_v53 }
 0x2a5   : > { %3832 = vpow2.f32 %v1276_v43  ;;  %v1232_v12 = vsub.f32 %v7483_v51, %v1185_v58  ;;  %v1233_v9 = vsub.f32 %v7484_v37, %v1185_v58  ;;  %v3817_v28 = vpop.eup %3816  ;;  %1497 = vadd.xlane.f32.xlu0 %v1496_v24  ;;  %v1383_v60 = vmul.f32 %v3815_v18, %v3544_v7 }
 0x2a6   : > { %3834 = vpow2.f32 %v1278_v25  ;;  %v3819_v5 = vpop.eup %3818  ;;  %v3546_v4 = vsel %vm7489_vm7, 1.0, %v7402_v36  ;;  %v1306_v51 = vmul.f32 1.442695, %v1243_v39  ;;  %v3548_v37 = vsel %vm7494_vm0, 1.0, %v7402_v36 }
 0x2a7   : > { %v1284_v55 = vmul.f32 1.442695, %v1232_v12  ;;  %v1286_v54 = vmul.f32 1.442695, %v1233_v9  ;;  %3836 = vpow2.f32 %v1296_v42  ;;  %v3821_v47 = vpop.eup %3820  ;;  %v1499_v40 = vadd.f32 %v1383_v60, %v1382_v50  ;;  %v7497_v50 = vld [vmem:[#allocation89_spill] sm:$0xff] }
 0x2a8   : > { %v1195_v63 = vpop.permute.xlu1 %1194  ;;  %v3823_v25 = vpop.eup %3822  ;;  %v1384_v44 = vmul.f32 %v3821_v47, %v3545_v19  ;;  %v3549_v9 = vsel %vm7496_vm6, 1.0, %v7402_v36  ;;  %v3552_v60 = vsel %vm7499_vm2, 1.0, %v7402_v36  ;;  %v1390_v47 = vmul.f32 %v3817_v28, %v3551_v29  ;;  %v7505_v28 = vld [vmem:[#allocation95_spill] sm:$0xff] }
 0x2a9   : > { %3838 = vpow2.f32 %v1284_v55  ;;  %v1236_v57 = vsub.f32 %v7490_v16, %v1195_v63  ;;  %v1237_v43 = vsub.f32 %v7491_v35, %v1195_v63  ;;  %v3825_v42 = vpop.eup %3824  ;;  %1500 = vadd.xlane.f32.xlu1 %v1499_v40  ;;  %v1385_v8 = vmul.f32 %v3823_v25, %v3546_v4  ;;  %v7502_v16 = vld [vmem:[#allocation94_spill] sm:$0xff] }
 0x2aa   : > { %3840 = vpow2.f32 %v1286_v54  ;;  %v3827_v24 = vpop.eup %3826  ;;  %vm7503_vm1 = vnez %v7502_v16  ;;  %v1391_v35 = vmul.f32 %v3819_v5, %v3552_v60  ;;  %vm7506_vm13 = vnez %v7505_v28  ;;  %v1594_v28 = vld [vmem:[#allocation4 + $0x68] sm:$0xff] }
 0x2ab   : > { %v1292_v58 = vmul.f32 1.442695, %v1236_v57  ;;  %v1294_v7 = vmul.f32 1.442695, %v1237_v43  ;;  %3842 = vpow2.f32 %v1298_v1  ;;  %v3829_v6 = vpop.eup %3828  ;;  %v1502_v18 = vadd.f32 %v1385_v8, %v1384_v44 }
 0x2ac   : > { %v1205_v12 = vpop.permute.xlu1 %1204  ;;  %v3831_v55 = vpop.eup %3830  ;;  %v1386_v54 = vmul.f32 %v3829_v6, %v3547_v0  ;;  %v3550_v1 = vsel %vm7501_vm3, 1.0, %v7402_v36  ;;  %v3553_v57 = vsel %vm7503_vm1, 1.0, %v7402_v36  ;;  %v3555_v44 = vsel %vm5294_vm9, 1.0, %v7402_v36 }
 0x2ad   : > { %3844 = vpow2.f32 %v1292_v58  ;;  %v1240_v19 = vsub.f32 %v7497_v50, %v1205_v12  ;;  %v1241_v61 = vsub.f32 %v7498_v20, %v1205_v12  ;;  %1503 = vadd.xlane.f32.xlu0 %v1502_v18  ;;  %v1387_v30 = vmul.f32 %v3831_v55, %v3548_v37 }
 0x2ae   : > { %3846 = vpow2.f32 %v1294_v7  ;;  %v3556_v0 = vsel %vm7504_vm8, 1.0, %v7402_v36  ;;  %v3554_v29 = vsel %vm7506_vm13, 1.0, %v7402_v36  ;;  %vm7507_vm15 = vnez %v7253_v46 }
 0x2af   : > { %v3833_v52 = vpop.eup %3832  ;;  %3848 = vpow2.f32 %v1304_v41  ;;  %v1300_v39 = vmul.f32 1.442695, %v1240_v19  ;;  %v1302_v63 = vmul.f32 1.442695, %v1241_v61  ;;  %v1505_v22 = vadd.f32 %v1387_v30, %v1386_v54 }
 0x2b0   : > { %v3835_v4 = vpop.eup %3834  ;;  %3850 = vpow2.f32 %v1306_v51  ;;  %v1388_v40 = vmul.f32 %v3833_v52, %v3549_v9  ;;  %v3557_v8 = vsel %vm7507_vm15, 1.0, %v7402_v36  ;;  %v1511_v51 = vadd.f32 %v1391_v35, %v1390_v47  ;;  %v1719_v35 = vld [vmem:[#allocation5 + $0x50] sm:$0xff] }
 0x2b1   : > { %3852 = vpow2.f32 %v1300_v39  ;;  %v1389_v43 = vmul.f32 %v3835_v4, %v3550_v1  ;;  %v3837_v25 = vpop.eup %3836  ;;  %1506 = vadd.xlane.f32.xlu1 %v1505_v22  ;;  %v1394_v14 = vmul.f32 %v3825_v42, %v3555_v44  ;;  %v1395_v12 = vmul.f32 %v3827_v24, %v3556_v0  ;;  %v1721_v44 = vld [vmem:[#allocation5 + $0x60] sm:$0xff] }
 0x2b2   : > { %3854 = vpow2.f32 %v1302_v63  ;;  %vm7508_vm9 = vnez %v7405_v13  ;;  %v3560_v9 = vsel %vm5563_vm5, 1.0, %v7402_v36  ;;  %vm7509_vm7 = vnez %v7262_v34 }
 0x2b3   : > { %v3839_v41 = vpop.eup %3838  ;;  %v1508_v58 = vadd.f32 %v1389_v43, %v1388_v40  ;;  %v3559_v62 = vsel %vm7508_vm9, 1.0, %v7402_v36  ;;  %v3558_v6 = vsel %vm7509_vm7, 1.0, %v7402_v36  ;;  %vm7510_vm4 = vnez %v7265_v10 }
 0x2b4   : > { %v3841_v7 = vpop.eup %3840  ;;  %v1392_v5 = vmul.f32 %v3839_v41, %v3553_v57  ;;  %v3561_v24 = vsel %vm7510_vm4, 1.0, %v7402_v36  ;;  %v1517_v13 = vadd.f32 %v1395_v12, %v1394_v14  ;;  %v1398_v20 = vmul.f32 %v3837_v25, %v3559_v62 }
 0x2b5   : > { %1509 = vadd.xlane.f32.xlu0 %v1508_v58  ;;  %v1393_v37 = vmul.f32 %v3841_v7, %v3554_v29  ;;  %v3843_v56 = vpop.eup %3842  ;;  %1512 = vadd.xlane.f32.xlu1 %v1511_v51  ;;  %v3563_v34 = vsel %vm5590_vm11, 1.0, %v7402_v36  ;;  %v3564_v54 = vsel %vm5596_vm10, 1.0, %v7402_v36  ;;  %vm7511_vm5 = vnez %v7268_v59  ;;  %v1596_v29 = vld [vmem:[#allocation4 + $0x78] sm:$0xff]  ;;  %v1710_v7 = vld [vmem:[#allocation5 + $0x8] sm:$0xff] }
 0x2b6   : > { %v1399_v61 = vmul.f32 %v3843_v56, %v3560_v9  ;;  %v3562_v10 = vsel %vm7511_vm5, 1.0, %v7402_v36  ;;  %vm7512_vm11 = vnez %v7318_v3  ;;  %vm7514_vm10 = vnez %v7513_v27  ;;  %v1712_v51 = vld [vmem:[#allocation5 + $0x18] sm:$0xff] }
 0x2b7   : > { %v3845_v46 = vpop.eup %3844  ;;  %v1514_v18 = vadd.f32 %v1393_v37, %v1392_v5  ;;  %v3593_v45 = vsel %vm7512_vm11, 1.0, %v7402_v36  ;;  %v3594_v47 = vsel %vm7514_vm10, 1.0, %v7402_v36  ;;  %v3595_v40 = vsel %vm5612_vm12, 1.0, %v7402_v36  ;;  %v1714_v37 = vld [vmem:[#allocation5 + $0x28] sm:$0xff]  ;;  %v1716_v9 = vld [vmem:[#allocation5 + $0x38] sm:$0xff] }
 0x2b8   : > { %v3847_v50 = vpop.eup %3846  ;;  %v1396_v42 = vmul.f32 %v3845_v46, %v3557_v8  ;;  %v1523_v39 = vadd.f32 %v1399_v61, %v1398_v20  ;;  %vm7515_vm14 = vnez %v7430_v26  ;;  %v1831_v22 = vadd.f32 %v3594_v47, %v3593_v45  ;;  %v1722_v20 = vld [vmem:[#allocation5 + $0x68] sm:$0xff]  ;;  %v1452_v45 = vld [vmem:[#allocation3] sm:$0xff] }
 0x2b9   : > { %v3849_v19 = vpop.eup %3848  ;;  %1515 = vadd.xlane.f32.xlu0 %v1514_v18  ;;  %v1397_v32 = vmul.f32 %v3847_v50, %v3558_v6  ;;  %1518 = vadd.xlane.f32.xlu1 %v1517_v13  ;;  %v3596_v16 = vsel %vm7515_vm14, 1.0, %v7402_v36  ;;  %vm7516_vm0 = vcmask 7168   ;;  %v1718_v18 = vld [vmem:[#allocation5 + $0x48] sm:$0xff] }
 0x2ba   : > { %v3851_v55 = vpop.eup %3850  ;;  %v1402_v63 = vmul.f32 %v3849_v19, %v3563_v34  ;;  %v1834_v3 = vadd.f32 %v3596_v16, %v3595_v40  ;;  %vm7517_vm12 = vmmov %vm7516_vm0  ;;  %v1453_v40 = vld [vmem:[#allocation3 + $0x8] sm:$0xff] }
 0x2bb   : > { %v3853_v60 = vpop.eup %3852  ;;  %v1520_v53 = vadd.f32 %v1397_v32, %v1396_v42  ;;  %v1403_v30 = vmul.f32 %v3851_v55, %v3564_v54  ;;  %vm7518_vm6 = vmmov %vm7516_vm0  ;;  %v7527_v55 = vsub.f32 %v5366_v2, %v5372_v17  ;;  %v7528_v54 = vsub.f32 %v5376_v23, %v5391_v21  ;;  %v7534_v2 = vld [vmem:[#allocation101_spill] sm:$0xff]  ;;  %v7535_v17 = vld [vmem:[#allocation103_spill] sm:$0xff] }
 0x2bc   : > { %v3855_v1 = vpop.eup %3854  ;;  %v1400_v52 = vmul.f32 %v3853_v60, %v3561_v24  ;;  %vm7519_vm2 = vmmov %vm7516_vm0  ;;  %v1720_v24 = vld [vmem:[#allocation5 + $0x58] sm:$0xff]  ;;  %v7529_v60 = vld [vmem:[#allocation97_spill] sm:$0xff]  ;;  %v7536_v27 = vsub.f32 %v7534_v2, %v7535_v17 }
 0x2bd   : > { %1521 = vadd.xlane.f32.xlu0 %v1520_v53  ;;  %v1401_v4 = vmul.f32 %v3855_v1, %v3562_v10  ;;  %1524 = vadd.xlane.f32.xlu1 %v1523_v39  ;;  %v1529_v57 = vadd.f32 %v1403_v30, %v1402_v63  ;;  %vm7520_vm3 = vmmov %vm7516_vm0  ;;  %v1420_v34 = vmul.f32 1.442695, %v7527_v55  ;;  %v1422_v10 = vmul.f32 1.442695, %v7528_v54  ;;  %v7532_v39 = vld [vmem:[#allocation99_spill] sm:$0xff]  ;;  %v7556_v55 = vld [vmem:[#allocation114_spill] sm:$0xff] }
 0x2be   : > { %vm7521_vm1 = vmmov %vm7516_vm0  ;;  %v7530_v53 = vsub.f32 %v5364_v33, %v7529_v60  ;;  %v1428_v47 = vmul.f32 1.442695, %v7536_v27  ;;  %v7537_v33 = vld [vmem:[#allocation100_spill] sm:$0xff]  ;;  %v1458_v27 = vld [vmem:[#allocation3 + $0x30] sm:$0xff] }
 0x2bf   : > { %v1526_v59 = vadd.f32 %v1401_v4, %v1400_v52  ;;  %vm7522_vm8 = vmmov %vm7516_vm0  ;;  %3856 = vpow2.f32 %v1420_v34  ;;  %v7531_v52 = vld [vmem:[#allocation98_spill] sm:$0xff]  ;;  %v1457_v60 = vld [vmem:[#allocation3 + $0x28] sm:$0xff] }
 0x2c0   : > { %vm7523_vm13 = vmmov %vm7516_vm0  ;;  %v1424_v1 = vmul.f32 1.442695, %v7530_v53  ;;  %3858 = vpow2.f32 %v1422_v10  ;;  %v7533_v63 = vsub.f32 %v7531_v52, %v7532_v39  ;;  %v7558_v53 = vld [vmem:[#allocation111_spill] sm:$0xff] }
 0x2c1   : > { %1527 = vadd.xlane.f32.xlu0 %v1526_v59  ;;  %1530 = vadd.xlane.f32.xlu1 %v1529_v57  ;;  %vm7524_vm15 = vmmov %vm7516_vm0  ;;  %v7538_v57 = vld [vmem:[#allocation102_spill] sm:$0xff] }
 0x2c2   : > { %vm7525_vm9 = vmmov %vm7516_vm0  ;;  %3860 = vpow2.f32 %v1424_v1  ;;  %v1426_v30 = vmul.f32 1.442695, %v7533_v63  ;;  %v7559_v1 = vld [vmem:[#allocation113_spill] sm:$0xff] }
 0x2c3   : > { %vm7526_vm7 = vmmov %vm7516_vm0  ;;  %v7560_v52 = vsub.f32 %v7558_v53, %v7559_v1 }
 0x2c4   : > { %3862 = vpow2.f32 %v1426_v30  ;;  %vm7540_vm4 = vmmov %vm7516_vm0 }
 0x2c5   : > { %1832 = vadd.xlane.f32.xlu0 %v1831_v22  ;;  %1835 = vadd.xlane.f32.xlu1 %v1834_v3  ;;  %v7539_v22 = vsub.f32 %v7537_v33, %v7538_v57  ;;  %3864 = vpow2.f32 %v1428_v47  ;;  %vm7544_vm5 = vmmov %vm7516_vm0  ;;  %v1442_v39 = vmul.f32 1.442695, %v7560_v52  ;;  %v7567_v57 = vld [vmem:[#allocation119_spill] sm:$0xff] }
 0x2c6   : > { %vm7548_vm11 = vmmov %vm7516_vm0 }
 0x2c7   : > { %v1430_v3 = vmul.f32 1.442695, %v7539_v22  ;;  %vm7554_vm10 = vmmov %vm7516_vm0  ;;  %v7568_v22 = vld [vmem:[#allocation121_spill] sm:$0xff] }
 0x2c8   : > { %vm7561_vm14 = vmmov %vm7516_vm0 }
 0x2c9   : > { %v3857_v4 = vpop.eup %3856  ;;  %3866 = vpow2.f32 %v1430_v3  ;;  %v7569_v3 = vsub.f32 %v7567_v57, %v7568_v22 }
 0x2ca   : > { %v1468_v59 = vmul.f32 %v3857_v4, %v1452_v45  ;;  %v3859_v23 = vpop.eup %3858  ;;  %v7562_v4 = vld [vmem:[#allocation116_spill] sm:$0xff] }
 0x2cb   : > { %v7563_v45 = vsub.f32 %v7562_v4, %v5488_v11  ;;  %v1459_v11 = vld [vmem:[#allocation3 + $0x38] sm:$0xff] }
 0x2cc   : > { %v1821_v43 = vpop.xlane.xlu0 %1820 }
 0x2cd   : > { %v1847_v25 = vadd.f32 %v1821_v43, %v1719_v35  ;;  %v1469_v35 = vmul.f32 %v3859_v23, %v1453_v40  ;;  %v3861_v43 = vpop.eup %3860  ;;  %v1444_v2 = vmul.f32 1.442695, %v7563_v45  ;;  %v7565_v23 = vld [vmem:[#allocation117_spill] sm:$0xff] }
 0x2cf   : > { %1863 = vst.msk [vmem:[#allocation5 + $0x50] sm:$0xff] %vm7516_vm0, %v1847_v25 }
 0x2d4   : > { %v1827_v0 = vpop.xlane.xlu0 %1826 }
 0x2d5   : > { %v1849_v38 = vadd.f32 %v1827_v0, %v1721_v44  ;;  %v1454_v44 = vld [vmem:[#allocation3 + $0x10] sm:$0xff] }
 0x2d7   : > { %1865 = vst.msk [vmem:[#allocation5 + $0x60] sm:$0xff] %vm7517_vm12, %v1849_v38  ;;  %v7541_v38 = vld [vmem:[#allocation105_spill] sm:$0xff]  ;;  %vm7573_vm12 = vmmov %vm7516_vm0 }
 0x2df   : > { %v1670_v26 = vpop.xlane.xlu1 %1669 }
 0x2e0   : > { %v1690_v36 = vadd.f32 %v1670_v26, %v1594_v28  ;;  %v7542_v28 = vld [vmem:[#allocation107_spill] sm:$0xff] }
 0x2e1   : > { %v7543_v26 = vsub.f32 %v7541_v38, %v7542_v28  ;;  %v7571_v38 = vld [vmem:[#allocation120_spill] sm:$0xff] }
 0x2e2   : > { %1706 = vst.msk [vmem:[#allocation4 + $0x68] sm:$0xff] %vm7518_vm6, %v1690_v36  ;;  %vm7574_vm6 = vmmov %vm7516_vm0 }
 0x2e3   : > { %v1432_v36 = vmul.f32 1.442695, %v7543_v26 }
 0x2e5   : > { %3868 = vpow2.f32 %v1432_v36  ;;  %v1460_v36 = vld [vmem:[#allocation3 + $0x40] sm:$0xff] }
 0x2e6   : > { %v1676_v41 = vpop.xlane.xlu1 %1675 }
 0x2e7   : > { %v1692_v58 = vadd.f32 %v1676_v41, %v1596_v29  ;;  %v1470_v29 = vmul.f32 %v3861_v43, %v1454_v44  ;;  %v3863_v41 = vpop.eup %3862 }
 0x2e9   : > { %1708 = vst.msk [vmem:[#allocation4 + $0x78] sm:$0xff] %vm7519_vm2, %v1692_v58  ;;  %vm7575_vm2 = vmmov %vm7516_vm0 }
 0x2ea   : > { %v1794_v5 = vpop.xlane.xlu1 %1793 }
 0x2eb   : > { %v1838_v8 = vadd.f32 %v1794_v5, %v1710_v7  ;;  %v1455_v7 = vld [vmem:[#allocation3 + $0x18] sm:$0xff] }
 0x2ed   : > { %1854 = vst.msk [vmem:[#allocation5 + $0x8] sm:$0xff] %vm7520_vm3, %v1838_v8  ;;  %v7545_v8 = vld [vmem:[#allocation104_spill] sm:$0xff]  ;;  %vm7576_vm3 = vmmov %vm7516_vm0 }
 0x2ee   : > { %v1800_v14 = vpop.xlane.xlu1 %1799 }
 0x2ef   : > { %v1840_v12 = vadd.f32 %v1800_v14, %v1712_v51  ;;  %v7546_v51 = vld [vmem:[#allocation106_spill] sm:$0xff] }
 0x2f0   : > { %v7547_v14 = vsub.f32 %v7545_v8, %v7546_v51 }
 0x2f1   : > { %1856 = vst.msk [vmem:[#allocation5 + $0x18] sm:$0xff] %vm7521_vm1, %v1840_v12  ;;  %vm7577_vm1 = vmmov %vm7516_vm0 }
 0x2f2   : > { %v1806_v56 = vpop.xlane.xlu1 %1805  ;;  %v1434_v12 = vmul.f32 1.442695, %v7547_v14 }
 0x2f3   : > { %v1842_v62 = vadd.f32 %v1806_v56, %v1714_v37  ;;  %v1471_v37 = vmul.f32 %v3863_v41, %v1455_v7  ;;  %v1461_v7 = vld [vmem:[#allocation3 + $0x48] sm:$0xff] }
 0x2f4   : > { %3870 = vpow2.f32 %v1434_v12  ;;  %v1462_v12 = vld [vmem:[#allocation3 + $0x50] sm:$0xff] }
 0x2f5   : > { %1858 = vst.msk [vmem:[#allocation5 + $0x28] sm:$0xff] %vm7522_vm8, %v1842_v62  ;;  %v3865_v62 = vpop.eup %3864  ;;  %vm7578_vm8 = vmmov %vm7516_vm0 }
 0x2f6   : > { %v1812_v6 = vpop.xlane.xlu1 %1811 }
 0x2f7   : > { %v1844_v46 = vadd.f32 %v1812_v6, %v1716_v9  ;;  %v7549_v9 = vld [vmem:[#allocation109_spill] sm:$0xff] }
 0x2f8   : > { %v7550_v6 = vsub.f32 %v7549_v9, %v5448_v15 }
 0x2f9   : > { %1860 = vst.msk [vmem:[#allocation5 + $0x38] sm:$0xff] %vm7523_vm13, %v1844_v46  ;;  %vm7579_vm13 = vmmov %vm7516_vm0 }
 0x2fa   : > { %v1818_v50 = vpop.xlane.xlu1 %1817  ;;  %v1436_v46 = vmul.f32 1.442695, %v7550_v6  ;;  %v1463_v6 = vld [vmem:[#allocation3 + $0x58] sm:$0xff] }
 0x2fb   : > { %v1846_v42 = vadd.f32 %v1818_v50, %v1718_v18  ;;  %v1456_v50 = vld [vmem:[#allocation3 + $0x20] sm:$0xff] }
 0x2fc   : > { %3872 = vpow2.f32 %v1436_v46 }
 0x2fd   : > { %1862 = vst.msk [vmem:[#allocation5 + $0x48] sm:$0xff] %vm7524_vm15, %v1846_v42  ;;  %v7551_v42 = vld [vmem:[#allocation108_spill] sm:$0xff]  ;;  %vm7580_vm15 = vmmov %vm7516_vm0 }
 0x2fe   : > { %v1824_v19 = vpop.xlane.xlu1 %1823 }
 0x2ff   : > { %v1848_v13 = vadd.f32 %v1824_v19, %v1720_v24  ;;  %v7552_v24 = vld [vmem:[#allocation110_spill] sm:$0xff] }
 0x300   : > { %v7553_v19 = vsub.f32 %v7551_v42, %v7552_v24  ;;  %v1464_v24 = vld [vmem:[#allocation3 + $0x60] sm:$0xff] }
 0x301   : > { %1864 = vst.msk [vmem:[#allocation5 + $0x58] sm:$0xff] %vm7525_vm9, %v1848_v13  ;;  %vm7581_vm9 = vmmov %vm7516_vm0 }
 0x302   : > { %v1830_v61 = vpop.xlane.xlu1 %1829  ;;  %v1438_v13 = vmul.f32 1.442695, %v7553_v19 }
 0x303   : > { %v1850_v32 = vadd.f32 %v1830_v61, %v1722_v20  ;;  %v1472_v20 = vmul.f32 %v3865_v62, %v1456_v50  ;;  %v3867_v61 = vpop.eup %3866 }
 0x304   : > { %3874 = vpow2.f32 %v1438_v13  ;;  %v1473_v63 = vmul.f32 %v3867_v61, %v1457_v60  ;;  %v3869_v30 = vpop.eup %3868  ;;  %v1466_v60 = vld [vmem:[#allocation3 + $0x70] sm:$0xff] }
 0x305   : > { %1866 = vst.msk [vmem:[#allocation5 + $0x68] sm:$0xff] %vm7526_vm7, %v1850_v32  ;;  %v7555_v32 = vld [vmem:[#allocation112_spill] sm:$0xff]  ;;  %v3871_v33 = vpop.eup %3870  ;;  %vm7582_vm7 = vmmov %vm7516_vm0 }
 0x306   : > { %v7557_v34 = vsub.f32 %v7555_v32, %v7556_v55  ;;  %v3873_v44 = vpop.eup %3872  ;;  %v1465_v32 = vld [vmem:[#allocation3 + $0x68] sm:$0xff] }
 0x307   : > { %v1476_v8 = vmul.f32 %v3873_v44, %v1460_v36 }
 0x308   : > { %v1440_v54 = vmul.f32 1.442695, %v7557_v34 }
 0x30a   : > { %3876 = vpow2.f32 %v1440_v54 }
 0x30b   : > { %3878 = vpow2.f32 %v1442_v39  ;;  %v1467_v39 = vld [vmem:[#allocation3 + $0x78] sm:$0xff] }
 0x30c   : > { %3880 = vpow2.f32 %v1444_v2 }
 0x30e   : > { %v3875_v41 = vpop.eup %3874 }
 0x314   : > { %v3877_v51 = vpop.eup %3876 }
 0x315   : > { %v3879_v62 = vpop.eup %3878 }
 0x316   : > { %v3881_v50 = vpop.eup %3880  ;;  %v1479_v13 = vmul.f32 %v3879_v62, %v1463_v6 }
 0x317   : > { %v1480_v34 = vmul.f32 %v3881_v50, %v1464_v24 }
 0x321   : > { %v1486_v21 = vpop.xlane.xlu1 %1485 }
 0x322   : > { %v1532_v16 = vadd.f32 %v1486_v21, %v1468_v59  ;;  %v7564_v59 = vld [vmem:[#allocation115_spill] sm:$0xff] }
 0x323   : > { %v7566_v21 = vsub.f32 %v7564_v59, %v7565_v23  ;;  %v1724_v23 = vld [vmem:[#allocation5 + $0x78] sm:$0xff] }
 0x324   : > { %1549 = vst.msk [vmem:[#allocation3] sm:$0xff] %vm7540_vm4, %v1532_v16  ;;  %v1474_v16 = vmul.f32 %v3869_v30, %v1458_v27  ;;  %v1723_v27 = vld [vmem:[#allocation5 + $0x70] sm:$0xff]  ;;  %vm7583_vm4 = vmmov %vm7516_vm0 }
 0x325   : > { %v1489_v25 = vpop.xlane.xlu0 %1488  ;;  %v1446_v40 = vmul.f32 1.442695, %v7566_v21 }
 0x326   : > { %v1533_v0 = vadd.f32 %v1489_v25, %v1469_v35  ;;  %v1448_v35 = vmul.f32 1.442695, %v7569_v3 }
 0x327   : > { %3882 = vpow2.f32 %v1446_v40 }
 0x328   : > { %1550 = vst.msk [vmem:[#allocation3 + $0x8] sm:$0xff] %vm7544_vm5, %v1533_v0  ;;  %v7570_v0 = vld [vmem:[#allocation118_spill] sm:$0xff]  ;;  %3884 = vpow2.f32 %v1448_v35  ;;  %vm7584_vm5 = vmmov %vm7516_vm0 }
 0x329   : > { %v1492_v58 = vpop.xlane.xlu0 %1491  ;;  %v7572_v28 = vsub.f32 %v7570_v0, %v7571_v38 }
 0x32a   : > { %v1534_v5 = vadd.f32 %v1492_v58, %v1470_v29  ;;  %v1475_v29 = vmul.f32 %v3871_v33, %v1459_v11 }
 0x32b   : > { %v1450_v26 = vmul.f32 1.442695, %v7572_v28 }
 0x32c   : > { %1551 = vst.msk [vmem:[#allocation3 + $0x10] sm:$0xff] %vm7548_vm11, %v1534_v5 }
 0x32d   : > { %v1495_v56 = vpop.xlane.xlu1 %1494  ;;  %3886 = vpow2.f32 %v1450_v26 }
 0x32e   : > { %v1535_v18 = vadd.f32 %v1495_v56, %v1471_v37  ;;  %v1477_v56 = vmul.f32 %v3875_v41, %v1461_v7 }
 0x330   : > { %1552 = vst.msk [vmem:[#allocation3 + $0x18] sm:$0xff] %vm7554_vm10, %v1535_v18  ;;  %v1478_v18 = vmul.f32 %v3877_v51, %v1462_v12 }
 0x332   : > { %v1498_v10 = vpop.xlane.xlu0 %1497 }
 0x333   : > { %v1536_v15 = vadd.f32 %v1498_v10, %v1472_v20  ;;  %v3883_v20 = vpop.eup %3882 }
 0x334   : > { %v3885_v54 = vpop.eup %3884  ;;  %v1481_v53 = vmul.f32 %v3883_v20, %v1465_v32 }
 0x335   : > { %1553 = vst.msk [vmem:[#allocation3 + $0x20] sm:$0xff] %vm7561_vm14, %v1536_v15  ;;  %v1482_v30 = vmul.f32 %v3885_v54, %v1466_v60 }
 0x336   : > { %v1501_v17 = vpop.xlane.xlu1 %1500 }
 0x337   : > { %v1537_v47 = vadd.f32 %v1501_v17, %v1473_v63  ;;  %v3887_v1 = vpop.eup %3886 }
 0x338   : > { %v1483_v2 = vmul.f32 %v3887_v1, %v1467_v39 }
 0x339   : > { %1554 = vst.msk [vmem:[#allocation3 + $0x28] sm:$0xff] %vm7516_vm0, %v1537_v47 }
 0x33a   : > { %v1504_v43 = vpop.xlane.xlu0 %1503 }
 0x33b   : > { %v1538_v25 = vadd.f32 %v1504_v43, %v1474_v16 }
 0x33d   : > { %1555 = vst.msk [vmem:[#allocation3 + $0x30] sm:$0xff] %vm7573_vm12, %v1538_v25 }
 0x33e   : > { %v1507_v58 = vpop.xlane.xlu1 %1506 }
 0x33f   : > { %v1539_v5 = vadd.f32 %v1507_v58, %v1475_v29 }
 0x341   : > { %1556 = vst.msk [vmem:[#allocation3 + $0x38] sm:$0xff] %vm7574_vm6, %v1539_v5 }
 0x342   : > { %v1510_v14 = vpop.xlane.xlu0 %1509  ;;  %v1513_v9 = vpop.xlane.xlu1 %1512 }
 0x343   : > { %v1540_v37 = vadd.f32 %v1510_v14, %v1476_v8  ;;  %v1541_v46 = vadd.f32 %v1513_v9, %v1477_v56 }
 0x345   : > { %1557 = vst.msk [vmem:[#allocation3 + $0x40] sm:$0xff] %vm7575_vm2, %v1540_v37 }
 0x346   : > { %v1516_v42 = vpop.xlane.xlu0 %1515  ;;  %1558 = vst.msk [vmem:[#allocation3 + $0x48] sm:$0xff] %vm7576_vm3, %v1541_v46  ;;  %v1519_v61 = vpop.xlane.xlu1 %1518 }
 0x347   : > { %v1542_v19 = vadd.f32 %v1516_v42, %v1478_v18  ;;  %v1543_v55 = vadd.f32 %v1519_v61, %v1479_v13 }
 0x349   : > { %1559 = vst.msk [vmem:[#allocation3 + $0x50] sm:$0xff] %vm7577_vm1, %v1542_v19 }
 0x34a   : > { %v1522_v10 = vpop.xlane.xlu0 %1521  ;;  %1560 = vst.msk [vmem:[#allocation3 + $0x58] sm:$0xff] %vm7578_vm8, %v1543_v55  ;;  %v1525_v52 = vpop.xlane.xlu1 %1524 }
 0x34b   : > { %v1544_v15 = vadd.f32 %v1522_v10, %v1480_v34  ;;  %v1545_v63 = vadd.f32 %v1525_v52, %v1481_v53 }
 0x34d   : > { %1561 = vst.msk [vmem:[#allocation3 + $0x60] sm:$0xff] %vm7579_vm13, %v1544_v15 }
 0x34e   : > { %v1528_v4 = vpop.xlane.xlu0 %1527  ;;  %1562 = vst.msk [vmem:[#allocation3 + $0x68] sm:$0xff] %vm7580_vm15, %v1545_v63  ;;  %v1531_v17 = vpop.xlane.xlu1 %1530 }
 0x34f   : > { %v1546_v45 = vadd.f32 %v1528_v4, %v1482_v30  ;;  %v1547_v47 = vadd.f32 %v1531_v17, %v1483_v2 }
 0x351   : > { %1563 = vst.msk [vmem:[#allocation3 + $0x70] sm:$0xff] %vm7581_vm9, %v1546_v45 }
 0x352   : > { %v1833_v59 = vpop.xlane.xlu0 %1832  ;;  %1564 = vst.msk [vmem:[#allocation3 + $0x78] sm:$0xff] %vm7582_vm7, %v1547_v47  ;;  %v1836_v40 = vpop.xlane.xlu1 %1835 }
 0x353   : > { %v1851_v21 = vadd.f32 %v1833_v59, %v1723_v27  ;;  %v1852_v16 = vadd.f32 %v1836_v40, %v1724_v23 }
 0x355   : > { %1867 = vst.msk [vmem:[#allocation5 + $0x70] sm:$0xff] %vm7583_vm4, %v1851_v21 }
 0x356   : > { %1868 = vst.msk [vmem:[#allocation5 + $0x78] sm:$0xff] %vm7584_vm5, %v1852_v16 }
 0x357 PF: > { %1871 = sbr.rel (%p4489_p12) target bundleno = 1349 (0x545), region = 52 }
 0x35e   : > { %v7585_v33 = vld [vmem:[#allocation33_spill] sm:$0xff]  ;;  %v7586_v57 = vld [vmem:[#allocation31_spill] sm:$0xff]  ;;  %v7597_v5 = vld [vmem:[#allocation52_spill] sm:$0xff]  ;;  %v4165_v61 = vmov 0  }
 0x35f   : > { %v1878_v22 = vmax.f32 %v7586_v57, %v7585_v33  ;;  %v7587_v3 = vld [vmem:[#allocation25_spill] sm:$0xff]  ;;  %v7588_v35 = vld [vmem:[#allocation23_spill] sm:$0xff]  ;;  %v7601_v56 = vld [vmem:[#allocation30_spill] sm:$0xff]  ;;  %3889 = vset.pattern.permute.xlu0 %v4165_v61  ;;  %3888 = vset.pattern.permute.xlu1 %v4165_v61 }
 0x360   : > { %v1872_v43 = vmax.f32 %v7588_v35, %v7587_v3  ;;  %v7589_v11 = vld [vmem:[#allocation37_spill] sm:$0xff]  ;;  %v7590_v25 = vld [vmem:[#allocation35_spill] sm:$0xff]  ;;  %v7602_v62 = vld [vmem:[#allocation28_spill] sm:$0xff] }
 0x361   : > { %1879 = vmax.xlane.f32.xlu1 %v1878_v22  ;;  %v1881_v44 = vmax.f32 %v7590_v25, %v7589_v11  ;;  %v7591_v0 = vld [vmem:[#allocation29_spill] sm:$0xff]  ;;  %v7592_v38 = vld [vmem:[#allocation27_spill] sm:$0xff]  ;;  %v1899_v9 = vmax.f32 %v7602_v62, %v7601_v56  ;;  %v7603_v6 = vld [vmem:[#allocation26_spill] sm:$0xff] }
 0x362   : > { %1873 = vmax.xlane.f32.xlu0 %v1872_v43  ;;  %v1875_v28 = vmax.f32 %v7592_v38, %v7591_v0  ;;  %v7593_v26 = vld [vmem:[#allocation45_spill] sm:$0xff]  ;;  %v7594_v36 = vld [vmem:[#allocation43_spill] sm:$0xff]  ;;  %v7604_v46 = vld [vmem:[#allocation24_spill] sm:$0xff] }
 0x363   : > { %v1887_v29 = vmax.f32 %v7594_v36, %v7593_v26  ;;  %v7595_v41 = vld [vmem:[#allocation41_spill] sm:$0xff]  ;;  %v7596_v58 = vld [vmem:[#allocation39_spill] sm:$0xff]  ;;  %v1896_v18 = vmax.f32 %v7604_v46, %v7603_v6  ;;  %v7605_v50 = vld [vmem:[#allocation38_spill] sm:$0xff] }
 0x364   : > { %v1884_v7 = vmax.f32 %v7596_v58, %v7595_v41  ;;  %v7598_v8 = vld [vmem:[#allocation51_spill] sm:$0xff]  ;;  %v7599_v14 = vld [vmem:[#allocation49_spill] sm:$0xff]  ;;  %v7606_v42 = vld [vmem:[#allocation36_spill] sm:$0xff] }
 0x365   : > { %1882 = vmax.xlane.f32.xlu1 %v1881_v44  ;;  %v1893_v51 = vmax.f32 %v7598_v8, %v7597_v5  ;;  %v7600_v12 = vld [vmem:[#allocation47_spill] sm:$0xff]  ;;  %v1905_v24 = vmax.f32 %v7606_v42, %v7605_v50  ;;  %v7607_v19 = vld [vmem:[#allocation34_spill] sm:$0xff]  ;;  %v7608_v13 = vld [vmem:[#allocation32_spill] sm:$0xff] }
 0x366   : > { %1876 = vmax.xlane.f32.xlu0 %v1875_v28  ;;  %v1890_v37 = vmax.f32 %v7600_v12, %v7599_v14  ;;  %v1902_v20 = vmax.f32 %v7608_v13, %v7607_v19  ;;  %v7609_v32 = vld [vmem:[#allocation46_spill] sm:$0xff]  ;;  %v7610_v55 = vld [vmem:[#allocation44_spill] sm:$0xff]  ;;  %v7613_v15 = vld [vmem:[#allocation53_spill] sm:$0xff] }
 0x367   : > { %v1911_v34 = vmax.f32 %v7610_v55, %v7609_v32  ;;  %v7611_v54 = vld [vmem:[#allocation42_spill] sm:$0xff]  ;;  %v7612_v10 = vld [vmem:[#allocation40_spill] sm:$0xff]  ;;  %v1917_v53 = vmax.f32 %v4571_v31, %v7613_v15  ;;  %v7622_v59 = vld [vmem:[#allocation7_spill] sm:$0xff] }
 0x368   : > { %v1908_v60 = vmax.f32 %v7612_v10, %v7611_v54  ;;  %v7614_v1 = vld [vmem:[#allocation50_spill] sm:$0xff]  ;;  %v7615_v52 = vld [vmem:[#allocation48_spill] sm:$0xff]  ;;  %vm7623_vm12 = vcmp.eq.s32.totalorder %v7622_v59, %v4404_v48  ;;  %vm7624_vm6 = vcmp.eq.s32.totalorder %v7622_v59, %v4406_v49  ;;  %v7625_v40 = vld [vmem:[#allocation9_spill] sm:$0xff] }
 0x369   : > { %1888 = vmax.xlane.f32.xlu1 %v1887_v29  ;;  %v1914_v39 = vmax.f32 %v7615_v52, %v7614_v1  ;;  %v7616_v63 = vld [vmem:[#allocation8_spill] sm:$0xff]  ;;  %v7619_v45 = vld [vmem:[#allocation10_spill] sm:$0xff]  ;;  %v2325_v23 = vsel %vm7623_vm12, %v7586_v57, 0.0  ;;  %v2326_v21 = vsel %vm7624_vm6, %v7585_v33, 0.0  ;;  %vm7626_vm2 = vcmp.eq.s32.totalorder %v7625_v40, %v4404_v48 }
 0x36a   : > { %1885 = vmax.xlane.f32.xlu0 %v1884_v7  ;;  %vm7617_vm11 = vcmp.eq.s32.totalorder %v7616_v63, %v4404_v48  ;;  %vm7618_vm10 = vcmp.eq.s32.totalorder %v7616_v63, %v4406_v49  ;;  %vm7620_vm14 = vcmp.eq.s32.totalorder %v7619_v45, %v4404_v48  ;;  %vm7621_vm0 = vcmp.eq.s32.totalorder %v7619_v45, %v4406_v49  ;;  %v7628_v28 = vld [vmem:[#allocation12_spill] sm:$0xff] }
 0x36b   : > { %v2321_v30 = vsel %vm7617_vm11, %v7588_v35, 0.0  ;;  %v2322_v4 = vsel %vm7618_vm10, %v7587_v3, 0.0  ;;  %v2323_v2 = vsel %vm7620_vm14, %v7592_v38, 0.0  ;;  %v2324_v17 = vsel %vm7621_vm0, %v7591_v0, 0.0 }
 0x36c   : > { %v2353_v27 = vadd.f32 %v2322_v4, %v2321_v30  ;;  %v2356_v47 = vadd.f32 %v2324_v17, %v2323_v2  ;;  %v2327_v16 = vsel %vm7626_vm2, %v7590_v25, 0.0  ;;  %vm7627_vm3 = vcmp.eq.s32.totalorder %v7625_v40, %v4406_v49  ;;  %v7640_v2 = vld [vmem:[#allocation16_spill] sm:$0xff] }
 0x36d   : > { %1894 = vmax.xlane.f32.xlu1 %v1893_v51  ;;  %v2328_v22 = vsel %vm7627_vm3, %v7589_v11, 0.0  ;;  %v2359_v43 = vadd.f32 %v2326_v21, %v2325_v23  ;;  %vm7629_vm1 = vcmp.eq.s32.totalorder %v7628_v28, %v4404_v48  ;;  %vm7630_vm8 = vcmp.eq.s32.totalorder %v7628_v28, %v4406_v49  ;;  %v7631_v51 = vld [vmem:[#allocation11_spill] sm:$0xff] }
 0x36e   : > { %1891 = vmax.xlane.f32.xlu0 %v1890_v37  ;;  %v2362_v44 = vadd.f32 %v2328_v22, %v2327_v16  ;;  %v2329_v29 = vsel %vm7629_vm1, %v7596_v58, 0.0  ;;  %v2330_v7 = vsel %vm7630_vm8, %v7595_v41, 0.0  ;;  %vm7632_vm13 = vcmp.eq.s32.totalorder %v7631_v51, %v4404_v48 }
 0x36f   : > { %v2331_v37 = vsel %vm7632_vm13, %v7594_v36, 0.0  ;;  %vm7633_vm15 = vcmp.eq.s32.totalorder %v7631_v51, %v4406_v49  ;;  %vm7641_vm11 = vcmp.eq.s32.totalorder %v7640_v2, %v4404_v48  ;;  %vm7642_vm10 = vcmp.eq.s32.totalorder %v7640_v2, %v4406_v49 }
 0x370   : > { %v2337_v17 = vsel %vm7641_vm11, %v7604_v46, 0.0  ;;  %vm7662_vm11 = vcmp.eq.s32.totalorder %v7628_v28, %v4404_v48 }
 0x371   : > { %1900 = vmax.xlane.f32.xlu1 %v1899_v9  ;;  %v2332_v9 = vsel %vm7633_vm15, %v7593_v26, 0.0 }
 0x372   : > { %1897 = vmax.xlane.f32.xlu0 %v1896_v18  ;;  %v2365_v18 = vadd.f32 %v2330_v7, %v2329_v29  ;;  %v7649_v7 = vld [vmem:[#allocation17_spill] sm:$0xff] }
 0x373   : > { %vm7650_vm2 = vcmp.eq.s32.totalorder %v7649_v7, %v4404_v48  ;;  %vm7651_vm3 = vcmp.eq.s32.totalorder %v7649_v7, %v4406_v49 }
 0x375   : > { %1906 = vmax.xlane.f32.xlu1 %v1905_v24  ;;  %v2368_v24 = vadd.f32 %v2332_v9, %v2331_v37  ;;  %v2343_v37 = vsel %vm7650_vm2, %v7606_v42, 0.0  ;;  %v2344_v9 = vsel %vm7651_vm3, %v7605_v50, 0.0  ;;  %vm2272_vm2 = vcmask 7168  }
 0x376   : > { %1903 = vmax.xlane.f32.xlu0 %v1902_v20  ;;  %v7634_v20 = vld [vmem:[#allocation14_spill] sm:$0xff] }
 0x377   : > { %vm7635_vm9 = vcmp.eq.s32.totalorder %v7634_v20, %v4404_v48  ;;  %vm7636_vm7 = vcmp.eq.s32.totalorder %v7634_v20, %v4406_v49 }
 0x378   : > { %v2333_v61 = vsel %vm7635_vm9, %v7600_v12, 0.0  ;;  %vm7658_vm9 = vcmp.eq.s32.totalorder %v7616_v63, %v4404_v48 }
 0x379   : > { %1912 = vmax.xlane.f32.xlu1 %v1911_v34  ;;  %v2334_v34 = vsel %vm7636_vm7, %v7599_v14, 0.0  ;;  %vm7659_vm7 = vcmp.eq.s32.totalorder %v7616_v63, %v4406_v49 }
 0x37a   : > { %1909 = vmax.xlane.f32.xlu0 %v1908_v60  ;;  %v7637_v60 = vld [vmem:[#allocation13_spill] sm:$0xff]  ;;  %v2371_v30 = vadd.f32 %v2334_v34, %v2333_v61  ;;  %v7652_v61 = vld [vmem:[#allocation20_spill] sm:$0xff] }
 0x37b   : > { %vm7638_vm4 = vcmp.eq.s32.totalorder %v7637_v60, %v4404_v48  ;;  %vm7639_vm5 = vcmp.eq.s32.totalorder %v7637_v60, %v4406_v49  ;;  %vm7653_vm1 = vcmp.eq.s32.totalorder %v7652_v61, %v4404_v48  ;;  %vm7654_vm8 = vcmp.eq.s32.totalorder %v7652_v61, %v4406_v49 }
 0x37c   : > { %v2345_v34 = vsel %vm7653_vm1, %v7612_v10, 0.0 }
 0x37d   : > { %1918 = vmax.xlane.f32.xlu1 %v1917_v53  ;;  %v2335_v53 = vsel %vm7638_vm4, %v7598_v8, 0.0  ;;  %vm7660_vm4 = vcmp.eq.s32.totalorder %v7622_v59, %v4404_v48 }
 0x37e   : > { %1915 = vmax.xlane.f32.xlu0 %v1914_v39  ;;  %v2336_v39 = vsel %vm7639_vm5, %v7597_v5, 0.0  ;;  %vm7661_vm5 = vcmp.eq.s32.totalorder %v7622_v59, %v4406_v49 }
 0x37f   : > { %v2374_v4 = vadd.f32 %v2336_v39, %v2335_v53  ;;  %v2346_v53 = vsel %vm7654_vm8, %v7611_v54, 0.0  ;;  %vm7698_vm8 = vcmp.eq.s32.totalorder %v7652_v61, %v4404_v48 }
 0x380   : > { %v2389_v39 = vadd.f32 %v2346_v53, %v2345_v34 }
 0x381   : > { %2357 = vadd.xlane.f32.xlu1 %v2356_v47  ;;  %v7643_v47 = vld [vmem:[#allocation15_spill] sm:$0xff] }
 0x382   : > { %2354 = vadd.xlane.f32.xlu0 %v2353_v27  ;;  %v2338_v27 = vsel %vm7642_vm10, %v7603_v6, 0.0  ;;  %vm7644_vm14 = vcmp.eq.s32.totalorder %v7643_v47, %v4404_v48  ;;  %vm7645_vm0 = vcmp.eq.s32.totalorder %v7643_v47, %v4406_v49  ;;  %vm7663_vm10 = vcmp.eq.s32.totalorder %v7628_v28, %v4406_v49 }
 0x383   : > { %v2339_v23 = vsel %vm7644_vm14, %v7602_v62, 0.0  ;;  %v2340_v21 = vsel %vm7645_vm0, %v7601_v56, 0.0  ;;  %v2377_v16 = vadd.f32 %v2338_v27, %v2337_v17  ;;  %vm7664_vm14 = vcmp.eq.s32.totalorder %v7634_v20, %v4404_v48 }
 0x384   : > { %v2380_v22 = vadd.f32 %v2340_v21, %v2339_v23  ;;  %v7084_v23 = vmov 0.0   ;;  %vm7665_vm0 = vcmp.eq.s32.totalorder %v7634_v20, %v4406_v49 }
 0x385   : > { %2363 = vadd.xlane.f32.xlu1 %v2362_v44  ;;  %v3597_v21 = vsel %vm7658_vm9, 1.0, %v7084_v23  ;;  %v3605_v63 = vsel %vm7662_vm11, 1.0, %v7084_v23  ;;  %v3609_v59 = vsel %vm7664_vm14, 1.0, %v7084_v23  ;;  %vm7707_vm11 = vcmp.eq.s32.totalorder %v7619_v45, %v4406_v49 }
 0x386   : > { %2360 = vadd.xlane.f32.xlu0 %v2359_v43  ;;  %v7646_v43 = vld [vmem:[#allocation18_spill] sm:$0xff]  ;;  %vm7709_vm14 = vcmp.eq.s32.totalorder %v7625_v40, %v4406_v49 }
 0x387   : > { %vm7647_vm12 = vcmp.eq.s32.totalorder %v7646_v43, %v4404_v48  ;;  %vm7648_vm6 = vcmp.eq.s32.totalorder %v7646_v43, %v4406_v49  ;;  %vm7696_vm3 = vcmp.eq.s32.totalorder %v7646_v43, %v4404_v48  ;;  %vm7697_vm1 = vcmp.eq.s32.totalorder %v7646_v43, %v4406_v49  ;;  %v2433_v43 = vld [vmem:[#allocation5] sm:$0xff] }
 0x388   : > { %v2341_v44 = vsel %vm7647_vm12, %v7608_v13, 0.0  ;;  %v2342_v29 = vsel %vm7648_vm6, %v7607_v19, 0.0  ;;  %vm7666_vm12 = vcmp.eq.s32.totalorder %v7640_v2, %v4404_v48  ;;  %vm7667_vm6 = vcmp.eq.s32.totalorder %v7640_v2, %v4406_v49  ;;  %v6090_v2 = vld [vmem:[#allocation2 + $0x8] sm:$0xff] }
 0x389   : > { %2369 = vadd.xlane.f32.xlu1 %v2368_v24  ;;  %v2386_v24 = vadd.f32 %v2344_v9, %v2343_v37  ;;  %v3606_v9 = vsel %vm7663_vm10, 1.0, %v7084_v23  ;;  %v3613_v28 = vsel %vm7666_vm12, 1.0, %v7084_v23  ;;  %v3614_v53 = vsel %vm7667_vm6, 1.0, %v7084_v23 }
 0x38a   : > { %2366 = vadd.xlane.f32.xlu0 %v2365_v18  ;;  %v2383_v18 = vadd.f32 %v2342_v29, %v2341_v44  ;;  %v3601_v44 = vsel %vm7660_vm4, 1.0, %v7084_v23  ;;  %v3602_v29 = vsel %vm7661_vm5, 1.0, %v7084_v23  ;;  %vm7706_vm5 = vcmp.eq.s32.totalorder %v7619_v45, %v4404_v48 }
 0x38b   : > { %v2519_v37 = vadd.f32 %v3602_v29, %v3601_v44  ;;  %vm7708_vm10 = vcmp.eq.s32.totalorder %v7625_v40, %v4404_v48  ;;  %vm7711_vm12 = vcmp.eq.s32.totalorder %v7631_v51, %v4406_v49  ;;  %vm7712_vm6 = vcmp.eq.s32.totalorder %v7637_v60, %v4404_v48 }
 0x38d   : > { %2375 = vadd.xlane.f32.xlu1 %v2374_v4 }
 0x38e   : > { %2372 = vadd.xlane.f32.xlu0 %v2371_v30  ;;  %v7655_v30 = vld [vmem:[#allocation22_spill] sm:$0xff] }
 0x38f   : > { %vm7656_vm13 = vcmp.eq.s32.totalorder %v7655_v30, %v4404_v48  ;;  %vm7657_vm15 = vcmp.eq.s32.totalorder %v7655_v30, %v4406_v49 }
 0x390   : > { %v2349_v4 = vsel %vm7656_vm13, %v7615_v52, 0.0  ;;  %v2350_v17 = vsel %vm7657_vm15, %v7614_v1, 0.0  ;;  %vm7699_vm13 = vcmp.eq.s32.totalorder %v7652_v61, %v4406_v49 }
 0x391   : > { %2381 = vadd.xlane.f32.xlu1 %v2380_v22  ;;  %v2395_v27 = vadd.f32 %v2350_v17, %v2349_v4  ;;  %v6078_v4 = vld [vmem:[#allocation2 + $0x10] sm:$0xff]  ;;  %v6080_v17 = vld [vmem:[#allocation2] sm:$0xff] }
 0x392   : > { %2378 = vadd.xlane.f32.xlu0 %v2377_v16  ;;  %v3598_v16 = vsel %vm7659_vm7, 1.0, %v7084_v23  ;;  %7668 = vst [vmem:[#allocation122_spill] sm:$0xff] %v6078_v4 }
 0x393   : > { %v2513_v22 = vadd.f32 %v3598_v16, %v3597_v21 }
 0x395   : > { %2387 = vadd.xlane.f32.xlu1 %v2386_v24  ;;  %v3610_v24 = vsel %vm7665_vm0, 1.0, %v7084_v23  ;;  %v6147_v23 = vld [vmem:[#allocation2 + $0x40] sm:$0xff]  ;;  %vm7710_vm0 = vcmp.eq.s32.totalorder %v7631_v51, %v4404_v48 }
 0x396   : > { %2384 = vadd.xlane.f32.xlu0 %v2383_v18  ;;  %v2525_v18 = vadd.f32 %v3606_v9, %v3605_v63  ;;  %v2531_v34 = vadd.f32 %v3610_v24, %v3609_v59  ;;  %v6107_v59 = vld [vmem:[#allocation2 + $0x28] sm:$0xff]  ;;  %v6109_v24 = vld [vmem:[#allocation2 + $0x20] sm:$0xff]  ;;  %7682 = vst [vmem:[#allocation136_spill] sm:$0xff] %v6147_v23 }
 0x397   : > { %7673 = vst [vmem:[#allocation127_spill] sm:$0xff] %v6107_v59  ;;  %7674 = vst [vmem:[#allocation128_spill] sm:$0xff] %v6109_v24 }
 0x39a   : > { %2390 = vadd.xlane.f32.xlu0 %v2389_v39  ;;  %v2537_v39 = vadd.f32 %v3614_v53, %v3613_v28 }
 0x39e   : > { %2396 = vadd.xlane.f32.xlu0 %v2395_v27 }
 0x3a2   : > { %2514 = vadd.xlane.f32.xlu0 %v2513_v22  ;;  %v6088_v22 = vld [vmem:[#allocation2 + $0x18] sm:$0xff] }
 0x3a3   : > { %7670 = vst [vmem:[#allocation124_spill] sm:$0xff] %v6088_v22 }
 0x3a6   : > { %2520 = vadd.xlane.f32.xlu0 %v2519_v37 }
 0x3aa   : > { %2526 = vadd.xlane.f32.xlu0 %v2525_v18 }
 0x3ae   : > { %2532 = vadd.xlane.f32.xlu0 %v2531_v34  ;;  %v6145_v34 = vld [vmem:[#allocation2 + $0x48] sm:$0xff] }
 0x3af   : > { %7681 = vst [vmem:[#allocation135_spill] sm:$0xff] %v6145_v34 }
 0x3b2   : > { %2538 = vadd.xlane.f32.xlu0 %v2537_v39 }
 0x3ee   : > { %v1880_v20 = vpop.xlane.xlu1 %1879 }
 0x3ef   : > { %v1874_v27 = vpop.xlane.xlu0 %1873  ;;  %v6083_v21 = vmax.f32 %v6078_v4, %v1880_v20  ;;  %v2307_v4 = vld [vmem:[#allocation4 + $0x10] sm:$0xff] }
 0x3f0   : > { %v6086_v16 = vmax.f32 %v6080_v17, %v1874_v27 }
 0x3f1   : > { %7669 = vst [vmem:[#allocation123_spill] sm:$0xff] %v6083_v21  ;;  %2291 = vst.msk [vmem:[#allocation2 + $0x10] sm:$0xff] %vm2272_vm2, %v6083_v21 }
 0x3f2   : > { %2289 = vst.msk [vmem:[#allocation2] sm:$0xff] %vm2272_vm2, %v6086_v16  ;;  %1954 = vperm.xlu0 %3889, %v6086_v16   ;;  %v1883_v37 = vpop.xlane.xlu1 %1882 }
 0x3f3   : > { %v1877_v63 = vpop.xlane.xlu0 %1876  ;;  %v6102_v9 = vmax.f32 %v6088_v22, %v1883_v37  ;;  %v6126_v37 = vld [vmem:[#allocation2 + $0x38] sm:$0xff] }
 0x3f4   : > { %v6105_v18 = vmax.f32 %v6090_v2, %v1877_v63  ;;  %7677 = vst [vmem:[#allocation131_spill] sm:$0xff] %v6126_v37  ;;  %v6128_v63 = vld [vmem:[#allocation2 + $0x30] sm:$0xff] }
 0x3f5   : > { %7671 = vst [vmem:[#allocation125_spill] sm:$0xff] %v6102_v9  ;;  %2292 = vst.msk [vmem:[#allocation2 + $0x18] sm:$0xff] %vm2272_vm2, %v6102_v9 }
 0x3f6   : > { %7672 = vst [vmem:[#allocation126_spill] sm:$0xff] %v6105_v18  ;;  %2290 = vst.msk [vmem:[#allocation2 + $0x8] sm:$0xff] %vm2272_vm2, %v6105_v18  ;;  %1959 = vperm.xlu1 %3888, %v6105_v18   ;;  %v1889_v53 = vpop.xlane.xlu1 %1888  ;;  %v2308_v18 = vld [vmem:[#allocation4 + $0x18] sm:$0xff] }
 0x3f7   : > { %v1886_v39 = vpop.xlane.xlu0 %1885  ;;  %v6121_v20 = vmax.f32 %v6107_v59, %v1889_v53  ;;  %7678 = vst [vmem:[#allocation132_spill] sm:$0xff] %v6128_v63  ;;  %v6164_v59 = vld [vmem:[#allocation2 + $0x58] sm:$0xff] }
 0x3f8   : > { %v6124_v27 = vmax.f32 %v6109_v24, %v1886_v39  ;;  %7685 = vst [vmem:[#allocation139_spill] sm:$0xff] %v6164_v59 }
 0x3f9   : > { %7675 = vst [vmem:[#allocation129_spill] sm:$0xff] %v6121_v20  ;;  %2294 = vst.msk [vmem:[#allocation2 + $0x28] sm:$0xff] %vm2272_vm2, %v6121_v20 }
 0x3fa   : > { %7676 = vst [vmem:[#allocation130_spill] sm:$0xff] %v6124_v27  ;;  %1964 = vperm.xlu1 %3888, %v6083_v21   ;;  %2293 = vst.msk [vmem:[#allocation2 + $0x20] sm:$0xff] %vm2272_vm2, %v6124_v27  ;;  %v1895_v53 = vpop.xlane.xlu1 %1894  ;;  %v6186_v21 = vld [vmem:[#allocation2 + $0x60] sm:$0xff] }
 0x3fb   : > { %v1892_v39 = vpop.xlane.xlu0 %1891  ;;  %v6140_v28 = vmax.f32 %v6126_v37, %v1895_v53  ;;  %v6166_v37 = vld [vmem:[#allocation2 + $0x50] sm:$0xff]  ;;  %7689 = vst [vmem:[#allocation143_spill] sm:$0xff] %v6186_v21 }
 0x3fc   : > { %v6143_v29 = vmax.f32 %v6128_v63, %v1892_v39  ;;  %7686 = vst [vmem:[#allocation140_spill] sm:$0xff] %v6166_v37 }
 0x3fd   : > { %7679 = vst [vmem:[#allocation133_spill] sm:$0xff] %v6140_v28  ;;  %2296 = vst.msk [vmem:[#allocation2 + $0x38] sm:$0xff] %vm2272_vm2, %v6140_v28 }
 0x3fe   : > { %7680 = vst [vmem:[#allocation134_spill] sm:$0xff] %v6143_v29  ;;  %1969 = vperm.xlu1 %3888, %v6102_v9   ;;  %2295 = vst.msk [vmem:[#allocation2 + $0x30] sm:$0xff] %vm2272_vm2, %v6143_v29  ;;  %v1901_v53 = vpop.xlane.xlu1 %1900 }
 0x3ff   : > { %v1898_v39 = vpop.xlane.xlu0 %1897  ;;  %v6159_v24 = vmax.f32 %v6145_v34, %v1901_v53  ;;  %v6184_v34 = vld [vmem:[#allocation2 + $0x68] sm:$0xff] }
 0x400   : > { %v6162_v22 = vmax.f32 %v6147_v23, %v1898_v39  ;;  %7688 = vst [vmem:[#allocation142_spill] sm:$0xff] %v6184_v34 }
 0x401   : > { %7683 = vst [vmem:[#allocation137_spill] sm:$0xff] %v6159_v24  ;;  %2298 = vst.msk [vmem:[#allocation2 + $0x48] sm:$0xff] %vm2272_vm2, %v6159_v24  ;;  %1999 = vperm.xlu0 %3889, %v6159_v24  }
 0x402   : > { %7684 = vst [vmem:[#allocation138_spill] sm:$0xff] %v6162_v22  ;;  %1974 = vperm.xlu1 %3888, %v6124_v27   ;;  %2297 = vst.msk [vmem:[#allocation2 + $0x40] sm:$0xff] %vm2272_vm2, %v6162_v22  ;;  %v1907_v39 = vpop.xlane.xlu1 %1906  ;;  %v6206_v27 = vld [vmem:[#allocation2 + $0x70] sm:$0xff] }
 0x403   : > { %v1904_v44 = vpop.xlane.xlu0 %1903  ;;  %v6179_v63 = vmax.f32 %v6164_v59, %v1907_v39  ;;  %v6204_v59 = vld [vmem:[#allocation2 + $0x78] sm:$0xff]  ;;  %7692 = vst [vmem:[#allocation146_spill] sm:$0xff] %v6206_v27 }
 0x404   : > { %v6182_v9 = vmax.f32 %v6166_v37, %v1904_v44  ;;  %7691 = vst [vmem:[#allocation145_spill] sm:$0xff] %v6204_v59 }
 0x405   : > { %7687 = vst [vmem:[#allocation141_spill] sm:$0xff] %v6179_v63  ;;  %2300 = vst.msk [vmem:[#allocation2 + $0x58] sm:$0xff] %vm2272_vm2, %v6179_v63  ;;  %2009 = vperm.xlu0 %3889, %v6179_v63  }
 0x406   : > { %1979 = vperm.xlu1 %3888, %v6121_v20   ;;  %2299 = vst.msk [vmem:[#allocation2 + $0x50] sm:$0xff] %vm2272_vm2, %v6182_v9  ;;  %v1913_v44 = vpop.xlane.xlu1 %1912  ;;  %v2306_v20 = vld [vmem:[#allocation4 + $0x8] sm:$0xff] }
 0x407   : > { %v1910_v53 = vpop.xlane.xlu0 %1909  ;;  %v6199_v23 = vmax.f32 %v6184_v34, %v1913_v44  ;;  %v2305_v34 = vld [vmem:[#allocation4] sm:$0xff] }
 0x408   : > { %v6202_v24 = vmax.f32 %v6186_v21, %v1910_v53  ;;  %v2309_v44 = vld [vmem:[#allocation4 + $0x20] sm:$0xff] }
 0x409   : > { %7690 = vst [vmem:[#allocation144_spill] sm:$0xff] %v6199_v23  ;;  %2302 = vst.msk [vmem:[#allocation2 + $0x68] sm:$0xff] %vm2272_vm2, %v6199_v23  ;;  %2019 = vperm.xlu0 %3889, %v6199_v23  }
 0x40a   : > { %1984 = vperm.xlu1 %3888, %v6143_v29   ;;  %2301 = vst.msk [vmem:[#allocation2 + $0x60] sm:$0xff] %vm2272_vm2, %v6202_v24  ;;  %v1919_v53 = vpop.xlane.xlu1 %1918 }
 0x40b   : > { %v1916_v39 = vpop.xlane.xlu0 %1915  ;;  %v6219_v37 = vmax.f32 %v6204_v59, %v1919_v53 }
 0x40c   : > { %v6222_v63 = vmax.f32 %v6206_v27, %v1916_v39  ;;  %v2310_v27 = vld [vmem:[#allocation4 + $0x28] sm:$0xff] }
 0x40d   : > { %7693 = vst [vmem:[#allocation147_spill] sm:$0xff] %v6219_v37  ;;  %2304 = vst.msk [vmem:[#allocation2 + $0x78] sm:$0xff] %vm2272_vm2, %v6219_v37  ;;  %2029 = vperm.xlu0 %3889, %v6219_v37  }
 0x40e   : > { %7694 = vst [vmem:[#allocation148_spill] sm:$0xff] %v6222_v63  ;;  %1989 = vperm.xlu1 %3888, %v6140_v28   ;;  %2303 = vst.msk [vmem:[#allocation2 + $0x70] sm:$0xff] %vm2272_vm2, %v6222_v63  ;;  %v2358_v53 = vpop.xlane.xlu1 %2357 }
 0x40f   : > { %v2355_v39 = vpop.xlane.xlu0 %2354  ;;  %v2402_v29 = vadd.f32 %v2358_v53, %v2306_v20 }
 0x410   : > { %v2401_v21 = vadd.f32 %v2355_v39, %v2305_v34 }
 0x411   : > { %2418 = vst.msk [vmem:[#allocation4 + $0x8] sm:$0xff] %vm2272_vm2, %v2402_v29 }
 0x412   : > { %1994 = vperm.xlu1 %3888, %v6162_v22   ;;  %2417 = vst.msk [vmem:[#allocation4] sm:$0xff] %vm2272_vm2, %v2401_v21  ;;  %v2364_v37 = vpop.xlane.xlu1 %2363  ;;  %v2311_v22 = vld [vmem:[#allocation4 + $0x30] sm:$0xff]  ;;  %v2312_v21 = vld [vmem:[#allocation4 + $0x38] sm:$0xff] }
 0x413   : > { %v2361_v23 = vpop.xlane.xlu0 %2360  ;;  %v2404_v28 = vadd.f32 %v2364_v37, %v2308_v18  ;;  %v2313_v37 = vld [vmem:[#allocation4 + $0x40] sm:$0xff] }
 0x414   : > { %v2403_v59 = vadd.f32 %v2361_v23, %v2307_v4 }
 0x415   : > { %2420 = vst.msk [vmem:[#allocation4 + $0x18] sm:$0xff] %vm2272_vm2, %v2404_v28 }
 0x416   : > { %2004 = vperm.xlu1 %3888, %v6182_v9   ;;  %2419 = vst.msk [vmem:[#allocation4 + $0x10] sm:$0xff] %vm2272_vm2, %v2403_v59  ;;  %v2370_v20 = vpop.xlane.xlu1 %2369  ;;  %v2314_v59 = vld [vmem:[#allocation4 + $0x48] sm:$0xff] }
 0x417   : > { %v2367_v34 = vpop.xlane.xlu0 %2366  ;;  %v2406_v53 = vadd.f32 %v2370_v20, %v2310_v27  ;;  %v2315_v20 = vld [vmem:[#allocation4 + $0x50] sm:$0xff] }
 0x418   : > { %v2405_v39 = vadd.f32 %v2367_v34, %v2309_v44 }
 0x419   : > { %2422 = vst.msk [vmem:[#allocation4 + $0x28] sm:$0xff] %vm2272_vm2, %v2406_v53 }
 0x41a   : > { %2014 = vperm.xlu1 %3888, %v6202_v24   ;;  %2421 = vst.msk [vmem:[#allocation4 + $0x20] sm:$0xff] %vm2272_vm2, %v2405_v39  ;;  %v2376_v4 = vpop.xlane.xlu1 %2375  ;;  %v2316_v39 = vld [vmem:[#allocation4 + $0x58] sm:$0xff] }
 0x41b   : > { %v2373_v23 = vpop.xlane.xlu0 %2372  ;;  %v2408_v18 = vadd.f32 %v2376_v4, %v2312_v21  ;;  %v2317_v4 = vld [vmem:[#allocation4 + $0x60] sm:$0xff] }
 0x41c   : > { %v2407_v29 = vadd.f32 %v2373_v23, %v2311_v22 }
 0x41d   : > { %2424 = vst.msk [vmem:[#allocation4 + $0x38] sm:$0xff] %vm2272_vm2, %v2408_v18 }
 0x41e   : > { %2024 = vperm.xlu1 %3888, %v6222_v63   ;;  %2423 = vst.msk [vmem:[#allocation4 + $0x30] sm:$0xff] %vm2272_vm2, %v2407_v29  ;;  %v2382_v27 = vpop.xlane.xlu1 %2381  ;;  %v7695_v29 = vmov 0.0   ;;  %v2439_v63 = vld [vmem:[#allocation5 + $0x30] sm:$0xff] }
 0x41f   : > { %v2379_v28 = vpop.xlane.xlu0 %2378  ;;  %v2410_v34 = vadd.f32 %v2382_v27, %v2314_v59  ;;  %v3617_v18 = vsel %vm7696_vm3, 1.0, %v7695_v29  ;;  %v2319_v27 = vld [vmem:[#allocation4 + $0x70] sm:$0xff]  ;;  %v3607_v45 = vsel %vm7710_vm0, 1.0, %v7695_v29  ;;  %v3611_v40 = vsel %vm7712_vm6, 1.0, %v7695_v29 }
 0x420   : > { %v2409_v44 = vadd.f32 %v2379_v28, %v2313_v37  ;;  %v3618_v37 = vsel %vm7697_vm1, 1.0, %v7695_v29  ;;  %vm7713_vm3 = vcmp.eq.s32.totalorder %v7637_v60, %v4406_v49  ;;  %vm7714_vm1 = vcmp.eq.s32.totalorder %v7643_v47, %v4404_v48 }
 0x421   : > { %2426 = vst.msk [vmem:[#allocation4 + $0x48] sm:$0xff] %vm2272_vm2, %v2410_v34  ;;  %v3621_v34 = vsel %vm7698_vm8, 1.0, %v7695_v29  ;;  %v3615_v51 = vsel %vm7714_vm1, 1.0, %v7695_v29  ;;  %vm7715_vm8 = vcmp.eq.s32.totalorder %v7643_v47, %v4406_v49 }
 0x422   : > { %2425 = vst.msk [vmem:[#allocation4 + $0x40] sm:$0xff] %vm2272_vm2, %v2409_v44  ;;  %v2388_v53 = vpop.xlane.xlu1 %2387  ;;  %v2543_v44 = vadd.f32 %v3618_v37, %v3617_v18 }
 0x423   : > { %v2385_v22 = vpop.xlane.xlu0 %2384  ;;  %v2412_v23 = vadd.f32 %v2388_v53, %v2316_v39 }
 0x424   : > { %v2411_v21 = vadd.f32 %v2385_v22, %v2315_v20  ;;  %v3622_v20 = vsel %vm7699_vm13, 1.0, %v7695_v29  ;;  %vm7716_vm13 = vcmp.eq.s32.totalorder %v7649_v7, %v4404_v48 }
 0x425   : > { %2428 = vst.msk [vmem:[#allocation4 + $0x58] sm:$0xff] %vm2272_vm2, %v2412_v23  ;;  %v2549_v53 = vadd.f32 %v3622_v20, %v3621_v34  ;;  %v3619_v60 = vsel %vm7716_vm13, 1.0, %v7695_v29 }
 0x426   : > { %2427 = vst.msk [vmem:[#allocation4 + $0x50] sm:$0xff] %vm2272_vm2, %v2411_v21 }
 0x427   : > { %v2391_v59 = vpop.xlane.xlu0 %2390 }
 0x428   : > { %v2413_v28 = vadd.f32 %v2391_v59, %v2317_v4  ;;  %v2435_v4 = vld [vmem:[#allocation5 + $0x10] sm:$0xff]  ;;  %v2437_v59 = vld [vmem:[#allocation5 + $0x20] sm:$0xff] }
 0x42a   : > { %2429 = vst.msk [vmem:[#allocation4 + $0x60] sm:$0xff] %vm2272_vm2, %v2413_v28 }
 0x42b   : > { %v2397_v39 = vpop.xlane.xlu0 %2396 }
 0x42c   : > { %v2415_v22 = vadd.f32 %v2397_v39, %v2319_v27  ;;  %2544 = vadd.xlane.f32.xlu0 %v2543_v44  ;;  %v7700_v27 = vld [vmem:[#allocation19_spill] sm:$0xff] }
 0x42d   : > { %vm7701_vm15 = vcmp.eq.s32.totalorder %v7700_v27, %v4404_v48  ;;  %vm7702_vm9 = vcmp.eq.s32.totalorder %v7700_v27, %v4406_v49 }
 0x42e   : > { %2431 = vst.msk [vmem:[#allocation4 + $0x70] sm:$0xff] %vm2272_vm2, %v2415_v22  ;;  %v2347_v44 = vsel %vm7701_vm15, %v7610_v55, 0.0  ;;  %v2348_v34 = vsel %vm7702_vm9, %v7609_v32, 0.0  ;;  %v2441_v22 = vld [vmem:[#allocation5 + $0x40] sm:$0xff]  ;;  %vm7717_vm15 = vcmp.eq.s32.totalorder %v7649_v7, %v4406_v49  ;;  %vm7718_vm9 = vcmp.eq.s32.totalorder %v7700_v27, %v4404_v48 }
 0x42f   : > { %v2515_v21 = vpop.xlane.xlu0 %2514  ;;  %v3623_v47 = vsel %vm7718_vm9, 1.0, %v7695_v29 }
 0x430   : > { %v2561_v23 = vadd.f32 %v2515_v21, %v2433_v43  ;;  %2550 = vadd.xlane.f32.xlu0 %v2549_v53  ;;  %v2392_v43 = vadd.f32 %v2348_v34, %v2347_v44  ;;  %v7703_v53 = vld [vmem:[#allocation21_spill] sm:$0xff]  ;;  %v3604_v44 = vsel %vm7709_vm14, 1.0, %v7695_v29 }
 0x431   : > { %vm7704_vm7 = vcmp.eq.s32.totalorder %v7703_v53, %v4404_v48  ;;  %vm7705_vm4 = vcmp.eq.s32.totalorder %v7703_v53, %v4406_v49 }
 0x432   : > { %2577 = vst.msk [vmem:[#allocation5] sm:$0xff] %vm2272_vm2, %v2561_v23  ;;  %v2351_v21 = vsel %vm7704_vm7, %v4571_v31, 0.0  ;;  %v2352_v23 = vsel %vm7705_vm4, %v7613_v15, 0.0  ;;  %vm7719_vm7 = vcmp.eq.s32.totalorder %v7700_v27, %v4406_v49  ;;  %vm7720_vm4 = vcmp.eq.s32.totalorder %v7655_v30, %v4404_v48 }
 0x433   : > { %v2521_v18 = vpop.xlane.xlu0 %2520 }
 0x434   : > { %v2563_v37 = vadd.f32 %v2521_v18, %v2435_v4 }
 0x436   : > { %2579 = vst.msk [vmem:[#allocation5 + $0x10] sm:$0xff] %vm2272_vm2, %v2563_v37  ;;  %v2398_v37 = vadd.f32 %v2352_v23, %v2351_v21  ;;  %v3616_v21 = vsel %vm7715_vm8, 1.0, %v7695_v29 }
 0x437   : > { %v2527_v61 = vpop.xlane.xlu0 %2526  ;;  %v2540_v23 = vadd.f32 %v3616_v21, %v3615_v51 }
 0x438   : > { %v2565_v28 = vadd.f32 %v2527_v61, %v2437_v59  ;;  %v3600_v59 = vsel %vm7707_vm11, 1.0, %v7695_v29  ;;  %vm7722_vm11 = vcmp.eq.s32.totalorder %v7703_v53, %v4404_v48 }
 0x43a   : > { %2581 = vst.msk [vmem:[#allocation5 + $0x20] sm:$0xff] %vm2272_vm2, %v2565_v28  ;;  %v3603_v28 = vsel %vm7708_vm10, 1.0, %v7695_v29  ;;  %vm7723_vm10 = vcmp.eq.s32.totalorder %v7703_v53, %v4406_v49 }
 0x43b   : > { %v2533_v20 = vpop.xlane.xlu0 %2532  ;;  %v2522_v34 = vadd.f32 %v3604_v44, %v3603_v28 }
 0x43c   : > { %v2567_v39 = vadd.f32 %v2533_v20, %v2439_v63  ;;  %v3599_v63 = vsel %vm7706_vm5, 1.0, %v7695_v29  ;;  %v3608_v20 = vsel %vm7711_vm12, 1.0, %v7695_v29  ;;  %vm7721_vm5 = vcmp.eq.s32.totalorder %v7655_v30, %v4406_v49  ;;  %v2443_v30 = vld [vmem:[#allocation5 + $0x50] sm:$0xff]  ;;  %v2318_v49 = vld [vmem:[#allocation4 + $0x68] sm:$0xff] }
 0x43d   : > { %v2516_v61 = vadd.f32 %v3600_v59, %v3599_v63 }
 0x43e   : > { %2583 = vst.msk [vmem:[#allocation5 + $0x30] sm:$0xff] %vm2272_vm2, %v2567_v39  ;;  %v2528_v39 = vadd.f32 %v3608_v20, %v3607_v45 }
 0x43f   : > { %v2539_v4 = vpop.xlane.xlu0 %2538 }
 0x440   : > { %v2569_v18 = vadd.f32 %v2539_v4, %v2441_v22  ;;  %v3612_v22 = vsel %vm7713_vm3, 1.0, %v7695_v29  ;;  %v3620_v4 = vsel %vm7717_vm15, 1.0, %v7695_v29 }
 0x442   : > { %2393 = vadd.xlane.f32.xlu1 %v2392_v43  ;;  %2585 = vst.msk [vmem:[#allocation5 + $0x40] sm:$0xff] %vm2272_vm2, %v2569_v18  ;;  %v2534_v43 = vadd.f32 %v3612_v22, %v3611_v40  ;;  %v2546_v18 = vadd.f32 %v3620_v4, %v3619_v60 }
 0x446   : > { %2399 = vadd.xlane.f32.xlu1 %v2398_v37  ;;  %v3624_v37 = vsel %vm7719_vm7, 1.0, %v7695_v29 }
 0x447   : > { %v2552_v63 = vadd.f32 %v3624_v37, %v3623_v47 }
 0x44a   : > { %2517 = vadd.xlane.f32.xlu1 %v2516_v61 }
 0x44e   : > { %2523 = vadd.xlane.f32.xlu1 %v2522_v34 }
 0x452   : > { %2529 = vadd.xlane.f32.xlu1 %v2528_v39 }
 0x456   : > { %2535 = vadd.xlane.f32.xlu1 %v2534_v43 }
 0x45a   : > { %2541 = vadd.xlane.f32.xlu1 %v2540_v23 }
 0x45e   : > { %2547 = vadd.xlane.f32.xlu1 %v2546_v18 }
 0x462   : > { %2553 = vadd.xlane.f32.xlu1 %v2552_v63 }
 0x471   : > { %v1955_v59 = vpop.permute.xlu0 %1954 }
 0x472   : > { %v2032_v61 = vsub.f32 %v7588_v35, %v1955_v59  ;;  %v2033_v7 = vsub.f32 %v7587_v3, %v1955_v59 }
 0x474   : > { %v2064_v28 = vmul.f32 1.442695, %v2032_v61  ;;  %v2066_v44 = vmul.f32 1.442695, %v2033_v7 }
 0x475   : > { %v1960_v34 = vpop.permute.xlu1 %1959 }
 0x476   : > { %3890 = vpow2.f32 %v2064_v28  ;;  %v2034_v45 = vsub.f32 %v7592_v38, %v1960_v34  ;;  %v2035_v20 = vsub.f32 %v7591_v0, %v1960_v34 }
 0x477   : > { %3892 = vpow2.f32 %v2066_v44 }
 0x478   : > { %v2068_v39 = vmul.f32 1.442695, %v2034_v45  ;;  %v2070_v27 = vmul.f32 1.442695, %v2035_v20 }
 0x479   : > { %v1965_v40 = vpop.permute.xlu1 %1964 }
 0x47a   : > { %3894 = vpow2.f32 %v2068_v39  ;;  %v2036_v22 = vsub.f32 %v7586_v57, %v1965_v40  ;;  %v2037_v43 = vsub.f32 %v7585_v33, %v1965_v40 }
 0x47b   : > { %3896 = vpow2.f32 %v2070_v27 }
 0x47c   : > { %v2072_v35 = vmul.f32 1.442695, %v2036_v22  ;;  %v2074_v3 = vmul.f32 1.442695, %v2037_v43 }
 0x47d   : > { %v1970_v51 = vpop.permute.xlu1 %1969 }
 0x47e   : > { %3898 = vpow2.f32 %v2072_v35  ;;  %v2038_v21 = vsub.f32 %v7590_v25, %v1970_v51  ;;  %v2039_v38 = vsub.f32 %v7589_v11, %v1970_v51 }
 0x47f   : > { %3900 = vpow2.f32 %v2074_v3 }
 0x480   : > { %v3891_v0 = vpop.eup %3890  ;;  %v2076_v23 = vmul.f32 1.442695, %v2038_v21  ;;  %v2078_v60 = vmul.f32 1.442695, %v2039_v38  ;;  %v2000_v47 = vpop.permute.xlu0 %1999 }
 0x481   : > { %v3893_v4 = vpop.eup %3892  ;;  %v1975_v18 = vpop.permute.xlu1 %1974  ;;  %v2050_v20 = vsub.f32 %v7602_v62, %v2000_v47 }
 0x482   : > { %3902 = vpow2.f32 %v2076_v23  ;;  %v2040_v57 = vsub.f32 %v7596_v58, %v1975_v18  ;;  %v2041_v33 = vsub.f32 %v7595_v41, %v1975_v18  ;;  %v2208_v37 = vadd.f32 %v3893_v4, %v3891_v0 }
 0x483   : > { %3904 = vpow2.f32 %v2078_v60  ;;  %v2100_v21 = vmul.f32 1.442695, %v2050_v20 }
 0x484   : > { %v3895_v63 = vpop.eup %3894  ;;  %v2080_v59 = vmul.f32 1.442695, %v2040_v57  ;;  %v2082_v61 = vmul.f32 1.442695, %v2041_v33  ;;  %2209 = vadd.xlane.f32.xlu1 %v2208_v37  ;;  %v2010_v39 = vpop.permute.xlu0 %2009 }
 0x485   : > { %v3897_v25 = vpop.eup %3896  ;;  %v1980_v11 = vpop.permute.xlu1 %1979  ;;  %v2054_v38 = vsub.f32 %v7606_v42, %v2010_v39  ;;  %v2055_v33 = vsub.f32 %v7605_v50, %v2010_v39 }
 0x486   : > { %3906 = vpow2.f32 %v2080_v59  ;;  %v2042_v7 = vsub.f32 %v7594_v36, %v1980_v11  ;;  %v2043_v28 = vsub.f32 %v7593_v26, %v1980_v11  ;;  %v2211_v44 = vadd.f32 %v3897_v25, %v3895_v63 }
 0x487   : > { %3908 = vpow2.f32 %v2082_v61  ;;  %v2051_v26 = vsub.f32 %v7601_v56, %v2000_v47  ;;  %v2108_v47 = vmul.f32 1.442695, %v2054_v38  ;;  %v2110_v50 = vmul.f32 1.442695, %v2055_v33 }
 0x488   : > { %v3899_v34 = vpop.eup %3898  ;;  %v2084_v58 = vmul.f32 1.442695, %v2042_v7  ;;  %v2086_v45 = vmul.f32 1.442695, %v2043_v28  ;;  %2212 = vadd.xlane.f32.xlu0 %v2211_v44 }
 0x489   : > { %v3901_v41 = vpop.eup %3900  ;;  %v1985_v27 = vpop.permute.xlu1 %1984  ;;  %v2102_v4 = vmul.f32 1.442695, %v2051_v26 }
 0x48a   : > { %3910 = vpow2.f32 %v2084_v58  ;;  %v2044_v40 = vsub.f32 %v7600_v12, %v1985_v27  ;;  %v2045_v22 = vsub.f32 %v7599_v14, %v1985_v27  ;;  %v2214_v36 = vadd.f32 %v3901_v41, %v3899_v34  ;;  %v2020_v14 = vpop.permute.xlu0 %2019 }
 0x48b   : > { %3912 = vpow2.f32 %v2086_v45  ;;  %v2058_v59 = vsub.f32 %v7610_v55, %v2020_v14  ;;  %v2059_v7 = vsub.f32 %v7609_v32, %v2020_v14 }
 0x48c   : > { %v3903_v43 = vpop.eup %3902  ;;  %v2088_v35 = vmul.f32 1.442695, %v2044_v40  ;;  %v2090_v3 = vmul.f32 1.442695, %v2045_v22  ;;  %2215 = vadd.xlane.f32.xlu0 %v2214_v36 }
 0x48d   : > { %v3905_v51 = vpop.eup %3904  ;;  %v1990_v62 = vpop.permute.xlu1 %1989  ;;  %v2116_v45 = vmul.f32 1.442695, %v2058_v59  ;;  %v2118_v27 = vmul.f32 1.442695, %v2059_v7  ;;  %v3627_v7 = vsel %vm7722_vm11, 1.0, %v7695_v29 }
 0x48e   : > { %3914 = vpow2.f32 %v2088_v35  ;;  %v2046_v0 = vsub.f32 %v7598_v8, %v1990_v62  ;;  %v2047_v12 = vsub.f32 %v7597_v5, %v1990_v62  ;;  %v2217_v23 = vadd.f32 %v3905_v51, %v3903_v43  ;;  %v2030_v28 = vpop.permute.xlu0 %2029 }
 0x48f   : > { %3916 = vpow2.f32 %v2090_v3  ;;  %v2062_v55 = vsub.f32 %v4571_v31, %v2030_v28  ;;  %v2063_v32 = vsub.f32 %v7613_v15, %v2030_v28  ;;  %v3628_v28 = vsel %vm7723_vm10, 1.0, %v7695_v29 }
 0x490   : > { %v3907_v60 = vpop.eup %3906  ;;  %v2092_v18 = vmul.f32 1.442695, %v2046_v0  ;;  %v2094_v56 = vmul.f32 1.442695, %v2047_v12  ;;  %3918 = vpow2.f32 %v2100_v21  ;;  %2218 = vadd.xlane.f32.xlu1 %v2217_v23 }
 0x491   : > { %v3909_v57 = vpop.eup %3908  ;;  %v1995_v42 = vpop.permute.xlu1 %1994  ;;  %v2124_v31 = vmul.f32 1.442695, %v2062_v55  ;;  %v2126_v51 = vmul.f32 1.442695, %v2063_v32  ;;  %v2445_v55 = vld [vmem:[#allocation5 + $0x60] sm:$0xff]  ;;  %v2434_v32 = vld [vmem:[#allocation5 + $0x8] sm:$0xff] }
 0x492   : > { %3920 = vpow2.f32 %v2092_v18  ;;  %v2048_v37 = vsub.f32 %v7604_v46, %v1995_v42  ;;  %v2049_v8 = vsub.f32 %v7603_v6, %v1995_v42  ;;  %v2220_v5 = vadd.f32 %v3909_v57, %v3907_v60 }
 0x493   : > { %3922 = vpow2.f32 %v2094_v56 }
 0x494   : > { %v3911_v63 = vpop.eup %3910  ;;  %3924 = vpow2.f32 %v2102_v4  ;;  %v2096_v61 = vmul.f32 1.442695, %v2048_v37  ;;  %v2098_v25 = vmul.f32 1.442695, %v2049_v8  ;;  %2221 = vadd.xlane.f32.xlu0 %v2220_v5 }
 0x495   : > { %v3913_v11 = vpop.eup %3912  ;;  %3926 = vpow2.f32 %v2108_v47  ;;  %v2005_v44 = vpop.permute.xlu1 %2004 }
 0x496   : > { %3928 = vpow2.f32 %v2096_v61  ;;  %v2052_v46 = vsub.f32 %v7608_v13, %v2005_v44  ;;  %v2053_v6 = vsub.f32 %v7607_v19, %v2005_v44  ;;  %v2223_v34 = vadd.f32 %v3913_v11, %v3911_v63 }
 0x497   : > { %3930 = vpow2.f32 %v2098_v25  ;;  %v3625_v11 = vsel %vm7720_vm4, 1.0, %v7695_v29 }
 0x498   : > { %v3915_v58 = vpop.eup %3914  ;;  %v2104_v41 = vmul.f32 1.442695, %v2052_v46  ;;  %v2106_v20 = vmul.f32 1.442695, %v2053_v6  ;;  %2224 = vadd.xlane.f32.xlu1 %v2223_v34  ;;  %3932 = vpow2.f32 %v2110_v50  ;;  %v3626_v50 = vsel %vm7721_vm5, 1.0, %v7695_v29 }
 0x499   : > { %v3917_v39 = vpop.eup %3916  ;;  %v2015_v40 = vpop.permute.xlu1 %2014  ;;  %v2555_v6 = vadd.f32 %v3626_v50, %v3625_v11  ;;  %v2558_v34 = vadd.f32 %v3628_v28, %v3627_v7  ;;  %v2177_v50 = vld [vmem:[#allocation3 + $0x8] sm:$0xff]  ;;  %v7736_v7 = vld [vmem:[#allocation127_spill] sm:$0xff]  ;;  %v7737_v28 = vld [vmem:[#allocation129_spill] sm:$0xff] }
 0x49a   : > { %3934 = vpow2.f32 %v2104_v41  ;;  %v2056_v13 = vsub.f32 %v7612_v10, %v2015_v40  ;;  %v2057_v19 = vsub.f32 %v7611_v54, %v2015_v40  ;;  %v2226_v22 = vadd.f32 %v3917_v39, %v3915_v58  ;;  %v3919_v36 = vpop.eup %3918 }
 0x49b   : > { %3936 = vpow2.f32 %v2106_v20  ;;  %v2320_v20 = vld [vmem:[#allocation4 + $0x78] sm:$0xff] }
 0x49c   : > { %v3921_v43 = vpop.eup %3920  ;;  %3938 = vpow2.f32 %v2116_v45  ;;  %v2112_v26 = vmul.f32 1.442695, %v2056_v13  ;;  %v2114_v35 = vmul.f32 1.442695, %v2057_v19  ;;  %2227 = vadd.xlane.f32.xlu0 %v2226_v22  ;;  %v2436_v19 = vld [vmem:[#allocation5 + $0x18] sm:$0xff] }
 0x49d   : > { %v3923_v3 = vpop.eup %3922  ;;  %3940 = vpow2.f32 %v2118_v27  ;;  %v2025_v21 = vpop.permute.xlu1 %2024 }
 0x49e   : > { %v3925_v15 = vpop.eup %3924  ;;  %3942 = vpow2.f32 %v2112_v26  ;;  %v2060_v38 = vsub.f32 %v7615_v52, %v2025_v21  ;;  %v2061_v10 = vsub.f32 %v7614_v1, %v2025_v21  ;;  %v2229_v54 = vadd.f32 %v3923_v3, %v3921_v43  ;;  %v2438_v43 = vld [vmem:[#allocation5 + $0x28] sm:$0xff] }
 0x49f   : > { %v3927_v62 = vpop.eup %3926  ;;  %3944 = vpow2.f32 %v2114_v35  ;;  %v2235_v4 = vadd.f32 %v3925_v15, %v3919_v36  ;;  %v2440_v35 = vld [vmem:[#allocation5 + $0x38] sm:$0xff]  ;;  %v2442_v21 = vld [vmem:[#allocation5 + $0x48] sm:$0xff] }
 0x4a0   : > { %v3929_v0 = vpop.eup %3928  ;;  %3946 = vpow2.f32 %v2124_v31  ;;  %v2120_v12 = vmul.f32 1.442695, %v2060_v38  ;;  %v2122_v14 = vmul.f32 1.442695, %v2061_v10  ;;  %2230 = vadd.xlane.f32.xlu1 %v2229_v54  ;;  %v2444_v10 = vld [vmem:[#allocation5 + $0x58] sm:$0xff] }
 0x4a1   : > { %v3931_v23 = vpop.eup %3930  ;;  %3948 = vpow2.f32 %v2126_v51 }
 0x4a2   : > { %3950 = vpow2.f32 %v2120_v12  ;;  %v2232_v60 = vadd.f32 %v3931_v23, %v3929_v0  ;;  %v3933_v18 = vpop.eup %3932  ;;  %v2446_v0 = vld [vmem:[#allocation5 + $0x68] sm:$0xff]  ;;  %v7724_v23 = vsub.f32 %v6080_v17, %v6086_v16  ;;  %v7734_v17 = vld [vmem:[#allocation130_spill] sm:$0xff] }
 0x4a3   : > { %3952 = vpow2.f32 %v2122_v14  ;;  %v2241_v33 = vadd.f32 %v3933_v18, %v3927_v62 }
 0x4a4   : > { %v3935_v56 = vpop.eup %3934  ;;  %2233 = vadd.xlane.f32.xlu0 %v2232_v60  ;;  %2236 = vadd.xlane.f32.xlu1 %v2235_v4  ;;  %v2144_v60 = vmul.f32 1.442695, %v7724_v23  ;;  %v7725_v4 = vld [vmem:[#allocation126_spill] sm:$0xff]  ;;  %v2181_v23 = vld [vmem:[#allocation3 + $0x28] sm:$0xff] }
 0x4a5   : > { %v3937_v52 = vpop.eup %3936  ;;  %v7726_v18 = vsub.f32 %v6090_v2, %v7725_v4  ;;  %v7752_v4 = vld [vmem:[#allocation141_spill] sm:$0xff] }
 0x4a6   : > { %v3939_v1 = vpop.eup %3938  ;;  %v2238_v57 = vadd.f32 %v3937_v52, %v3935_v56  ;;  %3954 = vpow2.f32 %v2144_v60  ;;  %v7727_v52 = vld [vmem:[#allocation122_spill] sm:$0xff]  ;;  %v7751_v60 = vld [vmem:[#allocation139_spill] sm:$0xff] }
 0x4a7   : > { %v3941_v47 = vpop.eup %3940  ;;  %v2146_v56 = vmul.f32 1.442695, %v7726_v18  ;;  %v7753_v18 = vsub.f32 %v7751_v60, %v7752_v4 }
 0x4a8   : > { %v3943_v42 = vpop.eup %3942  ;;  %2239 = vadd.xlane.f32.xlu0 %v2238_v57  ;;  %2242 = vadd.xlane.f32.xlu1 %v2241_v33  ;;  %v2247_v63 = vadd.f32 %v3941_v47, %v3939_v1  ;;  %v7728_v1 = vld [vmem:[#allocation123_spill] sm:$0xff]  ;;  %v7730_v47 = vld [vmem:[#allocation124_spill] sm:$0xff] }
 0x4a9   : > { %v3945_v37 = vpop.eup %3944  ;;  %v7729_v57 = vsub.f32 %v7727_v52, %v7728_v1  ;;  %3956 = vpow2.f32 %v2146_v56  ;;  %v2166_v56 = vmul.f32 1.442695, %v7753_v18  ;;  %v7754_v1 = vld [vmem:[#allocation140_spill] sm:$0xff]  ;;  %v2191_v18 = vld [vmem:[#allocation3 + $0x78] sm:$0xff] }
 0x4aa   : > { %v3947_v8 = vpop.eup %3946  ;;  %v2244_v5 = vadd.f32 %v3945_v37, %v3943_v42  ;;  %v7731_v42 = vld [vmem:[#allocation125_spill] sm:$0xff] }
 0x4ab   : > { %v3949_v59 = vpop.eup %3948  ;;  %v2148_v33 = vmul.f32 1.442695, %v7729_v57  ;;  %v7732_v37 = vsub.f32 %v7730_v47, %v7731_v42  ;;  %v7755_v57 = vsub.f32 %v7754_v1, %v6182_v9 }
 0x4ac   : > { %v3951_v61 = vpop.eup %3950  ;;  %2245 = vadd.xlane.f32.xlu0 %v2244_v5  ;;  %2248 = vadd.xlane.f32.xlu1 %v2247_v63  ;;  %v2253_v46 = vadd.f32 %v3949_v59, %v3947_v8  ;;  %v2176_v63 = vld [vmem:[#allocation3] sm:$0xff]  ;;  %v7733_v59 = vld [vmem:[#allocation128_spill] sm:$0xff] }
 0x4ad   : > { %v3953_v25 = vpop.eup %3952  ;;  %3958 = vpow2.f32 %v2148_v33  ;;  %v2150_v8 = vmul.f32 1.442695, %v7732_v37  ;;  %v7735_v16 = vsub.f32 %v7733_v59, %v7734_v17  ;;  %v2164_v33 = vmul.f32 1.442695, %v7755_v57 }
 0x4ae   : > { %v2250_v44 = vadd.f32 %v3953_v25, %v3951_v61 }
 0x4af   : > { %v2152_v61 = vmul.f32 1.442695, %v7735_v16  ;;  %3960 = vpow2.f32 %v2150_v8  ;;  %v2182_v8 = vld [vmem:[#allocation3 + $0x30] sm:$0xff] }
 0x4b0   : > { %2251 = vadd.xlane.f32.xlu0 %v2250_v44  ;;  %2254 = vadd.xlane.f32.xlu1 %v2253_v46  ;;  %v3955_v5 = vpop.eup %3954  ;;  %v7738_v44 = vsub.f32 %v7736_v7, %v7737_v28  ;;  %v2183_v7 = vld [vmem:[#allocation3 + $0x38] sm:$0xff]  ;;  %v7761_v28 = vld [vmem:[#allocation145_spill] sm:$0xff] }
 0x4b1   : > { %v2192_v25 = vmul.f32 %v3955_v5, %v2176_v63  ;;  %3962 = vpow2.f32 %v2152_v61  ;;  %v7756_v5 = vld [vmem:[#allocation142_spill] sm:$0xff]  ;;  %v7757_v63 = vld [vmem:[#allocation144_spill] sm:$0xff]  ;;  %v7759_v61 = vld [vmem:[#allocation143_spill] sm:$0xff] }
 0x4b2   : > { %v2154_v46 = vmul.f32 1.442695, %v7738_v44  ;;  %v7758_v59 = vsub.f32 %v7756_v5, %v7757_v63  ;;  %v7762_v44 = vld [vmem:[#allocation147_spill] sm:$0xff]  ;;  %v2448_v5 = vld [vmem:[#allocation5 + $0x78] sm:$0xff]  ;;  %v2447_v63 = vld [vmem:[#allocation5 + $0x70] sm:$0xff] }
 0x4b3   : > { %v3957_v2 = vpop.eup %3956 }
 0x4b4   : > { %2556 = vadd.xlane.f32.xlu0 %v2555_v6  ;;  %2559 = vadd.xlane.f32.xlu1 %v2558_v34  ;;  %v2193_v34 = vmul.f32 %v3957_v2, %v2177_v50  ;;  %3964 = vpow2.f32 %v2154_v46  ;;  %v2170_v17 = vmul.f32 1.442695, %v7758_v59  ;;  %v7763_v46 = vsub.f32 %v7761_v28, %v7762_v44 }
 0x4b9   : > { %v2545_v58 = vpop.xlane.xlu0 %2544 }
 0x4ba   : > { %v2571_v45 = vadd.f32 %v2545_v58, %v2443_v30  ;;  %v3959_v30 = vpop.eup %3958 }
 0x4bc   : > { %2587 = vst.msk [vmem:[#allocation5 + $0x50] sm:$0xff] %vm2272_vm2, %v2571_v45  ;;  %v2178_v45 = vld [vmem:[#allocation3 + $0x10] sm:$0xff] }
 0x4bd   : > { %v2551_v48 = vpop.xlane.xlu0 %2550 }
 0x4be   : > { %v2573_v41 = vadd.f32 %v2551_v48, %v2445_v55  ;;  %v7739_v55 = vld [vmem:[#allocation132_spill] sm:$0xff]  ;;  %v7740_v48 = vld [vmem:[#allocation134_spill] sm:$0xff] }
 0x4c0   : > { %2589 = vst.msk [vmem:[#allocation5 + $0x60] sm:$0xff] %vm2272_vm2, %v2573_v41  ;;  %v7741_v41 = vsub.f32 %v7739_v55, %v7740_v48 }
 0x4cf   : > { %v2394_v29 = vpop.xlane.xlu1 %2393 }
 0x4d0   : > { %v2414_v53 = vadd.f32 %v2394_v29, %v2318_v49  ;;  %v2156_v49 = vmul.f32 1.442695, %v7741_v41 }
 0x4d2   : > { %2430 = vst.msk [vmem:[#allocation4 + $0x68] sm:$0xff] %vm2272_vm2, %v2414_v53  ;;  %v2194_v53 = vmul.f32 %v3959_v30, %v2178_v45  ;;  %3966 = vpow2.f32 %v2156_v49  ;;  %v7764_v30 = vld [vmem:[#allocation146_spill] sm:$0xff] }
 0x4d3   : > { %v2400_v39 = vpop.xlane.xlu1 %2399 }
 0x4d4   : > { %v2416_v27 = vadd.f32 %v2400_v39, %v2320_v20  ;;  %v3961_v20 = vpop.eup %3960 }
 0x4d6   : > { %2432 = vst.msk [vmem:[#allocation4 + $0x78] sm:$0xff] %vm2272_vm2, %v2416_v27  ;;  %v2179_v27 = vld [vmem:[#allocation3 + $0x18] sm:$0xff] }
 0x4d7   : > { %v2518_v40 = vpop.xlane.xlu1 %2517 }
 0x4d8   : > { %v2562_v13 = vadd.f32 %v2518_v40, %v2434_v32  ;;  %v7742_v32 = vld [vmem:[#allocation131_spill] sm:$0xff]  ;;  %v7743_v40 = vld [vmem:[#allocation133_spill] sm:$0xff] }
 0x4da   : > { %2578 = vst.msk [vmem:[#allocation5 + $0x8] sm:$0xff] %vm2272_vm2, %v2562_v13  ;;  %v7744_v13 = vsub.f32 %v7742_v32, %v7743_v40 }
 0x4db   : > { %v2524_v22 = vpop.xlane.xlu1 %2523 }
 0x4dc   : > { %v2564_v36 = vadd.f32 %v2524_v22, %v2436_v19  ;;  %v2158_v19 = vmul.f32 1.442695, %v7744_v13 }
 0x4de   : > { %2580 = vst.msk [vmem:[#allocation5 + $0x18] sm:$0xff] %vm2272_vm2, %v2564_v36  ;;  %v3963_v36 = vpop.eup %3962  ;;  %3968 = vpow2.f32 %v2158_v19 }
 0x4df   : > { %v2530_v31 = vpop.xlane.xlu1 %2529 }
 0x4e0   : > { %v2566_v26 = vadd.f32 %v2530_v31, %v2438_v43  ;;  %v2195_v43 = vmul.f32 %v3961_v20, %v2179_v27  ;;  %v2180_v31 = vld [vmem:[#allocation3 + $0x20] sm:$0xff] }
 0x4e2   : > { %2582 = vst.msk [vmem:[#allocation5 + $0x28] sm:$0xff] %vm2272_vm2, %v2566_v26  ;;  %v7745_v26 = vld [vmem:[#allocation135_spill] sm:$0xff] }
 0x4e3   : > { %v2536_v3 = vpop.xlane.xlu1 %2535 }
 0x4e4   : > { %v2568_v51 = vadd.f32 %v2536_v3, %v2440_v35  ;;  %v7746_v35 = vld [vmem:[#allocation137_spill] sm:$0xff] }
 0x4e5   : > { %v7747_v3 = vsub.f32 %v7745_v26, %v7746_v35 }
 0x4e6   : > { %2584 = vst.msk [vmem:[#allocation5 + $0x38] sm:$0xff] %vm2272_vm2, %v2568_v51 }
 0x4e7   : > { %v2542_v15 = vpop.xlane.xlu1 %2541  ;;  %v2162_v51 = vmul.f32 1.442695, %v7747_v3 }
 0x4e8   : > { %v2570_v38 = vadd.f32 %v2542_v15, %v2442_v21  ;;  %v7748_v15 = vld [vmem:[#allocation136_spill] sm:$0xff] }
 0x4e9   : > { %3970 = vpow2.f32 %v2162_v51 }
 0x4ea   : > { %2586 = vst.msk [vmem:[#allocation5 + $0x48] sm:$0xff] %vm2272_vm2, %v2570_v38  ;;  %v7749_v38 = vld [vmem:[#allocation138_spill] sm:$0xff] }
 0x4eb   : > { %v2548_v54 = vpop.xlane.xlu1 %2547 }
 0x4ec   : > { %v2572_v62 = vadd.f32 %v2548_v54, %v2444_v10  ;;  %v7750_v10 = vsub.f32 %v7748_v15, %v7749_v38  ;;  %v2189_v38 = vld [vmem:[#allocation3 + $0x68] sm:$0xff] }
 0x4ee   : > { %2588 = vst.msk [vmem:[#allocation5 + $0x58] sm:$0xff] %vm2272_vm2, %v2572_v62  ;;  %v2160_v54 = vmul.f32 1.442695, %v7750_v10  ;;  %v2188_v10 = vld [vmem:[#allocation3 + $0x60] sm:$0xff] }
 0x4ef   : > { %v2554_v12 = vpop.xlane.xlu1 %2553 }
 0x4f0   : > { %v2574_v14 = vadd.f32 %v2554_v12, %v2446_v0  ;;  %v2196_v0 = vmul.f32 %v3963_v36, %v2180_v31  ;;  %v3965_v12 = vpop.eup %3964  ;;  %3972 = vpow2.f32 %v2160_v54  ;;  %v2186_v36 = vld [vmem:[#allocation3 + $0x50] sm:$0xff] }
 0x4f1   : > { %v2197_v47 = vmul.f32 %v3965_v12, %v2181_v23  ;;  %v3967_v42 = vpop.eup %3966  ;;  %3974 = vpow2.f32 %v2166_v56  ;;  %v2190_v56 = vld [vmem:[#allocation3 + $0x70] sm:$0xff] }
 0x4f2   : > { %2590 = vst.msk [vmem:[#allocation5 + $0x68] sm:$0xff] %vm2272_vm2, %v2574_v14  ;;  %3976 = vpow2.f32 %v2164_v33  ;;  %v2198_v9 = vmul.f32 %v3967_v42, %v2182_v8 }
 0x4f3   : > { %3978 = vpow2.f32 %v2170_v17 }
 0x511   : > { %v2210_v11 = vpop.xlane.xlu1 %2209 }
 0x512   : > { %v2256_v6 = vadd.f32 %v2210_v11, %v2192_v25  ;;  %v7760_v25 = vsub.f32 %v7759_v61, %v6202_v24  ;;  %v3969_v11 = vpop.eup %3968 }
 0x513   : > { %v3971_v48 = vpop.eup %3970  ;;  %v2199_v24 = vmul.f32 %v3969_v11, %v2183_v7 }
 0x514   : > { %2273 = vst.msk [vmem:[#allocation3] sm:$0xff] %vm2272_vm2, %v2256_v6  ;;  %v2168_v2 = vmul.f32 1.442695, %v7760_v25  ;;  %v2174_v6 = vmul.f32 1.442695, %v7763_v46  ;;  %v3973_v41 = vpop.eup %3972 }
 0x515   : > { %v2213_v58 = vpop.xlane.xlu0 %2212 }
 0x516   : > { %v2257_v29 = vadd.f32 %v2213_v58, %v2193_v34  ;;  %3980 = vpow2.f32 %v2168_v2  ;;  %v7765_v58 = vld [vmem:[#allocation148_spill] sm:$0xff] }
 0x517   : > { %v7766_v45 = vsub.f32 %v7764_v30, %v7765_v58  ;;  %3982 = vpow2.f32 %v2174_v6 }
 0x518   : > { %2274 = vst.msk [vmem:[#allocation3 + $0x8] sm:$0xff] %vm2272_vm2, %v2257_v29  ;;  %v2185_v29 = vld [vmem:[#allocation3 + $0x48] sm:$0xff] }
 0x519   : > { %v2216_v39 = vpop.xlane.xlu0 %2215  ;;  %v2172_v55 = vmul.f32 1.442695, %v7766_v45  ;;  %v2201_v27 = vmul.f32 %v3971_v48, %v2185_v29 }
 0x51a   : > { %v2258_v22 = vadd.f32 %v2216_v39, %v2194_v53  ;;  %v2184_v53 = vld [vmem:[#allocation3 + $0x40] sm:$0xff]  ;;  %v3975_v39 = vpop.eup %3974 }
 0x51b   : > { %3984 = vpow2.f32 %v2172_v55  ;;  %v2200_v32 = vmul.f32 %v3973_v41, %v2184_v53  ;;  %v3977_v40 = vpop.eup %3976 }
 0x51c   : > { %2275 = vst.msk [vmem:[#allocation3 + $0x10] sm:$0xff] %vm2272_vm2, %v2258_v22  ;;  %v2187_v22 = vld [vmem:[#allocation3 + $0x58] sm:$0xff]  ;;  %v3979_v26 = vpop.eup %3978  ;;  %v2202_v3 = vmul.f32 %v3977_v40, %v2186_v36 }
 0x51d   : > { %v2219_v21 = vpop.xlane.xlu1 %2218  ;;  %v2203_v35 = vmul.f32 %v3975_v39, %v2187_v22  ;;  %v2205_v12 = vmul.f32 %v3979_v26, %v2189_v38 }
 0x51e   : > { %v2259_v62 = vadd.f32 %v2219_v21, %v2195_v43 }
 0x520   : > { %2276 = vst.msk [vmem:[#allocation3 + $0x18] sm:$0xff] %vm2272_vm2, %v2259_v62  ;;  %v3981_v51 = vpop.eup %3980 }
 0x521   : > { %v2222_v14 = vpop.xlane.xlu0 %2221 }
 0x522   : > { %v2260_v52 = vadd.f32 %v2222_v14, %v2196_v0  ;;  %v3983_v0 = vpop.eup %3982  ;;  %v2204_v14 = vmul.f32 %v3981_v51, %v2188_v10 }
 0x523   : > { %v2207_v57 = vmul.f32 %v3983_v0, %v2191_v18 }
 0x524   : > { %2277 = vst.msk [vmem:[#allocation3 + $0x20] sm:$0xff] %vm2272_vm2, %v2260_v52 }
 0x525   : > { %v2225_v37 = vpop.xlane.xlu1 %2224  ;;  %v3985_v23 = vpop.eup %3984 }
 0x526   : > { %v2261_v16 = vadd.f32 %v2225_v37, %v2197_v47  ;;  %v2206_v33 = vmul.f32 %v3985_v23, %v2190_v56 }
 0x528   : > { %2278 = vst.msk [vmem:[#allocation3 + $0x28] sm:$0xff] %vm2272_vm2, %v2261_v16 }
 0x529   : > { %v2228_v50 = vpop.xlane.xlu0 %2227 }
 0x52a   : > { %v2262_v34 = vadd.f32 %v2228_v50, %v2198_v9 }
 0x52c   : > { %2279 = vst.msk [vmem:[#allocation3 + $0x30] sm:$0xff] %vm2272_vm2, %v2262_v34 }
 0x52d   : > { %v2231_v49 = vpop.xlane.xlu1 %2230 }
 0x52e   : > { %v2263_v20 = vadd.f32 %v2231_v49, %v2199_v24 }
 0x530   : > { %2280 = vst.msk [vmem:[#allocation3 + $0x38] sm:$0xff] %vm2272_vm2, %v2263_v20 }
 0x531   : > { %v2237_v13 = vpop.xlane.xlu1 %2236  ;;  %v2234_v19 = vpop.xlane.xlu0 %2233 }
 0x532   : > { %v2265_v43 = vadd.f32 %v2237_v13, %v2201_v27  ;;  %v2264_v31 = vadd.f32 %v2234_v19, %v2200_v32 }
 0x534   : > { %2282 = vst.msk [vmem:[#allocation3 + $0x48] sm:$0xff] %vm2272_vm2, %v2265_v43  ;;  %2281 = vst.msk [vmem:[#allocation3 + $0x40] sm:$0xff] %vm2272_vm2, %v2264_v31 }
 0x535   : > { %v2243_v21 = vpop.xlane.xlu1 %2242  ;;  %v2240_v15 = vpop.xlane.xlu0 %2239 }
 0x536   : > { %v2267_v54 = vadd.f32 %v2243_v21, %v2203_v35  ;;  %v2266_v62 = vadd.f32 %v2240_v15, %v2202_v3 }
 0x538   : > { %2284 = vst.msk [vmem:[#allocation3 + $0x58] sm:$0xff] %vm2272_vm2, %v2267_v54  ;;  %2283 = vst.msk [vmem:[#allocation3 + $0x50] sm:$0xff] %vm2272_vm2, %v2266_v62 }
 0x539   : > { %v2249_v60 = vpop.xlane.xlu1 %2248  ;;  %v2246_v4 = vpop.xlane.xlu0 %2245 }
 0x53a   : > { %v2269_v52 = vadd.f32 %v2249_v60, %v2205_v12  ;;  %v2268_v1 = vadd.f32 %v2246_v4, %v2204_v14 }
 0x53c   : > { %2286 = vst.msk [vmem:[#allocation3 + $0x68] sm:$0xff] %vm2272_vm2, %v2269_v52  ;;  %2285 = vst.msk [vmem:[#allocation3 + $0x60] sm:$0xff] %vm2272_vm2, %v2268_v1 }
 0x53d   : > { %v2255_v47 = vpop.xlane.xlu1 %2254  ;;  %v2252_v42 = vpop.xlane.xlu0 %2251 }
 0x53e   : > { %v2271_v37 = vadd.f32 %v2255_v47, %v2207_v57  ;;  %v2270_v8 = vadd.f32 %v2252_v42, %v2206_v33 }
 0x540   : > { %2288 = vst.msk [vmem:[#allocation3 + $0x78] sm:$0xff] %vm2272_vm2, %v2271_v37  ;;  %2287 = vst.msk [vmem:[#allocation3 + $0x70] sm:$0xff] %vm2272_vm2, %v2270_v8 }
 0x541   : > { %v2560_v59 = vpop.xlane.xlu1 %2559  ;;  %v2557_v17 = vpop.xlane.xlu0 %2556 }
 0x542   : > { %v2576_v16 = vadd.f32 %v2560_v59, %v2448_v5  ;;  %v2575_v61 = vadd.f32 %v2557_v17, %v2447_v63 }
 0x544   : > { %2592 = vst.msk [vmem:[#allocation5 + $0x78] sm:$0xff] %vm2272_vm2, %v2576_v16  ;;  %2591 = vst.msk [vmem:[#allocation5 + $0x70] sm:$0xff] %vm2272_vm2, %v2575_v61 }
 0x545 PF: > { %p3629_p13 = scmp.ne.s32.totalorder %s4146_s18, 3 }
 0x546   : > { %v6474_v25 = vld [vmem:[%s6858_s4] sm:$0xff] (!%p3629_p13)  ;;  %v6479_v2 = vld [vmem:[%s6858_s4 + $0x10] sm:$0xff] (!%p3629_p13)  ;;  %v6486_v9 = vld [vmem:[%s6858_s4 + $0x8] sm:$0xff] (!%p3629_p13)  ;;  %v4167_v50 = vmov (!%p3629_p13), 0  }
 0x547   : > { %2596 = sbr.rel (%p3629_p13) target bundleno = 1873 (0x751), region = 56  ;;  %2805 = vmax.xlane.f32.xlu0 (!%p3629_p13), %v6474_v25  ;;  %2809 = vmax.xlane.f32.xlu1 (!%p3629_p13), %v6479_v2  ;;  %v6491_v11 = vld [vmem:[%s6858_s4 + $0x18] sm:$0xff] (!%p3629_p13)  ;;  %v6498_v7 = vld [vmem:[%s6858_s4 + $0x20] sm:$0xff] (!%p3629_p13)  ;;  %v6503_v28 = vld [vmem:[%s6858_s4 + $0x28] sm:$0xff] (!%p3629_p13) }
 0x548   : > { %3987 = vset.pattern.permute.xlu1 (!%p3629_p13), %v4167_v50  ;;  %3986 = vset.pattern.permute.xlu0 (!%p3629_p13), %v4167_v50  ;;  %v6510_v44 = vld [vmem:[%s6858_s4 + $0x30] sm:$0xff] (!%p3629_p13)  ;;  %v6515_v46 = vld [vmem:[%s6858_s4 + $0x38] sm:$0xff] (!%p3629_p13)  ;;  %v6522_v6 = vld [vmem:[%s6858_s4 + $0x40] sm:$0xff] (!%p3629_p13) }
 0x549   : > { %v6527_v34 = vld [vmem:[%s6858_s4 + $0x48] sm:$0xff] (!%p3629_p13)  ;;  %v6534_v30 = vld [vmem:[%s6858_s4 + $0x50] sm:$0xff] (!%p3629_p13)  ;;  %v6539_v58 = vld [vmem:[%s6858_s4 + $0x58] sm:$0xff] (!%p3629_p13) }
 0x54a   : > { %v6546_v45 = vld [vmem:[%s6858_s4 + $0x60] sm:$0xff] (!%p3629_p13)  ;;  %v6551_v55 = vld [vmem:[%s6858_s4 + $0x68] sm:$0xff] (!%p3629_p13)  ;;  %v6558_v48 = vld [vmem:[%s6858_s4 + $0x70] sm:$0xff] (!%p3629_p13) }
 0x54b   : > { %2807 = vmax.xlane.f32.xlu0 (!%p3629_p13), %v6486_v9  ;;  %2811 = vmax.xlane.f32.xlu1 (!%p3629_p13), %v6491_v11  ;;  %v6563_v24 = vld [vmem:[%s6858_s4 + $0x78] sm:$0xff] (!%p3629_p13)  ;;  %v2984_v41 = vld [vmem:[%s6856_s2 + $0x8] sm:$0xff] (!%p3629_p13)  ;;  %v2985_v49 = vld [vmem:[%s6856_s2 + $0x10] sm:$0xff] (!%p3629_p13) }
 0x54c   : > { %v2983_v29 = vld [vmem:[%s6856_s2] sm:$0xff] (!%p3629_p13)  ;;  %v2986_v53 = vld [vmem:[%s6856_s2 + $0x18] sm:$0xff] (!%p3629_p13)  ;;  %v2992_v20 = vld [vmem:[%s6856_s2 + $0x48] sm:$0xff] (!%p3629_p13) }
 0x54d   : > { %v2987_v39 = vld [vmem:[%s6856_s2 + $0x20] sm:$0xff] (!%p3629_p13)  ;;  %v2994_v27 = vld [vmem:[%s6856_s2 + $0x58] sm:$0xff] (!%p3629_p13)  ;;  %v2988_v32 = vld [vmem:[%s6856_s2 + $0x28] sm:$0xff] (!%p3629_p13) }
 0x54e   : > { %v2996_v40 = vld [vmem:[%s6856_s2 + $0x68] sm:$0xff]  ;;  %v2989_v13 = vld [vmem:[%s6856_s2 + $0x30] sm:$0xff]  ;;  %v2990_v19 = vld [vmem:[%s6856_s2 + $0x38] sm:$0xff] }
 0x54f   : > { %2813 = vmax.xlane.f32.xlu0 %v6498_v7  ;;  %2815 = vmax.xlane.f32.xlu1 %v6503_v28  ;;  %v2991_v22 = vld [vmem:[%s6856_s2 + $0x40] sm:$0xff]  ;;  %v2993_v36 = vld [vmem:[%s6856_s2 + $0x50] sm:$0xff] }
 0x550   : > { %v2995_v43 = vld [vmem:[%s6856_s2 + $0x60] sm:$0xff] }
 0x553   : > { %2817 = vmax.xlane.f32.xlu0 %v6510_v44  ;;  %2819 = vmax.xlane.f32.xlu1 %v6515_v46 }
 0x557   : > { %2821 = vmax.xlane.f32.xlu0 %v6522_v6  ;;  %2823 = vmax.xlane.f32.xlu1 %v6527_v34 }
 0x55b   : > { %2825 = vmax.xlane.f32.xlu0 %v6534_v30  ;;  %2827 = vmax.xlane.f32.xlu1 %v6539_v58 }
 0x55f   : > { %2829 = vmax.xlane.f32.xlu0 %v6546_v45  ;;  %2831 = vmax.xlane.f32.xlu1 %v6551_v55 }
 0x563   : > { %2833 = vmax.xlane.f32.xlu0 %v6558_v48  ;;  %2835 = vmax.xlane.f32.xlu1 %v6563_v24 }
 0x574   : > { %3003 = vperm.xlu1 %3987, %v2984_v41  }
 0x578   : > { %3006 = vperm.xlu1 %3987, %v2985_v49  }
 0x579   : > { %3000 = vperm.xlu0 %3986, %v2983_v29  }
 0x57c   : > { %3009 = vperm.xlu1 %3987, %v2986_v53  }
 0x57d   : > { %3027 = vperm.xlu0 %3986, %v2992_v20  }
 0x580   : > { %3012 = vperm.xlu1 %3987, %v2987_v39  }
 0x581   : > { %3033 = vperm.xlu0 %3986, %v2994_v27  }
 0x584   : > { %3015 = vperm.xlu1 %3987, %v2988_v32  }
 0x585   : > { %3039 = vperm.xlu0 %3986, %v2996_v40  }
 0x588   : > { %3018 = vperm.xlu1 %3987, %v2989_v13  }
 0x58c   : > { %3021 = vperm.xlu1 %3987, %v2990_v19  }
 0x590   : > { %3024 = vperm.xlu1 %3987, %v2991_v22  }
 0x594   : > { %3030 = vperm.xlu1 %3987, %v2993_v36  }
 0x598   : > { %3036 = vperm.xlu1 %3987, %v2995_v43  }
 0x5d4   : > { %v6609_v31 = vpop.xlane.xlu0 %2805  ;;  %v6611_v26 = vpop.xlane.xlu1 %2809 }
 0x5d5   : > { %v2837_v35 = vsub.f32 %v6474_v25, %v6609_v31  ;;  %v2839_v3 = vsub.f32 %v6479_v2, %v6611_v26 }
 0x5d7   : > { %v2853_v51 = vmul.f32 1.442695, %v2837_v35  ;;  %v2857_v21 = vmul.f32 1.442695, %v2839_v3 }
 0x5d8   : > { %v6617_v15 = vpop.xlane.xlu0 %2807  ;;  %v6619_v38 = vpop.xlane.xlu1 %2811 }
 0x5d9   : > { %3988 = vpow2.f32 %v2853_v51  ;;  %v2838_v10 = vsub.f32 %v6486_v9, %v6617_v15  ;;  %v2840_v54 = vsub.f32 %v6491_v11, %v6619_v38 }
 0x5da   : > { %3990 = vpow2.f32 %v2857_v21 }
 0x5db   : > { %v2855_v62 = vmul.f32 1.442695, %v2838_v10  ;;  %v2859_v0 = vmul.f32 1.442695, %v2840_v54 }
 0x5dc   : > { %v6625_v12 = vpop.xlane.xlu0 %2813  ;;  %v6627_v14 = vpop.xlane.xlu1 %2815 }
 0x5dd   : > { %3992 = vpow2.f32 %v2855_v62  ;;  %v2841_v23 = vsub.f32 %v6498_v7, %v6625_v12  ;;  %v2842_v60 = vsub.f32 %v6503_v28, %v6627_v14 }
 0x5de   : > { %3994 = vpow2.f32 %v2859_v0 }
 0x5df   : > { %v2861_v4 = vmul.f32 1.442695, %v2841_v23  ;;  %v2863_v18 = vmul.f32 1.442695, %v2842_v60 }
 0x5e0   : > { %v6633_v56 = vpop.xlane.xlu0 %2817  ;;  %v6635_v52 = vpop.xlane.xlu1 %2819 }
 0x5e1   : > { %3996 = vpow2.f32 %v2861_v4  ;;  %v2843_v1 = vsub.f32 %v6510_v44, %v6633_v56  ;;  %v2844_v57 = vsub.f32 %v6515_v46, %v6635_v52 }
 0x5e2   : > { %3998 = vpow2.f32 %v2863_v18 }
 0x5e3   : > { %v3989_v33 = vpop.eup %3988  ;;  %v2865_v47 = vmul.f32 1.442695, %v2843_v1  ;;  %v2867_v42 = vmul.f32 1.442695, %v2844_v57 }
 0x5e4   : > { %2885 = vadd.xlane.f32.xlu0 %v3989_v33  ;;  %v6641_v37 = vpop.xlane.xlu0 %2821  ;;  %v6643_v8 = vpop.xlane.xlu1 %2823 }
 0x5e5   : > { %v3991_v5 = vpop.eup %3990  ;;  %4000 = vpow2.f32 %v2865_v47  ;;  %v2845_v63 = vsub.f32 %v6522_v6, %v6641_v37  ;;  %v2846_v59 = vsub.f32 %v6527_v34, %v6643_v8 }
 0x5e6   : > { %4002 = vpow2.f32 %v2867_v42  ;;  %v2997_v42 = vld [vmem:[%s6856_s2 + $0x70] sm:$0xff] }
 0x5e7   : > { %v3993_v17 = vpop.eup %3992  ;;  %v2869_v16 = vmul.f32 1.442695, %v2845_v63  ;;  %v2871_v61 = vmul.f32 1.442695, %v2846_v59 }
 0x5e8   : > { %2889 = vadd.xlane.f32.xlu0 %v3991_v5  ;;  %2887 = vadd.xlane.f32.xlu1 %v3993_v17  ;;  %v6649_v50 = vpop.xlane.xlu0 %2825  ;;  %v6651_v41 = vpop.xlane.xlu1 %2827  ;;  %v2998_v5 = vld [vmem:[%s6856_s2 + $0x78] sm:$0xff] }
 0x5e9   : > { %v3995_v49 = vpop.eup %3994  ;;  %4004 = vpow2.f32 %v2869_v16  ;;  %v2847_v29 = vsub.f32 %v6534_v30, %v6649_v50  ;;  %v2848_v53 = vsub.f32 %v6539_v58, %v6651_v41 }
 0x5ea   : > { %4006 = vpow2.f32 %v2871_v61 }
 0x5eb   : > { %v3997_v20 = vpop.eup %3996  ;;  %v2873_v39 = vmul.f32 1.442695, %v2847_v29  ;;  %v2875_v27 = vmul.f32 1.442695, %v2848_v53 }
 0x5ec   : > { %2891 = vadd.xlane.f32.xlu1 %v3995_v49  ;;  %2893 = vadd.xlane.f32.xlu0 %v3997_v20  ;;  %v6657_v32 = vpop.xlane.xlu0 %2829  ;;  %v6659_v40 = vpop.xlane.xlu1 %2831 }
 0x5ed   : > { %v3999_v13 = vpop.eup %3998  ;;  %4008 = vpow2.f32 %v2873_v39  ;;  %v2849_v19 = vsub.f32 %v6546_v45, %v6657_v32  ;;  %v2850_v22 = vsub.f32 %v6551_v55, %v6659_v40 }
 0x5ee   : > { %4010 = vpow2.f32 %v2875_v27 }
 0x5ef   : > { %v4001_v36 = vpop.eup %4000  ;;  %v2877_v43 = vmul.f32 1.442695, %v2849_v19  ;;  %v2879_v35 = vmul.f32 1.442695, %v2850_v22 }
 0x5f0   : > { %2895 = vadd.xlane.f32.xlu1 %v3999_v13  ;;  %2897 = vadd.xlane.f32.xlu0 %v4001_v36  ;;  %v6665_v3 = vpop.xlane.xlu0 %2833  ;;  %v6667_v51 = vpop.xlane.xlu1 %2835 }
 0x5f1   : > { %v4003_v21 = vpop.eup %4002  ;;  %4012 = vpow2.f32 %v2877_v43  ;;  %v2851_v10 = vsub.f32 %v6558_v48, %v6665_v3  ;;  %v2852_v54 = vsub.f32 %v6563_v24, %v6667_v51 }
 0x5f2   : > { %4014 = vpow2.f32 %v2879_v35 }
 0x5f3   : > { %v4005_v62 = vpop.eup %4004  ;;  %v2881_v0 = vmul.f32 1.442695, %v2851_v10  ;;  %v2883_v23 = vmul.f32 1.442695, %v2852_v54 }
 0x5f4   : > { %2899 = vadd.xlane.f32.xlu1 %v4003_v21  ;;  %2901 = vadd.xlane.f32.xlu0 %v4005_v62  ;;  %v4007_v60 = vpop.eup %4006  ;;  %v6679_v63 = vpop.permute.xlu1 %3003 }
 0x5f5   : > { %4016 = vpow2.f32 %v2881_v0 }
 0x5f6   : > { %4018 = vpow2.f32 %v2883_v23 }
 0x5f7   : > { %v4009_v4 = vpop.eup %4008 }
 0x5f8   : > { %2903 = vadd.xlane.f32.xlu1 %v4007_v60  ;;  %2905 = vadd.xlane.f32.xlu0 %v4009_v4  ;;  %v4011_v18 = vpop.eup %4010  ;;  %v6681_v59 = vpop.permute.xlu1 %3006 }
 0x5f9   : > { %v6691_v29 = vpop.permute.xlu0 %3000 }
 0x5fb   : > { %v4013_v1 = vpop.eup %4012 }
 0x5fc   : > { %2907 = vadd.xlane.f32.xlu1 %v4011_v18  ;;  %2909 = vadd.xlane.f32.xlu0 %v4013_v1  ;;  %v4015_v57 = vpop.eup %4014  ;;  %v6683_v17 = vpop.permute.xlu1 %3009 }
 0x5fd   : > { %v6695_v20 = vpop.permute.xlu0 %3027 }
 0x5ff   : > { %v4017_v33 = vpop.eup %4016 }
 0x600   : > { %2911 = vadd.xlane.f32.xlu1 %v4015_v57  ;;  %2913 = vadd.xlane.f32.xlu0 %v4017_v33  ;;  %v4019_v47 = vpop.eup %4018  ;;  %v6685_v16 = vpop.permute.xlu1 %3012 }
 0x601   : > { %v6699_v27 = vpop.permute.xlu0 %3033 }
 0x604   : > { %2915 = vadd.xlane.f32.xlu1 %v4019_v47  ;;  %v6687_v61 = vpop.permute.xlu1 %3015 }
 0x605   : > { %v6703_v19 = vpop.permute.xlu0 %3039 }
 0x608   : > { %v6689_v49 = vpop.permute.xlu1 %3018 }
 0x60c   : > { %v6693_v53 = vpop.permute.xlu1 %3021 }
 0x610   : > { %v6697_v39 = vpop.permute.xlu1 %3024 }
 0x614   : > { %v6701_v13 = vpop.permute.xlu1 %3030 }
 0x615   : > { %3042 = vperm.xlu1 %3987, %v2997_v42  }
 0x616   : > { %3045 = vperm.xlu0 %3986, %v2998_v5  }
 0x618   : > { %v6705_v22 = vpop.permute.xlu1 %3036 }
 0x671   : > { %v2886_v36 = vpop.xlane.xlu0 %2885 }
 0x672   : > { %4020 = vlog2.f32 %v2886_v36 }
 0x675   : > { %v2888_v43 = vpop.xlane.xlu1 %2887  ;;  %v2890_v35 = vpop.xlane.xlu0 %2889 }
 0x676   : > { %4022 = vlog2.f32 %v2888_v43 }
 0x677   : > { %4024 = vlog2.f32 %v2890_v35 }
 0x679   : > { %v2892_v21 = vpop.xlane.xlu1 %2891  ;;  %v2894_v10 = vpop.xlane.xlu0 %2893 }
 0x67a   : > { %4026 = vlog2.f32 %v2892_v21 }
 0x67b   : > { %4028 = vlog2.f32 %v2894_v10 }
 0x67c   : > { %v4021_v54 = vpop.eup %4020 }
 0x67d   : > { %v2918_v62 = vmul.f32 0.6931472, %v4021_v54  ;;  %v2896_v0 = vpop.xlane.xlu1 %2895  ;;  %v2898_v23 = vpop.xlane.xlu0 %2897 }
 0x67e   : > { %4030 = vlog2.f32 %v2896_v0 }
 0x67f   : > { %4032 = vlog2.f32 %v2898_v23  ;;  %v2949_v60 = vadd.f32 %v2918_v62, %v6609_v31 }
 0x680   : > { %v4023_v4 = vpop.eup %4022 }
 0x681   : > { %v4025_v18 = vpop.eup %4024  ;;  %v2920_v1 = vmul.f32 0.6931472, %v4023_v4  ;;  %v2900_v57 = vpop.xlane.xlu1 %2899  ;;  %v6709_v47 = vsub.f32 %v6474_v25, %v2949_v60 }
 0x682   : > { %v2902_v33 = vpop.xlane.xlu0 %2901  ;;  %v2922_v42 = vmul.f32 0.6931472, %v4025_v18  ;;  %4034 = vlog2.f32 %v2900_v57 }
 0x683   : > { %4036 = vlog2.f32 %v2902_v33  ;;  %3159 = vadd.xlane.f32.xlu1 %v6709_v47  ;;  %v2950_v5 = vadd.f32 %v2920_v1, %v6617_v15 }
 0x684   : > { %v4027_v36 = vpop.eup %4026  ;;  %v2951_v54 = vadd.f32 %v2922_v42, %v6611_v26 }
 0x685   : > { %v4029_v43 = vpop.eup %4028  ;;  %v2924_v35 = vmul.f32 0.6931472, %v4027_v36  ;;  %v2904_v21 = vpop.xlane.xlu1 %2903  ;;  %v6714_v10 = vsub.f32 %v6486_v9, %v2950_v5 }
 0x686   : > { %v2906_v31 = vpop.xlane.xlu0 %2905  ;;  %v2926_v62 = vmul.f32 0.6931472, %v4029_v43  ;;  %4038 = vlog2.f32 %v2904_v21  ;;  %v6723_v9 = vsub.f32 %v6479_v2, %v2951_v54 }
 0x687   : > { %4040 = vlog2.f32 %v2906_v31  ;;  %3161 = vadd.xlane.f32.xlu0 %v6714_v10  ;;  %v2952_v25 = vadd.f32 %v2924_v35, %v6619_v38 }
 0x688   : > { %v4031_v0 = vpop.eup %4030  ;;  %v2953_v26 = vadd.f32 %v2926_v62, %v6625_v12 }
 0x689   : > { %v4033_v23 = vpop.eup %4032  ;;  %v2928_v15 = vmul.f32 0.6931472, %v4031_v0  ;;  %v2908_v60 = vpop.xlane.xlu1 %2907  ;;  %v6720_v18 = vsub.f32 %v6491_v11, %v2952_v25 }
 0x68a   : > { %v2910_v4 = vpop.xlane.xlu0 %2909  ;;  %v2930_v1 = vmul.f32 0.6931472, %v4033_v23  ;;  %4042 = vlog2.f32 %v2908_v60  ;;  %v6733_v2 = vsub.f32 %v6498_v7, %v2953_v26 }
 0x68b   : > { %4044 = vlog2.f32 %v2910_v4  ;;  %3165 = vadd.xlane.f32.xlu1 %v6720_v18  ;;  %3163 = vadd.xlane.f32.xlu0 %v6723_v9  ;;  %v2954_v38 = vadd.f32 %v2928_v15, %v6627_v14 }
 0x68c   : > { %v4035_v57 = vpop.eup %4034  ;;  %v2955_v12 = vadd.f32 %v2930_v1, %v6633_v56 }
 0x68d   : > { %v4037_v33 = vpop.eup %4036  ;;  %v2932_v42 = vmul.f32 0.6931472, %v4035_v57  ;;  %v2912_v5 = vpop.xlane.xlu1 %2911  ;;  %v6730_v36 = vsub.f32 %v6503_v28, %v2954_v38 }
 0x68e   : > { %v2914_v11 = vpop.xlane.xlu0 %2913  ;;  %v2934_v43 = vmul.f32 0.6931472, %v4037_v33  ;;  %4046 = vlog2.f32 %v2912_v5  ;;  %v6743_v7 = vsub.f32 %v6510_v44, %v2955_v12 }
 0x68f   : > { %4048 = vlog2.f32 %v2914_v11  ;;  %3169 = vadd.xlane.f32.xlu1 %v6730_v36  ;;  %3167 = vadd.xlane.f32.xlu0 %v6733_v2  ;;  %v2956_v14 = vadd.f32 %v2932_v42, %v6635_v52 }
 0x690   : > { %v4039_v35 = vpop.eup %4038  ;;  %v2957_v56 = vadd.f32 %v2934_v43, %v6641_v37 }
 0x691   : > { %v4041_v21 = vpop.eup %4040  ;;  %v2936_v31 = vmul.f32 0.6931472, %v4039_v35  ;;  %v2916_v54 = vpop.xlane.xlu1 %2915  ;;  %v6740_v28 = vsub.f32 %v6515_v46, %v2956_v14 }
 0x692   : > { %v2938_v62 = vmul.f32 0.6931472, %v4041_v21  ;;  %4050 = vlog2.f32 %v2916_v54  ;;  %v6753_v46 = vsub.f32 %v6522_v6, %v2957_v56  ;;  %v2694_v56 = vld [vmem:[#allocation3 + $0x8] sm:$0xff] }
 0x693   : > { %3173 = vadd.xlane.f32.xlu1 %v6740_v28  ;;  %3171 = vadd.xlane.f32.xlu0 %v6743_v7  ;;  %v2958_v52 = vadd.f32 %v2936_v31, %v6643_v8 }
 0x694   : > { %v4043_v25 = vpop.eup %4042  ;;  %v2959_v44 = vadd.f32 %v2938_v62, %v6649_v50  ;;  %v2693_v62 = vld [vmem:[#allocation3] sm:$0xff] }
 0x695   : > { %v4045_v0 = vpop.eup %4044  ;;  %v2940_v23 = vmul.f32 0.6931472, %v4043_v25  ;;  %v6750_v15 = vsub.f32 %v6527_v34, %v2958_v52  ;;  %v3043_v14 = vpop.permute.xlu1 %3042  ;;  %v2630_v52 = vld [vmem:[#allocation5 + $0x8] sm:$0xff]  ;;  %v2710_v25 = vadd.f32 1e-12, %v2694_v56 }
 0x696   : > { %v2942_v37 = vmul.f32 0.6931472, %v4045_v0  ;;  %v6763_v34 = vsub.f32 %v6534_v30, %v2959_v44  ;;  %v2629_v0 = vld [vmem:[#allocation5] sm:$0xff]  ;;  %4052 = vrcp.f32 %v2630_v52  ;;  %v2632_v44 = vld [vmem:[#allocation5 + $0x18] sm:$0xff] }
 0x697   : > { %3177 = vadd.xlane.f32.xlu1 %v6750_v15  ;;  %3175 = vadd.xlane.f32.xlu0 %v6753_v46  ;;  %v2960_v60 = vadd.f32 %v2940_v23, %v6651_v41  ;;  %v7767_v41 = vlaneseq  ;;  %v2709_v23 = vadd.f32 1e-12, %v2693_v62  ;;  %4054 = vrcp.f32 %v2629_v0 }
 0x698   : > { %v4047_v4 = vpop.eup %4046  ;;  %v2961_v6 = vadd.f32 %v2942_v37, %v6657_v32  ;;  %4056 = vlog2.f32 %v2710_v25 }
 0x699   : > { %v4049_v8 = vpop.eup %4048  ;;  %v2944_v26 = vmul.f32 0.6931472, %v4047_v4  ;;  %v6760_v1 = vsub.f32 %v6539_v58, %v2960_v60  ;;  %v6770_v33 = vand.u32 127, %v7767_v41  ;;  %v2631_v60 = vld [vmem:[#allocation5 + $0x10] sm:$0xff]  ;;  %4058 = vlog2.f32 %v2709_v23 }
 0x69a   : > { %v2946_v38 = vmul.f32 0.6931472, %v4049_v8  ;;  %v6776_v30 = vsub.f32 %v6546_v45, %v2961_v6  ;;  %v2698_v8 = vld [vmem:[#allocation3 + $0x28] sm:$0xff]  ;;  %4060 = vrcp.f32 %v2632_v44  ;;  %v2633_v6 = vld [vmem:[#allocation5 + $0x20] sm:$0xff]  ;;  %v2699_v41 = vld [vmem:[#allocation3 + $0x30] sm:$0xff] }
 0x69b   : > { %3181 = vadd.xlane.f32.xlu1 %v6760_v1  ;;  %3179 = vadd.xlane.f32.xlu0 %v6763_v34  ;;  %v2962_v50 = vadd.f32 %v2944_v26, %v6659_v40  ;;  %vm3048_vm2 = vcmp.eq.s32.totalorder %v6770_v33, %v6679_v63  ;;  %vm3047_vm14 = vcmp.eq.s32.totalorder %v6770_v33, %v6691_v29  ;;  %v4168_v40 = vmov 0.0   ;;  %v2697_v26 = vld [vmem:[#allocation3 + $0x20] sm:$0xff] }
 0x69c   : > { %v4051_v57 = vpop.eup %4050  ;;  %v2963_v32 = vadd.f32 %v2946_v38, %v6665_v3  ;;  %v3631_v3 = vsel %vm3048_vm2, 1.0, %v4168_v40  ;;  %v3630_v11 = vsel %vm3047_vm14, 1.0, %v4168_v40  ;;  %vm3049_vm0 = vcmp.eq.s32.totalorder %v6770_v33, %v6681_v59 }
 0x69d   : > { %v2948_v42 = vmul.f32 0.6931472, %v4051_v57  ;;  %v6773_v58 = vsub.f32 %v6551_v55, %v2962_v50  ;;  %vm3050_vm12 = vcmp.eq.s32.totalorder %v6770_v33, %v6683_v17  ;;  %vm3051_vm6 = vcmp.eq.s32.totalorder %v6770_v33, %v6685_v16  ;;  %v2700_v50 = vld [vmem:[#allocation3 + $0x38] sm:$0xff] }
 0x69e   : > { %v6790_v45 = vsub.f32 %v6558_v48, %v2963_v32  ;;  %v3632_v48 = vsel %vm3049_vm0, 1.0, %v4168_v40  ;;  %v3633_v63 = vsel %vm3050_vm12, 1.0, %v4168_v40  ;;  %vm3052_vm3 = vcmp.eq.s32.totalorder %v6770_v33, %v6687_v61  ;;  %v2636_v57 = vld [vmem:[#allocation5 + $0x38] sm:$0xff]  ;;  %v2702_v32 = vld [vmem:[#allocation3 + $0x48] sm:$0xff] }
 0x69f   : > { %3185 = vadd.xlane.f32.xlu1 %v6773_v58  ;;  %3183 = vadd.xlane.f32.xlu0 %v6776_v30  ;;  %v2964_v5 = vadd.f32 %v2948_v42, %v6667_v51  ;;  %v3096_v51 = vmul.f32 %v3631_v3, %v6714_v10  ;;  %v3098_v29 = vmul.f32 %v3633_v63, %v6720_v18  ;;  %v3634_v17 = vsel %vm3051_vm6, 1.0, %v4168_v40 }
 0x6a0   : > { %v3097_v59 = vmul.f32 %v3632_v48, %v6723_v9  ;;  %v3635_v10 = vsel %vm3052_vm3, 1.0, %v4168_v40  ;;  %vm3053_vm1 = vcmp.eq.s32.totalorder %v6770_v33, %v6689_v49  ;;  %vm3054_vm8 = vcmp.eq.s32.totalorder %v6770_v33, %v6693_v53  ;;  %v2701_v48 = vld [vmem:[#allocation3 + $0x40] sm:$0xff] }
 0x6a1   : > { %v6787_v55 = vsub.f32 %v6563_v24, %v2964_v5  ;;  %v3095_v24 = vmul.f32 %v3630_v11, %v6709_v47  ;;  %v3100_v47 = vmul.f32 %v3635_v10, %v6730_v36  ;;  %v3099_v16 = vmul.f32 %v3634_v17, %v6733_v2  ;;  %v2640_v17 = vld [vmem:[#allocation5 + $0x58] sm:$0xff] }
 0x6a2   : > { %v3636_v61 = vsel %vm3053_vm1, 1.0, %v4168_v40  ;;  %v3637_v18 = vsel %vm3054_vm8, 1.0, %v4168_v40  ;;  %vm3055_vm13 = vcmp.eq.s32.totalorder %v6770_v33, %v6697_v39  ;;  %vm3056_vm15 = vcmp.eq.s32.totalorder %v6770_v33, %v6695_v20  ;;  %v2704_v10 = vld [vmem:[#allocation3 + $0x58] sm:$0xff] }
 0x6a3   : > { %3189 = vadd.xlane.f32.xlu1 %v6787_v55  ;;  %3187 = vadd.xlane.f32.xlu0 %v6790_v45  ;;  %v3102_v9 = vmul.f32 %v3637_v18, %v6740_v28  ;;  %v3101_v49 = vmul.f32 %v3636_v61, %v6743_v7  ;;  %v3638_v53 = vsel %vm3055_vm13, 1.0, %v4168_v40  ;;  %v3639_v36 = vsel %vm3056_vm15, 1.0, %v4168_v40  ;;  %v2639_v61 = vld [vmem:[#allocation5 + $0x50] sm:$0xff] }
 0x6a4   : > { %vm3057_vm9 = vcmp.eq.s32.totalorder %v6770_v33, %v6701_v13  ;;  %vm3058_vm7 = vcmp.eq.s32.totalorder %v6770_v33, %v6699_v27  ;;  %v3104_v2 = vmul.f32 %v3639_v36, %v6750_v15  ;;  %v3103_v39 = vmul.f32 %v3638_v53, %v6753_v46  ;;  %v3046_v27 = vpop.permute.xlu0 %3045  ;;  %v2696_v15 = vld [vmem:[#allocation3 + $0x18] sm:$0xff]  ;;  %v2695_v46 = vld [vmem:[#allocation3 + $0x10] sm:$0xff] }
 0x6a5   : > { %v3640_v20 = vsel %vm3057_vm9, 1.0, %v4168_v40  ;;  %v3641_v12 = vsel %vm3058_vm7, 1.0, %v4168_v40  ;;  %vm3059_vm4 = vcmp.eq.s32.totalorder %v6770_v33, %v6705_v22  ;;  %vm3060_vm5 = vcmp.eq.s32.totalorder %v6770_v33, %v6703_v19  ;;  %v2703_v18 = vld [vmem:[#allocation3 + $0x50] sm:$0xff] }
 0x6a6   : > { %v3106_v43 = vmul.f32 %v3641_v12, %v6760_v1  ;;  %v3105_v13 = vmul.f32 %v3640_v20, %v6763_v34  ;;  %v3642_v35 = vsel %vm3059_vm4, 1.0, %v4168_v40  ;;  %v3643_v21 = vsel %vm3060_vm5, 1.0, %v4168_v40  ;;  %v2634_v1 = vld [vmem:[#allocation5 + $0x28] sm:$0xff] }
 0x6a7   : > { %3113 = vadd.xlane.f32.xlu1 %v3096_v51  ;;  %3111 = vadd.xlane.f32.xlu0 %v3095_v24  ;;  %vm3061_vm11 = vcmp.eq.s32.totalorder %v6770_v33, %v3043_v14  ;;  %vm3062_vm10 = vcmp.eq.s32.totalorder %v6770_v33, %v3046_v27  ;;  %v3108_v31 = vmul.f32 %v3643_v21, %v6773_v58  ;;  %v2712_v37 = vadd.f32 1e-12, %v2696_v15  ;;  %v4053_v33 = vpop.eup %4052  ;;  %v2635_v58 = vld [vmem:[#allocation5 + $0x30] sm:$0xff]  ;;  %v2637_v51 = vld [vmem:[#allocation5 + $0x40] sm:$0xff] }
 0x6a8   : > { %v3107_v22 = vmul.f32 %v3642_v35, %v6776_v30  ;;  %v3644_v19 = vsel %vm3061_vm11, 1.0, %v4168_v40  ;;  %v3645_v54 = vsel %vm3062_vm10, 1.0, %v4168_v40  ;;  %v2711_v4 = vadd.f32 1e-12, %v2695_v46  ;;  %v4055_v30 = vpop.eup %4054  ;;  %v2597_v14 = vld [vmem:[#allocation2] sm:$0xff] }
 0x6a9   : > { %v3109_v28 = vmul.f32 %v3644_v19, %v6790_v45  ;;  %v3110_v7 = vmul.f32 %v3645_v54, %v6787_v55  ;;  %4062 = vrcp.f32 %v2631_v60  ;;  %v2714_v34 = vadd.f32 1e-12, %v2698_v8  ;;  %v4057_v5 = vpop.eup %4056  ;;  %v2638_v45 = vld [vmem:[#allocation5 + $0x48] sm:$0xff] }
 0x6aa   : > { %4064 = vlog2.f32 %v2712_v37  ;;  %v2713_v38 = vadd.f32 1e-12, %v2697_v26  ;;  %v2716_v42 = vadd.f32 1e-12, %v2700_v50  ;;  %v2715_v55 = vadd.f32 1e-12, %v2699_v41  ;;  %v4059_v40 = vpop.eup %4058 }
 0x6ab   : > { %3117 = vadd.xlane.f32.xlu1 %v3098_v29  ;;  %3115 = vadd.xlane.f32.xlu0 %v3097_v59  ;;  %4066 = vlog2.f32 %v2711_v4  ;;  %v4061_v3 = vpop.eup %4060  ;;  %v2718_v11 = vadd.f32 1e-12, %v2702_v32  ;;  %v2720_v36 = vadd.f32 1e-12, %v2704_v10  ;;  %v2642_v54 = vld [vmem:[#allocation5 + $0x68] sm:$0xff]  ;;  %v2705_v37 = vld [vmem:[#allocation3 + $0x60] sm:$0xff] }
 0x6ac   : > { %4068 = vrcp.f32 %v2634_v1  ;;  %v2726_v56 = vmul.f32 0.6931472, %v4059_v40  ;;  %v2641_v4 = vld [vmem:[#allocation5 + $0x60] sm:$0xff]  ;;  %vm3304_vm2 = vcmask 7168  }
 0x6ad   : > { %4070 = vrcp.f32 %v2633_v6  ;;  %v2644_v6 = vld [vmem:[#allocation5 + $0x78] sm:$0xff] }
 0x6ae   : > { %4072 = vlog2.f32 %v2714_v34  ;;  %v2721_v34 = vadd.f32 1e-12, %v2705_v37 }
 0x6af   : > { %3121 = vadd.xlane.f32.xlu1 %v3100_v47  ;;  %3119 = vadd.xlane.f32.xlu0 %v3099_v16  ;;  %4074 = vlog2.f32 %v2713_v38  ;;  %v2613_v16 = vld [vmem:[#allocation4] sm:$0xff] }
 0x6b0   : > { %4076 = vrcp.f32 %v2636_v57  ;;  %v2646_v12 = vmul.f32 %v4055_v30, %v2613_v16  ;;  %v2708_v30 = vld [vmem:[#allocation3 + $0x78] sm:$0xff] }
 0x6b1   : > { %4078 = vrcp.f32 %v2635_v58 }
 0x6b2   : > { %4080 = vlog2.f32 %v2716_v42  ;;  %v2677_v19 = vsub.f32 %v2646_v12, %v2597_v14 }
 0x6b3   : > { %3125 = vadd.xlane.f32.xlu1 %v3102_v9  ;;  %3123 = vadd.xlane.f32.xlu0 %v3101_v49  ;;  %v4063_v24 = vpop.eup %4062  ;;  %4082 = vrcp.f32 %v2638_v45  ;;  %v2717_v49 = vadd.f32 1e-12, %v2701_v48  ;;  %v2707_v45 = vld [vmem:[#allocation3 + $0x70] sm:$0xff] }
 0x6b4   : > { %v4065_v63 = vpop.eup %4064  ;;  %4084 = vlog2.f32 %v2715_v55  ;;  %v2757_v44 = vsub.f32 %v2677_v19, %v2726_v56  ;;  %v2643_v55 = vld [vmem:[#allocation5 + $0x70] sm:$0xff] }
 0x6b5   : > { %v4067_v47 = vpop.eup %4066  ;;  %4086 = vrcp.f32 %v2637_v51  ;;  %v2723_v51 = vadd.f32 1e-12, %v2707_v45 }
 0x6b6   : > { %v4069_v9 = vpop.eup %4068  ;;  %4088 = vlog2.f32 %v2718_v11  ;;  %v2773_v50 = vmul.f32 -1.0, %v2757_v44  ;;  %v2724_v11 = vadd.f32 1e-12, %v2708_v30 }
 0x6b7   : > { %3129 = vadd.xlane.f32.xlu1 %v3104_v2  ;;  %3127 = vadd.xlane.f32.xlu0 %v3103_v39  ;;  %v4071_v53 = vpop.eup %4070  ;;  %4090 = vrcp.f32 %v2640_v17 }
 0x6b8   : > { %v4073_v2 = vpop.eup %4072  ;;  %4092 = vrcp.f32 %v2639_v61  ;;  %v3272_v58 = vmul.f32 0.05, %v2773_v50 }
 0x6b9   : > { %4094 = vlog2.f32 %v2717_v49 }
 0x6ba   : > { %4096 = vlog2.f32 %v2720_v36 }
 0x6bb   : > { %3133 = vadd.xlane.f32.xlu1 %v3106_v43  ;;  %3131 = vadd.xlane.f32.xlu0 %v3105_v13  ;;  %v2719_v43 = vadd.f32 1e-12, %v2703_v18  ;;  %v4075_v13 = vpop.eup %4074 }
 0x6bc   : > { %v4077_v27 = vpop.eup %4076 }
 0x6bd   : > { %v4079_v35 = vpop.eup %4078  ;;  %4098 = vlog2.f32 %v2719_v43 }
 0x6be   : > { %v4081_v21 = vpop.eup %4080  ;;  %4100 = vrcp.f32 %v2642_v54 }
 0x6bf   : > { %3137 = vadd.xlane.f32.xlu1 %v3108_v31  ;;  %3135 = vadd.xlane.f32.xlu0 %v3107_v22 }
 0x6c3   : > { %3139 = vadd.xlane.f32.xlu0 %v3109_v28  ;;  %3141 = vadd.xlane.f32.xlu1 %v3110_v7  ;;  %v2706_v28 = vld [vmem:[#allocation3 + $0x68] sm:$0xff]  ;;  %v4083_v7 = vpop.eup %4082 }
 0x6c4   : > { %v4085_v62 = vpop.eup %4084  ;;  %v2722_v25 = vadd.f32 1e-12, %v2706_v28 }
 0x6c5   : > { %v4087_v52 = vpop.eup %4086 }
 0x6c6   : > { %v4089_v0 = vpop.eup %4088  ;;  %4102 = vlog2.f32 %v2722_v25 }
 0x6c7   : > { %v4091_v46 = vpop.eup %4090  ;;  %4104 = vrcp.f32 %v2641_v4 }
 0x6c8   : > { %v4093_v60 = vpop.eup %4092  ;;  %4106 = vrcp.f32 %v2644_v6 }
 0x6c9   : > { %v4095_v8 = vpop.eup %4094  ;;  %4108 = vlog2.f32 %v2721_v34 }
 0x6ca   : > { %v4097_v38 = vpop.eup %4096  ;;  %4110 = vrcp.f32 %v2643_v55 }
 0x6cb   : > { %v4099_v57 = vpop.eup %4098  ;;  %4112 = vlog2.f32 %v2724_v11 }
 0x6cc   : > { %v4101_v42 = vpop.eup %4100  ;;  %4114 = vlog2.f32 %v2723_v51 }
 0x6d0   : > { %v4103_v40 = vpop.eup %4102 }
 0x6d1   : > { %v4105_v24 = vpop.eup %4104 }
 0x710   : > { %v6836_v29 = vpop.xlane.xlu1 %3159 }
 0x711   : > { %v3191_v3 = vsub.f32 0.0, %v6836_v29 }
 0x713   : > { %v3208_v10 = vmul.f32 0.0078125, %v3191_v3 }
 0x714   : > { %v3162_v59 = vpop.xlane.xlu0 %3161 }
 0x715   : > { %v4107_v59 = vpop.eup %4106  ;;  %v3240_v18 = vmul.f32 0.1, %v3208_v10 }
 0x716   : > { %v4109_v17 = vpop.eup %4108 }
 0x717   : > { %v4111_v29 = vpop.eup %4110 }
 0x718   : > { %v3166_v39 = vpop.xlane.xlu1 %3165  ;;  %v3164_v20 = vpop.xlane.xlu0 %3163 }
 0x719   : > { %v4113_v39 = vpop.eup %4112 }
 0x71a   : > { %v4115_v43 = vpop.eup %4114 }
 0x71c   : > { %v3170_v31 = vpop.xlane.xlu1 %3169  ;;  %v3168_v22 = vpop.xlane.xlu0 %3167 }
 0x720   : > { %v3174_v23 = vpop.xlane.xlu1 %3173  ;;  %v3172_v15 = vpop.xlane.xlu0 %3171 }
 0x724   : > { %v3178_v26 = vpop.xlane.xlu1 %3177  ;;  %v3176_v1 = vpop.xlane.xlu0 %3175 }
 0x728   : > { %v3182_v41 = vpop.xlane.xlu1 %3181  ;;  %v3180_v33 = vpop.xlane.xlu0 %3179 }
 0x72c   : > { %v3186_v32 = vpop.xlane.xlu1 %3185  ;;  %v3184_v5 = vpop.xlane.xlu0 %3183 }
 0x730   : > { %v3190_v48 = vpop.xlane.xlu1 %3189  ;;  %v3188_v63 = vpop.xlane.xlu0 %3187 }
 0x734   : > { %v3114_v47 = vpop.xlane.xlu1 %3113  ;;  %v3112_v16 = vpop.xlane.xlu0 %3111 }
 0x735   : > { %v3143_v61 = vsub.f32 0.0, %v3112_v16 }
 0x737   : > { %v3224_v9 = vmul.f32 0.9, %v3143_v61 }
 0x738   : > { %v3118_v49 = vpop.xlane.xlu1 %3117  ;;  %v3116_v53 = vpop.xlane.xlu0 %3115 }
 0x739   : > { %v3256_v36 = vadd.f32 %v3240_v18, %v3224_v9 }
 0x73b   : > { %v3288_v2 = vadd.f32 %v3272_v58, %v3256_v36 }
 0x73c   : > { %v3122_v20 = vpop.xlane.xlu1 %3121  ;;  %v3120_v12 = vpop.xlane.xlu0 %3119 }
 0x73d   : > { %3305 = vst.msk [vmem:[#allocation6] sm:$0xff] %vm3304_vm2, %v3288_v2 }
 0x740   : > { %v3126_v13 = vpop.xlane.xlu1 %3125  ;;  %v3124_v14 = vpop.xlane.xlu0 %3123 }
 0x744   : > { %v3130_v27 = vpop.xlane.xlu1 %3129  ;;  %v3128_v35 = vpop.xlane.xlu0 %3127 }
 0x748   : > { %v3134_v21 = vpop.xlane.xlu1 %3133  ;;  %v3132_v31 = vpop.xlane.xlu0 %3131 }
 0x74c   : > { %v3138_v22 = vpop.xlane.xlu1 %3137  ;;  %v3136_v19 = vpop.xlane.xlu0 %3135 }
 0x750   : > { %v3142_v54 = vpop.xlane.xlu1 %3141  ;;  %v3140_v28 = vpop.xlane.xlu0 %3139 }
 0x751 PF: > { %p3646_p0 = scmp.ne.s32.totalorder %s3497_s21, 3 }
 0x752   : > { %s4156_s7 = smov (!%p3646_p0), 0  }
 0x753   : > { %3323 = sbr.rel (%p3646_p0) target bundleno = 1892 (0x764), region = 60 }
 0x75a LB: >> { %v3367_v7 = vld [vmem:[#allocation6] sm:$0xff]  ;;  %s3361_s7 = sadd.s32 1, %s4158_s7   ;;  %s4158_s7 = sphi %s4156_s7, %s3361_s7  }
 0x75b   : >> { %3368 = vst [vmem:[%s6859_s5] sm:$0xff] %v3367_v7  ;;  %p3360_p1 = scmp.ge.s32.totalorder %s3361_s7, 1 }
 0x75d   : > { %3363 = sbr.rel (!%p3360_p1) target bundleno = 1882 (0x75a), region = 133 }
 0x764 PF: > { %s15_s20 = sadd.s32 1, %s4154_s20   ;;  %s7768_s18 = smov %s4150_s19 }
 0x765   : > { %p12_p2 = scmp.ge.s32.totalorder %s15_s20, 6   ;;  %s7769_s19 = smov %s7771_s22 }
 0x767   :  { %14 = sbr.rel (!%p12_p2) target bundleno = 2 (0x2), region = 144 }

</bundles_post_ra>
